<compile_context>
chip_gen: v7x
topology: tpu7x:2x2x1
jax: 0.10.0
libtpu: 0.0.40
codegen_flags: <defaults>
</compile_context>

<pallas_src>
import functools

import jax
import jax.numpy as jnp
from jax.experimental import pallas as pl
from jax.experimental.pallas import tpu as pltpu

# ---- small synthetic CLIP config (real model: 336px, patch 14, width 1024/768) ----
B = 2            # image batch
T = 2            # prompts per image
IMG = 16         # image side (assumed already resized/cropped)
PATCH = 4        # vision patch size
GRID = IMG // PATCH
D_V = 32         # vision width
D_T = 32         # text width
HEADS = 4
LAYERS = 2       # transformer depth (real: 24 vision / 12 text)
CTX = 8          # text context length
VOCAB = 64
PROJ = 16        # text projection dim (analogue of self.feature_size)

K_RAW = 3 * PATCH * PATCH   # im2col contraction dim (48 here, 588 for patch-14)
K_PAD = 128                 # zero-padded to a full lane tile for aligned MXU passes

CLIP_MEAN = jnp.array([0.48145466, 0.4578275, 0.40821073], jnp.float32)
CLIP_STD = jnp.array([0.26862954, 0.26130258, 0.27577711], jnp.float32)


# ----------------------------- fused residual block -----------------------------

def _block_kernel(x_ref, ln1g_ref, ln1b_ref, win_ref, bin_ref, wout_ref, bout_ref,
                  ln2g_ref, ln2b_ref, wfc_ref, bfc_ref, wpr_ref, bpr_ref,
                  o_ref, *, n_heads, causal):
    """One full CLIP ResidualAttentionBlock for one batch element, entirely in VMEM."""
    x = x_ref[0]                              # [S, D] f32
    S, D = x.shape
    hd = D // n_heads
    scale = 1.0 / float(hd) ** 0.5

    def _ln(v, g_ref, b_ref):                 # fp32 LayerNorm stats
        mu = jnp.mean(v, axis=-1, keepdims=True)
        vc = v - mu
        var = jnp.mean(vc * vc, axis=-1, keepdims=True)
        return vc * jax.lax.rsqrt(var + 1e-5) * g_ref[...] + b_ref[...]

    # ---- attention sub-block: x += W_out @ MHA(LN1(x)) ----
    h = _ln(x, ln1g_ref, ln1b_ref)
    qkv = jnp.dot(h.astype(jnp.bfloat16), win_ref[...],
                  preferred_element_type=jnp.float32) + bin_ref[...]      # [S, 3D]

    if causal:  # generated on the VPU, never read from HBM
        row = jax.lax.broadcasted_iota(jnp.int32, (S, S), 0)
        col = jax.lax.broadcasted_iota(jnp.int32, (S, S), 1)
        keep = col <= row

    heads = []
    for hh in range(n_heads):                 # static unroll; slices stay in vregs
        q = qkv[:, hh * hd:(hh + 1) * hd] * scale
        k = qkv[:, D + hh * hd:D + (hh + 1) * hd]
        v = qkv[:, 2 * D + hh * hd:2 * D + (hh + 1) * hd]
        s = jax.lax.dot_general(               # q @ k^T without an explicit transpose
            q.astype(jnp.bfloat16), k.astype(jnp.bfloat16),
            dimension_numbers=(((1,), (1,)), ((), ())),
            preferred_element_type=jnp.float32)                          # [S, S]
        if causal:
            s = jnp.where(keep, s, -1e30)
        s = s - jnp.max(s, axis=-1, keepdims=True)
        p = jnp.exp(s)
        p = p * pl.reciprocal(jnp.sum(p, axis=-1, keepdims=True), approx=True)
        heads.append(jnp.dot(p.astype(jnp.bfloat16), v.astype(jnp.bfloat16),
                             preferred_element_type=jnp.float32))        # [S, hd]
    attn = jnp.concatenate(heads, axis=-1)                               # [S, D]
    x = x + jnp.dot(attn.astype(jnp.bfloat16), wout_ref[...],
                    preferred_element_type=jnp.float32) + bout_ref[...]

    # ---- MLP sub-block: x += W_pr @ QuickGELU(W_fc @ LN2(x)) ----
    h2 = _ln(x, ln2g_ref, ln2b_ref)
    m = jnp.dot(h2.astype(jnp.bfloat16), wfc_ref[...],
                preferred_element_type=jnp.float32) + bfc_ref[...]       # [S, 4D]
    m = m * jax.nn.sigmoid(1.702 * m)                                    # QuickGELU
    m = jnp.dot(m.astype(jnp.bfloat16), wpr_ref[...],
                preferred_element_type=jnp.float32) + bpr_ref[...]       # [S, D]
    o_ref[0] = x + m


def residual_attn_block(x, p, n_heads, causal):
    """x: [B, S, D] f32. One pallas_call per block, grid over batch (parallel)."""
    Bx, S, D = x.shape
    param_list = [p["ln1_g"], p["ln1_b"], p["w_in"], p["b_in"], p["w_out"], p["b_out"],
                  p["ln2_g"], p["ln2_b"], p["w_fc"], p["b_fc"], p["w_pr"], p["b_pr"]]
    x_spec = pl.BlockSpec((1, S, D), lambda b: (b, 0, 0))
    w_specs = [pl.BlockSpec(a.shape, lambda b: (0, 0)) for a in param_list]
    return pl.pallas_call(
        functools.partial(_block_kernel, n_heads=n_heads, causal=causal),
        grid=(Bx,),
        in_specs=[x_spec] + w_specs,
        out_specs=x_spec,
        out_shape=jax.ShapeDtypeStruct((Bx, S, D), jnp.float32),
        compiler_params=pltpu.CompilerParams(
            dimension_semantics=("parallel",),          # 2 TCs on v7x
            vmem_limit_bytes=32 * 1024 * 1024),         # safe on 64 MiB v7x VMEM
    )(x, *param_list)


# ----------------------------- small helper kernels -----------------------------

def _linear_kernel(x_ref, w_ref, b_ref, o_ref):
    o_ref[...] = jnp.dot(x_ref[...].astype(jnp.bfloat16), w_ref[...],
                         preferred_element_type=jnp.float32) + b_ref[...]


def linear(x, w_bf16, b, tm=256):
    """x:[M,K] f32 @ w:[K,N] bf16 + b:[1,N] f32, tiled/pipelined over M."""
    M, K = x.shape
    N = w_bf16.shape[1]
    tm = min(tm, M)
    return pl.pallas_call(
        _linear_kernel,
        grid=(pl.cdiv(M, tm),),
        in_specs=[pl.BlockSpec((tm, K), lambda i: (i, 0)),
                  pl.BlockSpec((K, N), lambda i: (0, 0)),
                  pl.BlockSpec((1, N), lambda i: (0, 0))],
        out_specs=pl.BlockSpec((tm, N), lambda i: (i, 0)),
        out_shape=jax.ShapeDtypeStruct((M, N), jnp.float32),
        compiler_params=pltpu.CompilerParams(dimension_semantics=("parallel",)),
    )(x, w_bf16, b)


def _layernorm_kernel(x_ref, g_ref, b_ref, o_ref):
    x = x_ref[...]
    mu = jnp.mean(x, axis=-1, keepdims=True)
    xc = x - mu
    var = jnp.mean(xc * xc, axis=-1, keepdims=True)
    o_ref[...] = xc * jax.lax.rsqrt(var + 1e-5) * g_ref[...] + b_ref[...]


def layernorm(x, g, b, tm=256):
    """Row-wise LayerNorm, tiled over rows. x:[M,D], g/b:[1,D]."""
    M, D = x.shape
    tm = min(tm, M)
    return pl.pallas_call(
        _layernorm_kernel,
        grid=(pl.cdiv(M, tm),),
        in_specs=[pl.BlockSpec((tm, D), lambda i: (i, 0)),
                  pl.BlockSpec((1, D), lambda i: (0, 0)),
                  pl.BlockSpec((1, D), lambda i: (0, 0))],
        out_specs=pl.BlockSpec((tm, D), lambda i: (i, 0)),
        out_shape=jax.ShapeDtypeStruct((M, D), jnp.float32),
        compiler_params=pltpu.CompilerParams(dimension_semantics=("parallel",)),
    )(x, g, b)


def _ln_proj_kernel(x_ref, g_ref, b_ref, w_ref, o_ref):
    x = x_ref[...]
    mu = jnp.mean(x, axis=-1, keepdims=True)
    xc = x - mu
    var = jnp.mean(xc * xc, axis=-1, keepdims=True)
    h = xc * jax.lax.rsqrt(var + 1e-5) * g_ref[...] + b_ref[...]
    o_ref[...] = jnp.dot(h.astype(jnp.bfloat16), w_ref[...],
                         preferred_element_type=jnp.float32)


def ln_project(x, g, b, w_bf16):
    """Fused ln_final + text_projection on the (already gathered) EOT rows."""
    M, D = x.shape
    N = w_bf16.shape[1]
    return pl.pallas_call(
        _ln_proj_kernel,
        out_shape=jax.ShapeDtypeStruct((M, N), jnp.float32),
    )(x, g, b, w_bf16)


# ------------------------------ parameters ---------------------------------

def _init_block(key, d, scale=0.02):
    ks = jax.random.split(key, 4)
    bf = jnp.bfloat16
    return dict(
        ln1_g=jnp.ones((1, d), jnp.float32), ln1_b=jnp.zeros((1, d), jnp.float32),
        w_in=(scale * jax.random.normal(ks[0], (d, 3 * d), jnp.float32)).astype(bf),
        b_in=jnp.zeros((1, 3 * d), jnp.float32),
        w_out=(scale * jax.random.normal(ks[1], (d, d), jnp.float32)).astype(bf),
        b_out=jnp.zeros((1, d), jnp.float32),
        ln2_g=jnp.ones((1, d), jnp.float32), ln2_b=jnp.zeros((1, d), jnp.float32),
        w_fc=(scale * jax.random.normal(ks[2], (d, 4 * d), jnp.float32)).astype(bf),
        b_fc=jnp.zeros((1, 4 * d), jnp.float32),
        w_pr=(scale * jax.random.normal(ks[3], (4 * d, d), jnp.float32)).astype(bf),
        b_pr=jnp.zeros((1, d), jnp.float32),
    )


def init_params(key):
    kv, kt, kc, kcls, kpv, ktok, kpt, kproj = jax.random.split(key, 8)
    s = 0.02

    # Patch-embedding conv (kernel=stride=PATCH, bias=False) with the CLIP
    # Normalize(mean, std) folded into the weight (1/std scaling) and an
    # equivalent bias (-sum W * mean/std): conv(norm(x)) == im2col(x) @ W' + b'.
    conv_w4 = s * jax.random.normal(kc, (D_V, 3, PATCH, PATCH), jnp.float32)
    w_scaled = conv_w4 / CLIP_STD[None, :, None, None]
    conv_b = -(w_scaled * CLIP_MEAN[None, :, None, None]).sum(axis=(1, 2, 3))
    conv_w = w_scaled.reshape(D_V, K_RAW).T                       # [K_RAW, D_V]
    conv_w = jnp.pad(conv_w, ((0, K_PAD - K_RAW), (0, 0)))        # lane-align K

    return dict(
        # vision tower
        conv_w=conv_w.astype(jnp.bfloat16),
        conv_b=conv_b.reshape(1, D_V),
        cls=s * jax.random.normal(kcls, (D_V,), jnp.float32),
        pos_v=s * jax.random.normal(kpv, (GRID * GRID + 1, D_V), jnp.float32),
        ln_pre_g=jnp.ones((1, D_V), jnp.float32), ln_pre_b=jnp.zeros((1, D_V), jnp.float32),
        ln_post_g=jnp.ones((1, D_V), jnp.float32), ln_post_b=jnp.zeros((1, D_V), jnp.float32),
        vis_blocks=[_init_block(k, D_V) for k in jax.random.split(kv, LAYERS)],
        # text tower
        tok_emb=s * jax.random.normal(ktok, (VOCAB, D_T), jnp.float32),
        pos_t=s * jax.random.normal(kpt, (CTX, D_T), jnp.float32),
        ln_final_g=jnp.ones((1, D_T), jnp.float32), ln_final_b=jnp.zeros((1, D_T), jnp.float32),
        txt_blocks=[_init_block(k, D_T) for k in jax.random.split(kt, LAYERS)],
        text_proj=(s * jax.random.normal(kproj, (D_T, PROJ), jnp.float32)).astype(jnp.bfloat16),
    )


# ------------------------------- encoders ----------------------------------

def encode_image(image, p):
    # image: NCHW [B, 3, IMG, IMG]
    # TODO(synk): clip_trans Resize / CenterCrop (bicubic interpolation) omitted;
    # the input is assumed to already be at the target resolution. Normalize is
    # folded into the conv weight/bias (exact linear-algebra identity).
    Bc = image.shape[0]

    # conv1 as im2col (JAX glue) + Pallas matmul; patch vector ordering (C, kh, kw)
    # matches the PyTorch conv weight layout. K is zero-padded to 128 lanes.
    x = image.reshape(Bc, 3, GRID, PATCH, GRID, PATCH)
    x = x.transpose(0, 2, 4, 1, 3, 5).reshape(Bc * GRID * GRID, K_RAW)
    x = jnp.pad(x, ((0, 0), (0, K_PAD - K_RAW)))
    patches = linear(x, p["conv_w"], p["conv_b"])                # [B*G*G, D_V]
    patches = patches.reshape(Bc, GRID * GRID, D_V)

    cls = jnp.broadcast_to(p["cls"][None, None, :], (Bc, 1, D_V))
    x = jnp.concatenate([cls, patches], axis=1)                  # [B, 1+G*G, D_V]
    x = x + p["pos_v"][None]
    S = x.shape[1]
    x = layernorm(x.reshape(Bc * S, D_V), p["ln_pre_g"], p["ln_pre_b"]).reshape(Bc, S, D_V)

    for blk in p["vis_blocks"]:                                  # no mask in vision
        x = residual_attn_block(x, blk, HEADS, causal=False)

    toks = x[:, 1:, :]                                           # drop CLS token
    toks = layernorm(toks.reshape(Bc * GRID * GRID, D_V), p["ln_post_g"], p["ln_post_b"])
    toks = toks.reshape(Bc, GRID * GRID, D_V)
    return toks.transpose(0, 2, 1).reshape(Bc, D_V, GRID, GRID)  # NCHW feature map


def encode_prompt(tokens, p):
    # tokens: [B, T, CTX] int32 (pre-tokenized ids; EOT token has the max id)
    # TODO(synk): BPE SimpleTokenizer is string processing, not a TPU kernel;
    # token ids are taken as input. Embedding gather / EOT select are JAX glue.
    Bt, Tt, L = tokens.shape
    tok = tokens.reshape(Bt * Tt, L)
    x = p["tok_emb"][tok]                                        # [B*T, L, D_T]
    x = x + p["pos_t"][None]

    for blk in p["txt_blocks"]:                                  # causal mask built in-kernel
        x = residual_attn_block(x, blk, HEADS, causal=True)

    eot = jnp.argmax(tok, axis=-1)                               # [B*T]
    x_eot = x[jnp.arange(Bt * Tt), eot]                          # [B*T, D_T]
    # ln_final is row-wise, so LN(x)[eot] == LN(x[eot]); fuse LN + projection.
    y = ln_project(x_eot, p["ln_final_g"], p["ln_final_b"], p["text_proj"])
    return y.reshape(Bt, Tt, PROJ)


def clip_encoder_forward(image, tokens, p):
    text_embs = encode_prompt(tokens, p)
    visual_featmap = encode_image(image, p)
    return visual_featmap, text_embs


# --------------------------------- main -------------------------------------

if __name__ == "__main__":
    key = jax.random.PRNGKey(0)
    kp, kimg, ktok = jax.random.split(key, 3)
    params = init_params(kp)

    image = jax.random.uniform(kimg, (B, 3, IMG, IMG), jnp.float32)

    # synthetic tokenized prompts: [SOT, w, w, w, EOT, 0, 0, 0]; EOT = VOCAB-1 (max id)
    mid = jax.random.randint(ktok, (B, T, 3), 2, VOCAB - 1).astype(jnp.int32)
    sot = jnp.full((B, T, 1), 1, jnp.int32)
    eot = jnp.full((B, T, 1), VOCAB - 1, jnp.int32)
    pad = jnp.zeros((B, T, CTX - 5), jnp.int32)
    tokens = jnp.concatenate([sot, mid, eot, pad], axis=-1)

    vis, txt = jax.jit(clip_encoder_forward)(image, tokens, params)
    jax.block_until_ready((vis, txt))

    assert vis.shape == (B, D_V, GRID, GRID), vis.shape
    assert txt.shape == (B, T, PROJ), txt.shape
    assert bool(jnp.isfinite(vis).all()) and bool(jnp.isfinite(txt).all())
    print("KERNEL_OK")
</pallas_src>

<mosaic_0001>
module attributes {stable_mosaic.version = 11 : i64} {
  func.func @_layernorm_kernel(%arg0: i32, %arg1: memref<34x32xf32, #tpu.memory_space<vmem>>, %arg2: memref<1x32xf32, #tpu.memory_space<vmem>>, %arg3: memref<1x32xf32, #tpu.memory_space<vmem>>, %arg4: memref<34x32xf32, #tpu.memory_space<vmem>>) attributes {dimension_semantics = [#tpu.dimension_semantics<parallel>], iteration_bounds = array<i64: 1>, scalar_prefetch = 0 : i64, scratch_operands = 0 : i64, tpu.core_type = #tpu.core_type<tc>, window_params = [{transform_indices = @transform_0, window_bounds = array<i64: 34, 32>}, {pipeline_mode = #tpu.pipeline_mode<synchronous>, transform_indices = @transform_1, window_bounds = array<i64: 1, 32>}, {pipeline_mode = #tpu.pipeline_mode<synchronous>, transform_indices = @transform_2, window_bounds = array<i64: 1, 32>}, {transform_indices = @transform_3, window_bounds = array<i64: 34, 32>}]} {
    %c0 = arith.constant 0 : index
    %c0_0 = arith.constant 0 : index
    %0 = vector.load %arg1[%c0, %c0_0] : memref<34x32xf32, #tpu.memory_space<vmem>>, vector<34x32xf32>
    %cst = arith.constant dense<0.000000e+00> : vector<34xf32>
    %1 = vector.multi_reduction <add>, %0, %cst [1] : vector<34x32xf32> to vector<34xf32>
    %2 = vector.shape_cast %1 : vector<34xf32> to vector<34x1xf32>
    %cst_1 = arith.constant 3.200000e+01 : f32
    %3 = vector.broadcast %cst_1 : f32 to vector<34x1xf32>
    %4 = arith.divf %2, %3 : vector<34x1xf32>
    %5 = vector.broadcast %4 : vector<34x1xf32> to vector<34x32xf32>
    %6 = arith.subf %0, %5 : vector<34x32xf32>
    %7 = arith.mulf %6, %6 : vector<34x32xf32>
    %cst_2 = arith.constant dense<0.000000e+00> : vector<34xf32>
    %8 = vector.multi_reduction <add>, %7, %cst_2 [1] : vector<34x32xf32> to vector<34xf32>
    %9 = vector.shape_cast %8 : vector<34xf32> to vector<34x1xf32>
    %cst_3 = arith.constant 3.200000e+01 : f32
    %10 = vector.broadcast %cst_3 : f32 to vector<34x1xf32>
    %11 = arith.divf %9, %10 : vector<34x1xf32>
    %cst_4 = arith.constant 9.99999974E-6 : f32
    %12 = vector.broadcast %cst_4 : f32 to vector<34x1xf32>
    %13 = arith.addf %11, %12 : vector<34x1xf32>
    %14 = math.rsqrt %13 : vector<34x1xf32>
    %15 = vector.broadcast %14 : vector<34x1xf32> to vector<34x32xf32>
    %16 = arith.mulf %6, %15 : vector<34x32xf32>
    %c0_5 = arith.constant 0 : index
    %c0_6 = arith.constant 0 : index
    %17 = vector.load %arg2[%c0_5, %c0_6] : memref<1x32xf32, #tpu.memory_space<vmem>>, vector<1x32xf32>
    %18 = vector.broadcast %17 : vector<1x32xf32> to vector<34x32xf32>
    %19 = arith.mulf %16, %18 : vector<34x32xf32>
    %c0_7 = arith.constant 0 : index
    %c0_8 = arith.constant 0 : index
    %20 = vector.load %arg3[%c0_7, %c0_8] : memref<1x32xf32, #tpu.memory_space<vmem>>, vector<1x32xf32>
    %21 = vector.broadcast %20 : vector<1x32xf32> to vector<34x32xf32>
    %22 = arith.addf %19, %21 : vector<34x32xf32>
    %c0_9 = arith.constant 0 : index
    %c0_10 = arith.constant 0 : index
    %23 = vector.load %arg4[%c0_9, %c0_10] : memref<34x32xf32, #tpu.memory_space<vmem>>, vector<34x32xf32>
    tpu.vector_store %arg4[%c0_9, %c0_10], %22 {strides = array<i32>} : memref<34x32xf32, #tpu.memory_space<vmem>>, vector<34x32xf32>,
    return
  }
  func.func @transform_0(%arg0: i32) -> (i32, i32) {
    %c0_i32 = arith.constant 0 : i32
    %c0_i32_0 = arith.constant 0 : i32
    return %arg0, %c0_i32 : i32, i32
  }
  func.func @transform_1(%arg0: i32) -> (i32, i32) {
    %c0_i32 = arith.constant 0 : i32
    %c0_i32_0 = arith.constant 0 : i32
    %c0_i32_1 = arith.constant 0 : i32
    return %c0_i32, %c0_i32_0 : i32, i32
  }
  func.func @transform_2(%arg0: i32) -> (i32, i32) {
    %c0_i32 = arith.constant 0 : i32
    %c0_i32_0 = arith.constant 0 : i32
    %c0_i32_1 = arith.constant 0 : i32
    return %c0_i32, %c0_i32_0 : i32, i32
  }
  func.func @transform_3(%arg0: i32) -> (i32, i32) {
    %c0_i32 = arith.constant 0 : i32
    %c0_i32_0 = arith.constant 0 : i32
    return %arg0, %c0_i32 : i32, i32
  }
}

module attributes {stable_mosaic.version = 11 : i64} {
  func.func @_linear_kernel(%arg0: i32, %arg1: memref<32x128xf32, #tpu.memory_space<vmem>>, %arg2: memref<128x32xbf16, #tpu.memory_space<vmem>>, %arg3: memref<1x32xf32, #tpu.memory_space<vmem>>, %arg4: memref<32x32xf32, #tpu.memory_space<vmem>>) attributes {dimension_semantics = [#tpu.dimension_semantics<parallel>], iteration_bounds = array<i64: 1>, scalar_prefetch = 0 : i64, scratch_operands = 0 : i64, tpu.core_type = #tpu.core_type<tc>, window_params = [{transform_indices = @transform_0, window_bounds = array<i64: 32, 128>}, {pipeline_mode = #tpu.pipeline_mode<synchronous>, transform_indices = @transform_1, window_bounds = array<i64: 128, 32>}, {pipeline_mode = #tpu.pipeline_mode<synchronous>, transform_indices = @transform_2, window_bounds = array<i64: 1, 32>}, {transform_indices = @transform_3, window_bounds = array<i64: 32, 32>}]} {
    %c0 = arith.constant 0 : index
    %c0_0 = arith.constant 0 : index
    %0 = vector.load %arg1[%c0, %c0_0] : memref<32x128xf32, #tpu.memory_space<vmem>>, vector<32x128xf32>
    %1 = arith.truncf %0 : vector<32x128xf32> to vector<32x128xbf16>
    %c0_1 = arith.constant 0 : index
    %c0_2 = arith.constant 0 : index
    %2 = vector.load %arg2[%c0_1, %c0_2] : memref<128x32xbf16, #tpu.memory_space<vmem>>, vector<128x32xbf16>
    %cst = arith.constant dense<0.000000e+00> : vector<32x32xf32>
    %3 = tpu.matmul %1, %2, %cst {dimension_numbers = #tpu.dot_dimension_numbers<[1], [0], [0], [1], [0, 0, 1, 1], [], []>} : vector<32x128xbf16>, vector<128x32xbf16>, vector<32x32xf32> -> vector<32x32xf32>
    %c0_3 = arith.constant 0 : index
    %c0_4 = arith.constant 0 : index
    %4 = vector.load %arg3[%c0_3, %c0_4] : memref<1x32xf32, #tpu.memory_space<vmem>>, vector<1x32xf32>
    %5 = vector.broadcast %4 : vector<1x32xf32> to vector<32x32xf32>
    %6 = arith.addf %3, %5 : vector<32x32xf32>
    %c0_5 = arith.constant 0 : index
    %c0_6 = arith.constant 0 : index
    %7 = vector.load %arg4[%c0_5, %c0_6] : memref<32x32xf32, #tpu.memory_space<vmem>>, vector<32x32xf32>
    tpu.vector_store %arg4[%c0_5, %c0_6], %6 {strides = array<i32>} : memref<32x32xf32, #tpu.memory_space<vmem>>, vector<32x32xf32>,
    return
  }
  func.func @transform_0(%arg0: i32) -> (i32, i32) {
    %c0_i32 = arith.constant 0 : i32
    %c0_i32_0 = arith.constant 0 : i32
    return %arg0, %c0_i32 : i32, i32
  }
  func.func @transform_1(%arg0: i32) -> (i32, i32) {
    %c0_i32 = arith.constant 0 : i32
    %c0_i32_0 = arith.constant 0 : i32
    %c0_i32_1 = arith.constant 0 : i32
    return %c0_i32, %c0_i32_0 : i32, i32
  }
  func.func @transform_2(%arg0: i32) -> (i32, i32) {
    %c0_i32 = arith.constant 0 : i32
    %c0_i32_0 = arith.constant 0 : i32
    %c0_i32_1 = arith.constant 0 : i32
    return %c0_i32, %c0_i32_0 : i32, i32
  }
  func.func @transform_3(%arg0: i32) -> (i32, i32) {
    %c0_i32 = arith.constant 0 : i32
    %c0_i32_0 = arith.constant 0 : i32
    return %arg0, %c0_i32 : i32, i32
  }
}

module attributes {stable_mosaic.version = 11 : i64} {
  func.func @_layernorm_kernel(%arg0: i32, %arg1: memref<32x32xf32, #tpu.memory_space<vmem>>, %arg2: memref<1x32xf32, #tpu.memory_space<vmem>>, %arg3: memref<1x32xf32, #tpu.memory_space<vmem>>, %arg4: memref<32x32xf32, #tpu.memory_space<vmem>>) attributes {dimension_semantics = [#tpu.dimension_semantics<parallel>], iteration_bounds = array<i64: 1>, scalar_prefetch = 0 : i64, scratch_operands = 0 : i64, tpu.core_type = #tpu.core_type<tc>, window_params = [{transform_indices = @transform_0, window_bounds = array<i64: 32, 32>}, {pipeline_mode = #tpu.pipeline_mode<synchronous>, transform_indices = @transform_1, window_bounds = array<i64: 1, 32>}, {pipeline_mode = #tpu.pipeline_mode<synchronous>, transform_indices = @transform_2, window_bounds = array<i64: 1, 32>}, {transform_indices = @transform_3, window_bounds = array<i64: 32, 32>}]} {
    %c0 = arith.constant 0 : index
    %c0_0 = arith.constant 0 : index
    %0 = vector.load %arg1[%c0, %c0_0] : memref<32x32xf32, #tpu.memory_space<vmem>>, vector<32x32xf32>
    %cst = arith.constant dense<0.000000e+00> : vector<32xf32>
    %1 = vector.multi_reduction <add>, %0, %cst [1] : vector<32x32xf32> to vector<32xf32>
    %2 = vector.shape_cast %1 : vector<32xf32> to vector<32x1xf32>
    %cst_1 = arith.constant 3.200000e+01 : f32
    %3 = vector.broadcast %cst_1 : f32 to vector<32x1xf32>
    %4 = arith.divf %2, %3 : vector<32x1xf32>
    %5 = vector.broadcast %4 : vector<32x1xf32> to vector<32x32xf32>
    %6 = arith.subf %0, %5 : vector<32x32xf32>
    %7 = arith.mulf %6, %6 : vector<32x32xf32>
    %cst_2 = arith.constant dense<0.000000e+00> : vector<32xf32>
    %8 = vector.multi_reduction <add>, %7, %cst_2 [1] : vector<32x32xf32> to vector<32xf32>
    %9 = vector.shape_cast %8 : vector<32xf32> to vector<32x1xf32>
    %cst_3 = arith.constant 3.200000e+01 : f32
    %10 = vector.broadcast %cst_3 : f32 to vector<32x1xf32>
    %11 = arith.divf %9, %10 : vector<32x1xf32>
    %cst_4 = arith.constant 9.99999974E-6 : f32
    %12 = vector.broadcast %cst_4 : f32 to vector<32x1xf32>
    %13 = arith.addf %11, %12 : vector<32x1xf32>
    %14 = math.rsqrt %13 : vector<32x1xf32>
    %15 = vector.broadcast %14 : vector<32x1xf32> to vector<32x32xf32>
    %16 = arith.mulf %6, %15 : vector<32x32xf32>
    %c0_5 = arith.constant 0 : index
    %c0_6 = arith.constant 0 : index
    %17 = vector.load %arg2[%c0_5, %c0_6] : memref<1x32xf32, #tpu.memory_space<vmem>>, vector<1x32xf32>
    %18 = vector.broadcast %17 : vector<1x32xf32> to vector<32x32xf32>
    %19 = arith.mulf %16, %18 : vector<32x32xf32>
    %c0_7 = arith.constant 0 : index
    %c0_8 = arith.constant 0 : index
    %20 = vector.load %arg3[%c0_7, %c0_8] : memref<1x32xf32, #tpu.memory_space<vmem>>, vector<1x32xf32>
    %21 = vector.broadcast %20 : vector<1x32xf32> to vector<32x32xf32>
    %22 = arith.addf %19, %21 : vector<32x32xf32>
    %c0_9 = arith.constant 0 : index
    %c0_10 = arith.constant 0 : index
    %23 = vector.load %arg4[%c0_9, %c0_10] : memref<32x32xf32, #tpu.memory_space<vmem>>, vector<32x32xf32>
    tpu.vector_store %arg4[%c0_9, %c0_10], %22 {strides = array<i32>} : memref<32x32xf32, #tpu.memory_space<vmem>>, vector<32x32xf32>,
    return
  }
  func.func @transform_0(%arg0: i32) -> (i32, i32) {
    %c0_i32 = arith.constant 0 : i32
    %c0_i32_0 = arith.constant 0 : i32
    return %arg0, %c0_i32 : i32, i32
  }
  func.func @transform_1(%arg0: i32) -> (i32, i32) {
    %c0_i32 = arith.constant 0 : i32
    %c0_i32_0 = arith.constant 0 : i32
    %c0_i32_1 = arith.constant 0 : i32
    return %c0_i32, %c0_i32_0 : i32, i32
  }
  func.func @transform_2(%arg0: i32) -> (i32, i32) {
    %c0_i32 = arith.constant 0 : i32
    %c0_i32_0 = arith.constant 0 : i32
    %c0_i32_1 = arith.constant 0 : i32
    return %c0_i32, %c0_i32_0 : i32, i32
  }
  func.func @transform_3(%arg0: i32) -> (i32, i32) {
    %c0_i32 = arith.constant 0 : i32
    %c0_i32_0 = arith.constant 0 : i32
    return %arg0, %c0_i32 : i32, i32
  }
}

module attributes {stable_mosaic.version = 11 : i64} {
  func.func @_block_kernel(%arg0: i32, %arg1: memref<1x17x32xf32, #tpu.memory_space<vmem>>, %arg2: memref<1x32xf32, #tpu.memory_space<vmem>>, %arg3: memref<1x32xf32, #tpu.memory_space<vmem>>, %arg4: memref<32x96xbf16, #tpu.memory_space<vmem>>, %arg5: memref<1x96xf32, #tpu.memory_space<vmem>>, %arg6: memref<32x32xbf16, #tpu.memory_space<vmem>>, %arg7: memref<1x32xf32, #tpu.memory_space<vmem>>, %arg8: memref<1x32xf32, #tpu.memory_space<vmem>>, %arg9: memref<1x32xf32, #tpu.memory_space<vmem>>, %arg10: memref<32x128xbf16, #tpu.memory_space<vmem>>, %arg11: memref<1x128xf32, #tpu.memory_space<vmem>>, %arg12: memref<128x32xbf16, #tpu.memory_space<vmem>>, %arg13: memref<1x32xf32, #tpu.memory_space<vmem>>, %arg14: memref<1x17x32xf32, #tpu.memory_space<vmem>>) attributes {dimension_semantics = [#tpu.dimension_semantics<parallel>], iteration_bounds = array<i64: 2>, scalar_prefetch = 0 : i64, scratch_operands = 0 : i64, tpu.core_type = #tpu.core_type<tc>, window_params = [{transform_indices = @transform_0, window_bounds = array<i64: 1, 17, 32>}, {pipeline_mode = #tpu.pipeline_mode<synchronous>, transform_indices = @transform_1, window_bounds = array<i64: 1, 32>}, {pipeline_mode = #tpu.pipeline_mode<synchronous>, transform_indices = @transform_2, window_bounds = array<i64: 1, 32>}, {pipeline_mode = #tpu.pipeline_mode<synchronous>, transform_indices = @transform_3, window_bounds = array<i64: 32, 96>}, {pipeline_mode = #tpu.pipeline_mode<synchronous>, transform_indices = @transform_4, window_bounds = array<i64: 1, 96>}, {pipeline_mode = #tpu.pipeline_mode<synchronous>, transform_indices = @transform_5, window_bounds = array<i64: 32, 32>}, {pipeline_mode = #tpu.pipeline_mode<synchronous>, transform_indices = @transform_6, window_bounds = array<i64: 1, 32>}, {pipeline_mode = #tpu.pipeline_mode<synchronous>, transform_indices = @transform_7, window_bounds = array<i64: 1, 32>}, {pipeline_mode = #tpu.pipeline_mode<synchronous>, transform_indices = @transform_8, window_bounds = array<i64: 1, 32>}, {pipeline_mode = #tpu.pipeline_mode<synchronous>, transform_indices = @transform_9, window_bounds = array<i64: 32, 128>}, {pipeline_mode = #tpu.pipeline_mode<synchronous>, transform_indices = @transform_10, window_bounds = array<i64: 1, 128>}, {pipeline_mode = #tpu.pipeline_mode<synchronous>, transform_indices = @transform_11, window_bounds = array<i64: 128, 32>}, {pipeline_mode = #tpu.pipeline_mode<synchronous>, transform_indices = @transform_12, window_bounds = array<i64: 1, 32>}, {transform_indices = @transform_13, window_bounds = array<i64: 1, 17, 32>}]} {
    %c0 = arith.constant 0 : index
    %c0_0 = arith.constant 0 : index
    %c0_1 = arith.constant 0 : index
    %0 = vector.load %arg1[%c0, %c0_0, %c0_1] : memref<1x17x32xf32, #tpu.memory_space<vmem>>, vector<1x17x32xf32>
    %1 = vector.shape_cast %0 : vector<1x17x32xf32> to vector<17x32xf32>
    %cst = arith.constant dense<0.000000e+00> : vector<17xf32>
    %2 = vector.multi_reduction <add>, %1, %cst [1] : vector<17x32xf32> to vector<17xf32>
    %3 = vector.shape_cast %2 : vector<17xf32> to vector<17x1xf32>
    %cst_2 = arith.constant 3.200000e+01 : f32
    %4 = vector.broadcast %cst_2 : f32 to vector<17x1xf32>
    %5 = arith.divf %3, %4 : vector<17x1xf32>
    %6 = vector.broadcast %5 : vector<17x1xf32> to vector<17x32xf32>
    %7 = arith.subf %1, %6 : vector<17x32xf32>
    %8 = arith.mulf %7, %7 : vector<17x32xf32>
    %cst_3 = arith.constant dense<0.000000e+00> : vector<17xf32>
    %9 = vector.multi_reduction <add>, %8, %cst_3 [1] : vector<17x32xf32> to vector<17xf32>
    %10 = vector.shape_cast %9 : vector<17xf32> to vector<17x1xf32>
    %cst_4 = arith.constant 3.200000e+01 : f32
    %11 = vector.broadcast %cst_4 : f32 to vector<17x1xf32>
    %12 = arith.divf %10, %11 : vector<17x1xf32>
    %cst_5 = arith.constant 9.99999974E-6 : f32
    %13 = vector.broadcast %cst_5 : f32 to vector<17x1xf32>
    %14 = arith.addf %12, %13 : vector<17x1xf32>
    %15 = math.rsqrt %14 : vector<17x1xf32>
    %16 = vector.broadcast %15 : vector<17x1xf32> to vector<17x32xf32>
    %17 = arith.mulf %7, %16 : vector<17x32xf32>
    %c0_6 = arith.constant 0 : index
    %c0_7 = arith.constant 0 : index
    %18 = vector.load %arg2[%c0_6, %c0_7] : memref<1x32xf32, #tpu.memory_space<vmem>>, vector<1x32xf32>
    %19 = vector.broadcast %18 : vector<1x32xf32> to vector<17x32xf32>
    %20 = arith.mulf %17, %19 : vector<17x32xf32>
    %c0_8 = arith.constant 0 : index
    %c0_9 = arith.constant 0 : index
    %21 = vector.load %arg3[%c0_8, %c0_9] : memref<1x32xf32, #tpu.memory_space<vmem>>, vector<1x32xf32>
    %22 = vector.broadcast %21 : vector<1x32xf32> to vector<17x32xf32>
    %23 = arith.addf %20, %22 : vector<17x32xf32>
    %24 = arith.truncf %23 : vector<17x32xf32> to vector<17x32xbf16>
    %c0_10 = arith.constant 0 : index
    %c0_11 = arith.constant 0 : index
    %25 = vector.load %arg4[%c0_10, %c0_11] : memref<32x96xbf16, #tpu.memory_space<vmem>>, vector<32x96xbf16>
    %cst_12 = arith.constant dense<0.000000e+00> : vector<17x96xf32>
    %26 = tpu.matmul %24, %25, %cst_12 {dimension_numbers = #tpu.dot_dimension_numbers<[1], [0], [0], [1], [0, 0, 1, 1], [], []>} : vector<17x32xbf16>, vector<32x96xbf16>, vector<17x96xf32> -> vector<17x96xf32>
    %c0_13 = arith.constant 0 : index
    %c0_14 = arith.constant 0 : index
    %27 = vector.load %arg5[%c0_13, %c0_14] : memref<1x96xf32, #tpu.memory_space<vmem>>, vector<1x96xf32>
    %28 = vector.broadcast %27 : vector<1x96xf32> to vector<17x96xf32>
    %29 = arith.addf %26, %28 : vector<17x96xf32>
    %30 = vector.extract_strided_slice %29 {offsets = [0, 0], sizes = [17, 8], strides = [1, 1]} : vector<17x96xf32> to vector<17x8xf32>
    %cst_15 = arith.constant 0.353553385 : f32
    %31 = vector.broadcast %cst_15 : f32 to vector<17x8xf32>
    %32 = arith.mulf %30, %31 : vector<17x8xf32>
    %33 = vector.extract_strided_slice %29 {offsets = [0, 32], sizes = [17, 8], strides = [1, 1]} : vector<17x96xf32> to vector<17x8xf32>
    %34 = vector.extract_strided_slice %29 {offsets = [0, 64], sizes = [17, 8], strides = [1, 1]} : vector<17x96xf32> to vector<17x8xf32>
    %35 = arith.truncf %32 : vector<17x8xf32> to vector<17x8xbf16>
    %36 = arith.truncf %33 : vector<17x8xf32> to vector<17x8xbf16>
    %cst_16 = arith.constant dense<0.000000e+00> : vector<17x17xf32>
    %37 = tpu.matmul %35, %36, %cst_16 {dimension_numbers = #tpu.dot_dimension_numbers<[1], [1], [0], [0], [0, 0, 1, 0], [], []>} : vector<17x8xbf16>, vector<17x8xbf16>, vector<17x17xf32> -> vector<17x17xf32>
    %cst_17 = arith.constant dense<0xFF800000> : vector<17xf32>
    %38 = vector.multi_reduction <maximumf>, %37, %cst_17 [1] : vector<17x17xf32> to vector<17xf32>
    %39 = vector.shape_cast %38 : vector<17xf32> to vector<17x1xf32>
    %40 = vector.broadcast %39 : vector<17x1xf32> to vector<17x17xf32>
    %41 = arith.subf %37, %40 : vector<17x17xf32>
    %42 = math.exp %41 : vector<17x17xf32>
    %cst_18 = arith.constant dense<0.000000e+00> : vector<17xf32>
    %43 = vector.multi_reduction <add>, %42, %cst_18 [1] : vector<17x17xf32> to vector<17xf32>
    %44 = vector.shape_cast %43 : vector<17xf32> to vector<17x1xf32>
    %45 = tpu.reciprocal %44 {approx = true} : vector<17x1xf32> -> vector<17x1xf32>
    %46 = vector.broadcast %45 : vector<17x1xf32> to vector<17x17xf32>
    %47 = arith.mulf %42, %46 : vector<17x17xf32>
    %48 = arith.truncf %47 : vector<17x17xf32> to vector<17x17xbf16>
    %49 = arith.truncf %34 : vector<17x8xf32> to vector<17x8xbf16>
    %cst_19 = arith.constant dense<0.000000e+00> : vector<17x8xf32>
    %50 = tpu.matmul %48, %49, %cst_19 {dimension_numbers = #tpu.dot_dimension_numbers<[1], [0], [0], [1], [0, 0, 1, 1], [], []>} : vector<17x17xbf16>, vector<17x8xbf16>, vector<17x8xf32> -> vector<17x8xf32>
    %51 = vector.extract_strided_slice %29 {offsets = [0, 8], sizes = [17, 8], strides = [1, 1]} : vector<17x96xf32> to vector<17x8xf32>
    %cst_20 = arith.constant 0.353553385 : f32
    %52 = vector.broadcast %cst_20 : f32 to vector<17x8xf32>
    %53 = arith.mulf %51, %52 : vector<17x8xf32>
    %54 = vector.extract_strided_slice %29 {offsets = [0, 40], sizes = [17, 8], strides = [1, 1]} : vector<17x96xf32> to vector<17x8xf32>
    %55 = vector.extract_strided_slice %29 {offsets = [0, 72], sizes = [17, 8], strides = [1, 1]} : vector<17x96xf32> to vector<17x8xf32>
    %56 = arith.truncf %53 : vector<17x8xf32> to vector<17x8xbf16>
    %57 = arith.truncf %54 : vector<17x8xf32> to vector<17x8xbf16>
    %cst_21 = arith.constant dense<0.000000e+00> : vector<17x17xf32>
    %58 = tpu.matmul %56, %57, %cst_21 {dimension_numbers = #tpu.dot_dimension_numbers<[1], [1], [0], [0], [0, 0, 1, 0], [], []>} : vector<17x8xbf16>, vector<17x8xbf16>, vector<17x17xf32> -> vector<17x17xf32>
    %cst_22 = arith.constant dense<0xFF800000> : vector<17xf32>
    %59 = vector.multi_reduction <maximumf>, %58, %cst_22 [1] : vector<17x17xf32> to vector<17xf32>
    %60 = vector.shape_cast %59 : vector<17xf32> to vector<17x1xf32>
    %61 = vector.broadcast %60 : vector<17x1xf32> to vector<17x17xf32>
    %62 = arith.subf %58, %61 : vector<17x17xf32>
    %63 = math.exp %62 : vector<17x17xf32>
    %cst_23 = arith.constant dense<0.000000e+00> : vector<17xf32>
    %64 = vector.multi_reduction <add>, %63, %cst_23 [1] : vector<17x17xf32> to vector<17xf32>
    %65 = vector.shape_cast %64 : vector<17xf32> to vector<17x1xf32>
    %66 = tpu.reciprocal %65 {approx = true} : vector<17x1xf32> -> vector<17x1xf32>
    %67 = vector.broadcast %66 : vector<17x1xf32> to vector<17x17xf32>
    %68 = arith.mulf %63, %67 : vector<17x17xf32>
    %69 = arith.truncf %68 : vector<17x17xf32> to vector<17x17xbf16>
    %70 = arith.truncf %55 : vector<17x8xf32> to vector<17x8xbf16>
    %cst_24 = arith.constant dense<0.000000e+00> : vector<17x8xf32>
    %71 = tpu.matmul %69, %70, %cst_24 {dimension_numbers = #tpu.dot_dimension_numbers<[1], [0], [0], [1], [0, 0, 1, 1], [], []>} : vector<17x17xbf16>, vector<17x8xbf16>, vector<17x8xf32> -> vector<17x8xf32>
    %72 = vector.extract_strided_slice %29 {offsets = [0, 16], sizes = [17, 8], strides = [1, 1]} : vector<17x96xf32> to vector<17x8xf32>
    %cst_25 = arith.constant 0.353553385 : f32
    %73 = vector.broadcast %cst_25 : f32 to vector<17x8xf32>
    %74 = arith.mulf %72, %73 : vector<17x8xf32>
    %75 = vector.extract_strided_slice %29 {offsets = [0, 48], sizes = [17, 8], strides = [1, 1]} : vector<17x96xf32> to vector<17x8xf32>
    %76 = vector.extract_strided_slice %29 {offsets = [0, 80], sizes = [17, 8], strides = [1, 1]} : vector<17x96xf32> to vector<17x8xf32>
    %77 = arith.truncf %74 : vector<17x8xf32> to vector<17x8xbf16>
    %78 = arith.truncf %75 : vector<17x8xf32> to vector<17x8xbf16>
    %cst_26 = arith.constant dense<0.000000e+00> : vector<17x17xf32>
    %79 = tpu.matmul %77, %78, %cst_26 {dimension_numbers = #tpu.dot_dimension_numbers<[1], [1], [0], [0], [0, 0, 1, 0], [], []>} : vector<17x8xbf16>, vector<17x8xbf16>, vector<17x17xf32> -> vector<17x17xf32>
    %cst_27 = arith.constant dense<0xFF800000> : vector<17xf32>
    %80 = vector.multi_reduction <maximumf>, %79, %cst_27 [1] : vector<17x17xf32> to vector<17xf32>
    %81 = vector.shape_cast %80 : vector<17xf32> to vector<17x1xf32>
    %82 = vector.broadcast %81 : vector<17x1xf32> to vector<17x17xf32>
    %83 = arith.subf %79, %82 : vector<17x17xf32>
    %84 = math.exp %83 : vector<17x17xf32>
    %cst_28 = arith.constant dense<0.000000e+00> : vector<17xf32>
    %85 = vector.multi_reduction <add>, %84, %cst_28 [1] : vector<17x17xf32> to vector<17xf32>
    %86 = vector.shape_cast %85 : vector<17xf32> to vector<17x1xf32>
    %87 = tpu.reciprocal %86 {approx = true} : vector<17x1xf32> -> vector<17x1xf32>
    %88 = vector.broadcast %87 : vector<17x1xf32> to vector<17x17xf32>
    %89 = arith.mulf %84, %88 : vector<17x17xf32>
    %90 = arith.truncf %89 : vector<17x17xf32> to vector<17x17xbf16>
    %91 = arith.truncf %76 : vector<17x8xf32> to vector<17x8xbf16>
    %cst_29 = arith.constant dense<0.000000e+00> : vector<17x8xf32>
    %92 = tpu.matmul %90, %91, %cst_29 {dimension_numbers = #tpu.dot_dimension_numbers<[1], [0], [0], [1], [0, 0, 1, 1], [], []>} : vector<17x17xbf16>, vector<17x8xbf16>, vector<17x8xf32> -> vector<17x8xf32>
    %93 = vector.extract_strided_slice %29 {offsets = [0, 24], sizes = [17, 8], strides = [1, 1]} : vector<17x96xf32> to vector<17x8xf32>
    %cst_30 = arith.constant 0.353553385 : f32
    %94 = vector.broadcast %cst_30 : f32 to vector<17x8xf32>
    %95 = arith.mulf %93, %94 : vector<17x8xf32>
    %96 = vector.extract_strided_slice %29 {offsets = [0, 56], sizes = [17, 8], strides = [1, 1]} : vector<17x96xf32> to vector<17x8xf32>
    %97 = vector.extract_strided_slice %29 {offsets = [0, 88], sizes = [17, 8], strides = [1, 1]} : vector<17x96xf32> to vector<17x8xf32>
    %98 = arith.truncf %95 : vector<17x8xf32> to vector<17x8xbf16>
    %99 = arith.truncf %96 : vector<17x8xf32> to vector<17x8xbf16>
    %cst_31 = arith.constant dense<0.000000e+00> : vector<17x17xf32>
    %100 = tpu.matmul %98, %99, %cst_31 {dimension_numbers = #tpu.dot_dimension_numbers<[1], [1], [0], [0], [0, 0, 1, 0], [], []>} : vector<17x8xbf16>, vector<17x8xbf16>, vector<17x17xf32> -> vector<17x17xf32>
    %cst_32 = arith.constant dense<0xFF800000> : vector<17xf32>
    %101 = vector.multi_reduction <maximumf>, %100, %cst_32 [1] : vector<17x17xf32> to vector<17xf32>
    %102 = vector.shape_cast %101 : vector<17xf32> to vector<17x1xf32>
    %103 = vector.broadcast %102 : vector<17x1xf32> to vector<17x17xf32>
    %104 = arith.subf %100, %103 : vector<17x17xf32>
    %105 = math.exp %104 : vector<17x17xf32>
    %cst_33 = arith.constant dense<0.000000e+00> : vector<17xf32>
    %106 = vector.multi_reduction <add>, %105, %cst_33 [1] : vector<17x17xf32> to vector<17xf32>
    %107 = vector.shape_cast %106 : vector<17xf32> to vector<17x1xf32>
    %108 = tpu.reciprocal %107 {approx = true} : vector<17x1xf32> -> vector<17x1xf32>
    %109 = vector.broadcast %108 : vector<17x1xf32> to vector<17x17xf32>
    %110 = arith.mulf %105, %109 : vector<17x17xf32>
    %111 = arith.truncf %110 : vector<17x17xf32> to vector<17x17xbf16>
    %112 = arith.truncf %97 : vector<17x8xf32> to vector<17x8xbf16>
    %cst_34 = arith.constant dense<0.000000e+00> : vector<17x8xf32>
    %113 = tpu.matmul %111, %112, %cst_34 {dimension_numbers = #tpu.dot_dimension_numbers<[1], [0], [0], [1], [0, 0, 1, 1], [], []>} : vector<17x17xbf16>, vector<17x8xbf16>, vector<17x8xf32> -> vector<17x8xf32>
    %114 = tpu.concatenate %50, %71, %92, %113 in 1 : vector<17x8xf32>, vector<17x8xf32>, vector<17x8xf32>, vector<17x8xf32> -> vector<17x32xf32>
    %115 = arith.truncf %114 : vector<17x32xf32> to vector<17x32xbf16>
    %c0_35 = arith.constant 0 : index
    %c0_36 = arith.constant 0 : index
    %116 = vector.load %arg6[%c0_35, %c0_36] : memref<32x32xbf16, #tpu.memory_space<vmem>>, vector<32x32xbf16>
    %cst_37 = arith.constant dense<0.000000e+00> : vector<17x32xf32>
    %117 = tpu.matmul %115, %116, %cst_37 {dimension_numbers = #tpu.dot_dimension_numbers<[1], [0], [0], [1], [0, 0, 1, 1], [], []>} : vector<17x32xbf16>, vector<32x32xbf16>, vector<17x32xf32> -> vector<17x32xf32>
    %118 = arith.addf %1, %117 : vector<17x32xf32>
    %c0_38 = arith.constant 0 : index
    %c0_39 = arith.constant 0 : index
    %119 = vector.load %arg7[%c0_38, %c0_39] : memref<1x32xf32, #tpu.memory_space<vmem>>, vector<1x32xf32>
    %120 = vector.broadcast %119 : vector<1x32xf32> to vector<17x32xf32>
    %121 = arith.addf %118, %120 : vector<17x32xf32>
    %cst_40 = arith.constant dense<0.000000e+00> : vector<17xf32>
    %122 = vector.multi_reduction <add>, %121, %cst_40 [1] : vector<17x32xf32> to vector<17xf32>
    %123 = vector.shape_cast %122 : vector<17xf32> to vector<17x1xf32>
    %cst_41 = arith.constant 3.200000e+01 : f32
    %124 = vector.broadcast %cst_41 : f32 to vector<17x1xf32>
    %125 = arith.divf %123, %124 : vector<17x1xf32>
    %126 = vector.broadcast %125 : vector<17x1xf32> to vector<17x32xf32>
    %127 = arith.subf %121, %126 : vector<17x32xf32>
    %128 = arith.mulf %127, %127 : vector<17x32xf32>
    %cst_42 = arith.constant dense<0.000000e+00> : vector<17xf32>
    %129 = vector.multi_reduction <add>, %128, %cst_42 [1] : vector<17x32xf32> to vector<17xf32>
    %130 = vector.shape_cast %129 : vector<17xf32> to vector<17x1xf32>
    %cst_43 = arith.constant 3.200000e+01 : f32
    %131 = vector.broadcast %cst_43 : f32 to vector<17x1xf32>
    %132 = arith.divf %130, %131 : vector<17x1xf32>
    %cst_44 = arith.constant 9.99999974E-6 : f32
    %133 = vector.broadcast %cst_44 : f32 to vector<17x1xf32>
    %134 = arith.addf %132, %133 : vector<17x1xf32>
    %135 = math.rsqrt %134 : vector<17x1xf32>
    %136 = vector.broadcast %135 : vector<17x1xf32> to vector<17x32xf32>
    %137 = arith.mulf %127, %136 : vector<17x32xf32>
    %c0_45 = arith.constant 0 : index
    %c0_46 = arith.constant 0 : index
    %138 = vector.load %arg8[%c0_45, %c0_46] : memref<1x32xf32, #tpu.memory_space<vmem>>, vector<1x32xf32>
    %139 = vector.broadcast %138 : vector<1x32xf32> to vector<17x32xf32>
    %140 = arith.mulf %137, %139 : vector<17x32xf32>
    %c0_47 = arith.constant 0 : index
    %c0_48 = arith.constant 0 : index
    %141 = vector.load %arg9[%c0_47, %c0_48] : memref<1x32xf32, #tpu.memory_space<vmem>>, vector<1x32xf32>
    %142 = vector.broadcast %141 : vector<1x32xf32> to vector<17x32xf32>
    %143 = arith.addf %140, %142 : vector<17x32xf32>
    %144 = arith.truncf %143 : vector<17x32xf32> to vector<17x32xbf16>
    %c0_49 = arith.constant 0 : index
    %c0_50 = arith.constant 0 : index
    %145 = vector.load %arg10[%c0_49, %c0_50] : memref<32x128xbf16, #tpu.memory_space<vmem>>, vector<32x128xbf16>
    %cst_51 = arith.constant dense<0.000000e+00> : vector<17x128xf32>
    %146 = tpu.matmul %144, %145, %cst_51 {dimension_numbers = #tpu.dot_dimension_numbers<[1], [0], [0], [1], [0, 0, 1, 1], [], []>} : vector<17x32xbf16>, vector<32x128xbf16>, vector<17x128xf32> -> vector<17x128xf32>
    %c0_52 = arith.constant 0 : index
    %c0_53 = arith.constant 0 : index
    %147 = vector.load %arg11[%c0_52, %c0_53] : memref<1x128xf32, #tpu.memory_space<vmem>>, vector<1x128xf32>
    %148 = vector.broadcast %147 : vector<1x128xf32> to vector<17x128xf32>
    %149 = arith.addf %146, %148 : vector<17x128xf32>
    %cst_54 = arith.constant 1.702000e+00 : f32
    %150 = vector.broadcast %cst_54 : f32 to vector<17x128xf32>
    %151 = arith.mulf %150, %149 : vector<17x128xf32>
    %152 = arith.negf %151 : vector<17x128xf32>
    %153 = math.exp %152 : vector<17x128xf32>
    %cst_55 = arith.constant 1.000000e+00 : f32
    %154 = vector.broadcast %cst_55 : f32 to vector<17x128xf32>
    %155 = arith.addf %154, %153 : vector<17x128xf32>
    %156 = arith.divf %154, %155 : vector<17x128xf32>
    %157 = arith.mulf %149, %156 : vector<17x128xf32>
    %158 = arith.truncf %157 : vector<17x128xf32> to vector<17x128xbf16>
    %c0_56 = arith.constant 0 : index
    %c0_57 = arith.constant 0 : index
    %159 = vector.load %arg12[%c0_56, %c0_57] : memref<128x32xbf16, #tpu.memory_space<vmem>>, vector<128x32xbf16>
    %cst_58 = arith.constant dense<0.000000e+00> : vector<17x32xf32>
    %160 = tpu.matmul %158, %159, %cst_58 {dimension_numbers = #tpu.dot_dimension_numbers<[1], [0], [0], [1], [0, 0, 1, 1], [], []>} : vector<17x128xbf16>, vector<128x32xbf16>, vector<17x32xf32> -> vector<17x32xf32>
    %c0_59 = arith.constant 0 : index
    %c0_60 = arith.constant 0 : index
    %161 = vector.load %arg13[%c0_59, %c0_60] : memref<1x32xf32, #tpu.memory_space<vmem>>, vector<1x32xf32>
    %162 = vector.broadcast %161 : vector<1x32xf32> to vector<17x32xf32>
    %163 = arith.addf %160, %162 : vector<17x32xf32>
    %164 = arith.addf %121, %163 : vector<17x32xf32>
    %c0_61 = arith.constant 0 : index
    %c0_62 = arith.constant 0 : index
    %c0_63 = arith.constant 0 : index
    %165 = vector.load %arg14[%c0_61, %c0_62, %c0_63] : memref<1x17x32xf32, #tpu.memory_space<vmem>>, vector<1x17x32xf32>
    %166 = vector.shape_cast %165 : vector<1x17x32xf32> to vector<17x32xf32>
    %167 = vector.shape_cast %164 : vector<17x32xf32> to vector<1x17x32xf32>
    tpu.vector_store %arg14[%c0_61, %c0_62, %c0_63], %167 {strides = array<i32>} : memref<1x17x32xf32, #tpu.memory_space<vmem>>, vector<1x17x32xf32>,
    return
  }
  func.func @transform_0(%arg0: i32) -> (i32, i32, i32) {
    %c0_i32 = arith.constant 0 : i32
    %c0_i32_0 = arith.constant 0 : i32
    %c0_i32_1 = arith.constant 0 : i32
    return %arg0, %c0_i32, %c0_i32_0 : i32, i32, i32
  }
  func.func @transform_1(%arg0: i32) -> (i32, i32) {
    %c0_i32 = arith.constant 0 : i32
    %c0_i32_0 = arith.constant 0 : i32
    %c0_i32_1 = arith.constant 0 : i32
    return %c0_i32, %c0_i32_0 : i32, i32
  }
  func.func @transform_2(%arg0: i32) -> (i32, i32) {
    %c0_i32 = arith.constant 0 : i32
    %c0_i32_0 = arith.constant 0 : i32
    %c0_i32_1 = arith.constant 0 : i32
    return %c0_i32, %c0_i32_0 : i32, i32
  }
  func.func @transform_3(%arg0: i32) -> (i32, i32) {
    %c0_i32 = arith.constant 0 : i32
    %c0_i32_0 = arith.constant 0 : i32
    %c0_i32_1 = arith.constant 0 : i32
    return %c0_i32, %c0_i32_0 : i32, i32
  }
  func.func @transform_4(%arg0: i32) -> (i32, i32) {
    %c0_i32 = arith.constant 0 : i32
    %c0_i32_0 = arith.constant 0 : i32
    %c0_i32_1 = arith.constant 0 : i32
    return %c0_i32, %c0_i32_0 : i32, i32
  }
  func.func @transform_5(%arg0: i32) -> (i32, i32) {
    %c0_i32 = arith.constant 0 : i32
    %c0_i32_0 = arith.constant 0 : i32
    %c0_i32_1 = arith.constant 0 : i32
    return %c0_i32, %c0_i32_0 : i32, i32
  }
  func.func @transform_6(%arg0: i32) -> (i32, i32) {
    %c0_i32 = arith.constant 0 : i32
    %c0_i32_0 = arith.constant 0 : i32
    %c0_i32_1 = arith.constant 0 : i32
    return %c0_i32, %c0_i32_0 : i32, i32
  }
  func.func @transform_7(%arg0: i32) -> (i32, i32) {
    %c0_i32 = arith.constant 0 : i32
    %c0_i32_0 = arith.constant 0 : i32
    %c0_i32_1 = arith.constant 0 : i32
    return %c0_i32, %c0_i32_0 : i32, i32
  }
  func.func @transform_8(%arg0: i32) -> (i32, i32) {
    %c0_i32 = arith.constant 0 : i32
    %c0_i32_0 = arith.constant 0 : i32
    %c0_i32_1 = arith.constant 0 : i32
    return %c0_i32, %c0_i32_0 : i32, i32
  }
  func.func @transform_9(%arg0: i32) -> (i32, i32) {
    %c0_i32 = arith.constant 0 : i32
    %c0_i32_0 = arith.constant 0 : i32
    %c0_i32_1 = arith.constant 0 : i32
    return %c0_i32, %c0_i32_0 : i32, i32
  }
  func.func @transform_10(%arg0: i32) -> (i32, i32) {
    %c0_i32 = arith.constant 0 : i32
    %c0_i32_0 = arith.constant 0 : i32
    %c0_i32_1 = arith.constant 0 : i32
    return %c0_i32, %c0_i32_0 : i32, i32
  }
  func.func @transform_11(%arg0: i32) -> (i32, i32) {
    %c0_i32 = arith.constant 0 : i32
    %c0_i32_0 = arith.constant 0 : i32
    %c0_i32_1 = arith.constant 0 : i32
    return %c0_i32, %c0_i32_0 : i32, i32
  }
  func.func @transform_12(%arg0: i32) -> (i32, i32) {
    %c0_i32 = arith.constant 0 : i32
    %c0_i32_0 = arith.constant 0 : i32
    %c0_i32_1 = arith.constant 0 : i32
    return %c0_i32, %c0_i32_0 : i32, i32
  }
  func.func @transform_13(%arg0: i32) -> (i32, i32, i32) {
    %c0_i32 = arith.constant 0 : i32
    %c0_i32_0 = arith.constant 0 : i32
    %c0_i32_1 = arith.constant 0 : i32
    return %arg0, %c0_i32, %c0_i32_0 : i32, i32, i32
  }
}

module attributes {stable_mosaic.version = 11 : i64} {
  func.func @_block_kernel(%arg0: i32, %arg1: memref<1x8x32xf32, #tpu.memory_space<vmem>>, %arg2: memref<1x32xf32, #tpu.memory_space<vmem>>, %arg3: memref<1x32xf32, #tpu.memory_space<vmem>>, %arg4: memref<32x96xbf16, #tpu.memory_space<vmem>>, %arg5: memref<1x96xf32, #tpu.memory_space<vmem>>, %arg6: memref<32x32xbf16, #tpu.memory_space<vmem>>, %arg7: memref<1x32xf32, #tpu.memory_space<vmem>>, %arg8: memref<1x32xf32, #tpu.memory_space<vmem>>, %arg9: memref<1x32xf32, #tpu.memory_space<vmem>>, %arg10: memref<32x128xbf16, #tpu.memory_space<vmem>>, %arg11: memref<1x128xf32, #tpu.memory_space<vmem>>, %arg12: memref<128x32xbf16, #tpu.memory_space<vmem>>, %arg13: memref<1x32xf32, #tpu.memory_space<vmem>>, %arg14: memref<1x8x32xf32, #tpu.memory_space<vmem>>) attributes {dimension_semantics = [#tpu.dimension_semantics<parallel>], iteration_bounds = array<i64: 4>, scalar_prefetch = 0 : i64, scratch_operands = 0 : i64, tpu.core_type = #tpu.core_type<tc>, window_params = [{transform_indices = @transform_0, window_bounds = array<i64: 1, 8, 32>}, {pipeline_mode = #tpu.pipeline_mode<synchronous>, transform_indices = @transform_1, window_bounds = array<i64: 1, 32>}, {pipeline_mode = #tpu.pipeline_mode<synchronous>, transform_indices = @transform_2, window_bounds = array<i64: 1, 32>}, {pipeline_mode = #tpu.pipeline_mode<synchronous>, transform_indices = @transform_3, window_bounds = array<i64: 32, 96>}, {pipeline_mode = #tpu.pipeline_mode<synchronous>, transform_indices = @transform_4, window_bounds = array<i64: 1, 96>}, {pipeline_mode = #tpu.pipeline_mode<synchronous>, transform_indices = @transform_5, window_bounds = array<i64: 32, 32>}, {pipeline_mode = #tpu.pipeline_mode<synchronous>, transform_indices = @transform_6, window_bounds = array<i64: 1, 32>}, {pipeline_mode = #tpu.pipeline_mode<synchronous>, transform_indices = @transform_7, window_bounds = array<i64: 1, 32>}, {pipeline_mode = #tpu.pipeline_mode<synchronous>, transform_indices = @transform_8, window_bounds = array<i64: 1, 32>}, {pipeline_mode = #tpu.pipeline_mode<synchronous>, transform_indices = @transform_9, window_bounds = array<i64: 32, 128>}, {pipeline_mode = #tpu.pipeline_mode<synchronous>, transform_indices = @transform_10, window_bounds = array<i64: 1, 128>}, {pipeline_mode = #tpu.pipeline_mode<synchronous>, transform_indices = @transform_11, window_bounds = array<i64: 128, 32>}, {pipeline_mode = #tpu.pipeline_mode<synchronous>, transform_indices = @transform_12, window_bounds = array<i64: 1, 32>}, {transform_indices = @transform_13, window_bounds = array<i64: 1, 8, 32>}]} {
    %c0 = arith.constant 0 : index
    %c0_0 = arith.constant 0 : index
    %c0_1 = arith.constant 0 : index
    %0 = vector.load %arg1[%c0, %c0_0, %c0_1] : memref<1x8x32xf32, #tpu.memory_space<vmem>>, vector<1x8x32xf32>
    %1 = vector.shape_cast %0 : vector<1x8x32xf32> to vector<8x32xf32>
    %cst = arith.constant dense<0.000000e+00> : vector<8xf32>
    %2 = vector.multi_reduction <add>, %1, %cst [1] : vector<8x32xf32> to vector<8xf32>
    %3 = vector.shape_cast %2 : vector<8xf32> to vector<8x1xf32>
    %cst_2 = arith.constant 3.200000e+01 : f32
    %4 = vector.broadcast %cst_2 : f32 to vector<8x1xf32>
    %5 = arith.divf %3, %4 : vector<8x1xf32>
    %6 = vector.broadcast %5 : vector<8x1xf32> to vector<8x32xf32>
    %7 = arith.subf %1, %6 : vector<8x32xf32>
    %8 = arith.mulf %7, %7 : vector<8x32xf32>
    %cst_3 = arith.constant dense<0.000000e+00> : vector<8xf32>
    %9 = vector.multi_reduction <add>, %8, %cst_3 [1] : vector<8x32xf32> to vector<8xf32>
    %10 = vector.shape_cast %9 : vector<8xf32> to vector<8x1xf32>
    %cst_4 = arith.constant 3.200000e+01 : f32
    %11 = vector.broadcast %cst_4 : f32 to vector<8x1xf32>
    %12 = arith.divf %10, %11 : vector<8x1xf32>
    %cst_5 = arith.constant 9.99999974E-6 : f32
    %13 = vector.broadcast %cst_5 : f32 to vector<8x1xf32>
    %14 = arith.addf %12, %13 : vector<8x1xf32>
    %15 = math.rsqrt %14 : vector<8x1xf32>
    %16 = vector.broadcast %15 : vector<8x1xf32> to vector<8x32xf32>
    %17 = arith.mulf %7, %16 : vector<8x32xf32>
    %c0_6 = arith.constant 0 : index
    %c0_7 = arith.constant 0 : index
    %18 = vector.load %arg2[%c0_6, %c0_7] : memref<1x32xf32, #tpu.memory_space<vmem>>, vector<1x32xf32>
    %19 = vector.broadcast %18 : vector<1x32xf32> to vector<8x32xf32>
    %20 = arith.mulf %17, %19 : vector<8x32xf32>
    %c0_8 = arith.constant 0 : index
    %c0_9 = arith.constant 0 : index
    %21 = vector.load %arg3[%c0_8, %c0_9] : memref<1x32xf32, #tpu.memory_space<vmem>>, vector<1x32xf32>
    %22 = vector.broadcast %21 : vector<1x32xf32> to vector<8x32xf32>
    %23 = arith.addf %20, %22 : vector<8x32xf32>
    %24 = arith.truncf %23 : vector<8x32xf32> to vector<8x32xbf16>
    %c0_10 = arith.constant 0 : index
    %c0_11 = arith.constant 0 : index
    %25 = vector.load %arg4[%c0_10, %c0_11] : memref<32x96xbf16, #tpu.memory_space<vmem>>, vector<32x96xbf16>
    %cst_12 = arith.constant dense<0.000000e+00> : vector<8x96xf32>
    %26 = tpu.matmul %24, %25, %cst_12 {dimension_numbers = #tpu.dot_dimension_numbers<[1], [0], [0], [1], [0, 0, 1, 1], [], []>} : vector<8x32xbf16>, vector<32x96xbf16>, vector<8x96xf32> -> vector<8x96xf32>
    %c0_13 = arith.constant 0 : index
    %c0_14 = arith.constant 0 : index
    %27 = vector.load %arg5[%c0_13, %c0_14] : memref<1x96xf32, #tpu.memory_space<vmem>>, vector<1x96xf32>
    %28 = vector.broadcast %27 : vector<1x96xf32> to vector<8x96xf32>
    %29 = arith.addf %26, %28 : vector<8x96xf32>
    %30 = tpu.iota {dimensions = array<i32: 0>} : vector<8x8xi32>
    %31 = tpu.iota {dimensions = array<i32: 1>} : vector<8x8xi32>
    %32 = arith.cmpi sle, %31, %30 : vector<8x8xi32>
    %33 = vector.extract_strided_slice %29 {offsets = [0, 0], sizes = [8, 8], strides = [1, 1]} : vector<8x96xf32> to vector<8x8xf32>
    %cst_15 = arith.constant 0.353553385 : f32
    %34 = vector.broadcast %cst_15 : f32 to vector<8x8xf32>
    %35 = arith.mulf %33, %34 : vector<8x8xf32>
    %36 = vector.extract_strided_slice %29 {offsets = [0, 32], sizes = [8, 8], strides = [1, 1]} : vector<8x96xf32> to vector<8x8xf32>
    %37 = vector.extract_strided_slice %29 {offsets = [0, 64], sizes = [8, 8], strides = [1, 1]} : vector<8x96xf32> to vector<8x8xf32>
    %38 = arith.truncf %35 : vector<8x8xf32> to vector<8x8xbf16>
    %39 = arith.truncf %36 : vector<8x8xf32> to vector<8x8xbf16>
    %cst_16 = arith.constant dense<0.000000e+00> : vector<8x8xf32>
    %40 = tpu.matmul %38, %39, %cst_16 {dimension_numbers = #tpu.dot_dimension_numbers<[1], [1], [0], [0], [0, 0, 1, 0], [], []>} : vector<8x8xbf16>, vector<8x8xbf16>, vector<8x8xf32> -> vector<8x8xf32>
    %cst_17 = arith.constant -1.000000e+30 : f32
    %41 = vector.broadcast %cst_17 : f32 to vector<8x8xf32>
    %42 = arith.select %32, %40, %41 : vector<8x8xi1>, vector<8x8xf32>
    %cst_18 = arith.constant dense<0xFF800000> : vector<8xf32>
    %43 = vector.multi_reduction <maximumf>, %42, %cst_18 [1] : vector<8x8xf32> to vector<8xf32>
    %44 = vector.shape_cast %43 : vector<8xf32> to vector<8x1xf32>
    %45 = vector.broadcast %44 : vector<8x1xf32> to vector<8x8xf32>
    %46 = arith.subf %42, %45 : vector<8x8xf32>
    %47 = math.exp %46 : vector<8x8xf32>
    %cst_19 = arith.constant dense<0.000000e+00> : vector<8xf32>
    %48 = vector.multi_reduction <add>, %47, %cst_19 [1] : vector<8x8xf32> to vector<8xf32>
    %49 = vector.shape_cast %48 : vector<8xf32> to vector<8x1xf32>
    %50 = tpu.reciprocal %49 {approx = true} : vector<8x1xf32> -> vector<8x1xf32>
    %51 = vector.broadcast %50 : vector<8x1xf32> to vector<8x8xf32>
    %52 = arith.mulf %47, %51 : vector<8x8xf32>
    %53 = arith.truncf %52 : vector<8x8xf32> to vector<8x8xbf16>
    %54 = arith.truncf %37 : vector<8x8xf32> to vector<8x8xbf16>
    %cst_20 = arith.constant dense<0.000000e+00> : vector<8x8xf32>
    %55 = tpu.matmul %53, %54, %cst_20 {dimension_numbers = #tpu.dot_dimension_numbers<[1], [0], [0], [1], [0, 0, 1, 1], [], []>} : vector<8x8xbf16>, vector<8x8xbf16>, vector<8x8xf32> -> vector<8x8xf32>
    %56 = vector.extract_strided_slice %29 {offsets = [0, 8], sizes = [8, 8], strides = [1, 1]} : vector<8x96xf32> to vector<8x8xf32>
    %cst_21 = arith.constant 0.353553385 : f32
    %57 = vector.broadcast %cst_21 : f32 to vector<8x8xf32>
    %58 = arith.mulf %56, %57 : vector<8x8xf32>
    %59 = vector.extract_strided_slice %29 {offsets = [0, 40], sizes = [8, 8], strides = [1, 1]} : vector<8x96xf32> to vector<8x8xf32>
    %60 = vector.extract_strided_slice %29 {offsets = [0, 72], sizes = [8, 8], strides = [1, 1]} : vector<8x96xf32> to vector<8x8xf32>
    %61 = arith.truncf %58 : vector<8x8xf32> to vector<8x8xbf16>
    %62 = arith.truncf %59 : vector<8x8xf32> to vector<8x8xbf16>
    %cst_22 = arith.constant dense<0.000000e+00> : vector<8x8xf32>
    %63 = tpu.matmul %61, %62, %cst_22 {dimension_numbers = #tpu.dot_dimension_numbers<[1], [1], [0], [0], [0, 0, 1, 0], [], []>} : vector<8x8xbf16>, vector<8x8xbf16>, vector<8x8xf32> -> vector<8x8xf32>
    %cst_23 = arith.constant -1.000000e+30 : f32
    %64 = vector.broadcast %cst_23 : f32 to vector<8x8xf32>
    %65 = arith.select %32, %63, %64 : vector<8x8xi1>, vector<8x8xf32>
    %cst_24 = arith.constant dense<0xFF800000> : vector<8xf32>
    %66 = vector.multi_reduction <maximumf>, %65, %cst_24 [1] : vector<8x8xf32> to vector<8xf32>
    %67 = vector.shape_cast %66 : vector<8xf32> to vector<8x1xf32>
    %68 = vector.broadcast %67 : vector<8x1xf32> to vector<8x8xf32>
    %69 = arith.subf %65, %68 : vector<8x8xf32>
    %70 = math.exp %69 : vector<8x8xf32>
    %cst_25 = arith.constant dense<0.000000e+00> : vector<8xf32>
    %71 = vector.multi_reduction <add>, %70, %cst_25 [1] : vector<8x8xf32> to vector<8xf32>
    %72 = vector.shape_cast %71 : vector<8xf32> to vector<8x1xf32>
    %73 = tpu.reciprocal %72 {approx = true} : vector<8x1xf32> -> vector<8x1xf32>
    %74 = vector.broadcast %73 : vector<8x1xf32> to vector<8x8xf32>
    %75 = arith.mulf %70, %74 : vector<8x8xf32>
    %76 = arith.truncf %75 : vector<8x8xf32> to vector<8x8xbf16>
    %77 = arith.truncf %60 : vector<8x8xf32> to vector<8x8xbf16>
    %cst_26 = arith.constant dense<0.000000e+00> : vector<8x8xf32>
    %78 = tpu.matmul %76, %77, %cst_26 {dimension_numbers = #tpu.dot_dimension_numbers<[1], [0], [0], [1], [0, 0, 1, 1], [], []>} : vector<8x8xbf16>, vector<8x8xbf16>, vector<8x8xf32> -> vector<8x8xf32>
    %79 = vector.extract_strided_slice %29 {offsets = [0, 16], sizes = [8, 8], strides = [1, 1]} : vector<8x96xf32> to vector<8x8xf32>
    %cst_27 = arith.constant 0.353553385 : f32
    %80 = vector.broadcast %cst_27 : f32 to vector<8x8xf32>
    %81 = arith.mulf %79, %80 : vector<8x8xf32>
    %82 = vector.extract_strided_slice %29 {offsets = [0, 48], sizes = [8, 8], strides = [1, 1]} : vector<8x96xf32> to vector<8x8xf32>
    %83 = vector.extract_strided_slice %29 {offsets = [0, 80], sizes = [8, 8], strides = [1, 1]} : vector<8x96xf32> to vector<8x8xf32>
    %84 = arith.truncf %81 : vector<8x8xf32> to vector<8x8xbf16>
    %85 = arith.truncf %82 : vector<8x8xf32> to vector<8x8xbf16>
    %cst_28 = arith.constant dense<0.000000e+00> : vector<8x8xf32>
    %86 = tpu.matmul %84, %85, %cst_28 {dimension_numbers = #tpu.dot_dimension_numbers<[1], [1], [0], [0], [0, 0, 1, 0], [], []>} : vector<8x8xbf16>, vector<8x8xbf16>, vector<8x8xf32> -> vector<8x8xf32>
    %cst_29 = arith.constant -1.000000e+30 : f32
    %87 = vector.broadcast %cst_29 : f32 to vector<8x8xf32>
    %88 = arith.select %32, %86, %87 : vector<8x8xi1>, vector<8x8xf32>
    %cst_30 = arith.constant dense<0xFF800000> : vector<8xf32>
    %89 = vector.multi_reduction <maximumf>, %88, %cst_30 [1] : vector<8x8xf32> to vector<8xf32>
    %90 = vector.shape_cast %89 : vector<8xf32> to vector<8x1xf32>
    %91 = vector.broadcast %90 : vector<8x1xf32> to vector<8x8xf32>
    %92 = arith.subf %88, %91 : vector<8x8xf32>
    %93 = math.exp %92 : vector<8x8xf32>
    %cst_31 = arith.constant dense<0.000000e+00> : vector<8xf32>
    %94 = vector.multi_reduction <add>, %93, %cst_31 [1] : vector<8x8xf32> to vector<8xf32>
    %95 = vector.shape_cast %94 : vector<8xf32> to vector<8x1xf32>
    %96 = tpu.reciprocal %95 {approx = true} : vector<8x1xf32> -> vector<8x1xf32>
    %97 = vector.broadcast %96 : vector<8x1xf32> to vector<8x8xf32>
    %98 = arith.mulf %93, %97 : vector<8x8xf32>
    %99 = arith.truncf %98 : vector<8x8xf32> to vector<8x8xbf16>
    %100 = arith.truncf %83 : vector<8x8xf32> to vector<8x8xbf16>
    %cst_32 = arith.constant dense<0.000000e+00> : vector<8x8xf32>
    %101 = tpu.matmul %99, %100, %cst_32 {dimension_numbers = #tpu.dot_dimension_numbers<[1], [0], [0], [1], [0, 0, 1, 1], [], []>} : vector<8x8xbf16>, vector<8x8xbf16>, vector<8x8xf32> -> vector<8x8xf32>
    %102 = vector.extract_strided_slice %29 {offsets = [0, 24], sizes = [8, 8], strides = [1, 1]} : vector<8x96xf32> to vector<8x8xf32>
    %cst_33 = arith.constant 0.353553385 : f32
    %103 = vector.broadcast %cst_33 : f32 to vector<8x8xf32>
    %104 = arith.mulf %102, %103 : vector<8x8xf32>
    %105 = vector.extract_strided_slice %29 {offsets = [0, 56], sizes = [8, 8], strides = [1, 1]} : vector<8x96xf32> to vector<8x8xf32>
    %106 = vector.extract_strided_slice %29 {offsets = [0, 88], sizes = [8, 8], strides = [1, 1]} : vector<8x96xf32> to vector<8x8xf32>
    %107 = arith.truncf %104 : vector<8x8xf32> to vector<8x8xbf16>
    %108 = arith.truncf %105 : vector<8x8xf32> to vector<8x8xbf16>
    %cst_34 = arith.constant dense<0.000000e+00> : vector<8x8xf32>
    %109 = tpu.matmul %107, %108, %cst_34 {dimension_numbers = #tpu.dot_dimension_numbers<[1], [1], [0], [0], [0, 0, 1, 0], [], []>} : vector<8x8xbf16>, vector<8x8xbf16>, vector<8x8xf32> -> vector<8x8xf32>
    %cst_35 = arith.constant -1.000000e+30 : f32
    %110 = vector.broadcast %cst_35 : f32 to vector<8x8xf32>
    %111 = arith.select %32, %109, %110 : vector<8x8xi1>, vector<8x8xf32>
    %cst_36 = arith.constant dense<0xFF800000> : vector<8xf32>
    %112 = vector.multi_reduction <maximumf>, %111, %cst_36 [1] : vector<8x8xf32> to vector<8xf32>
    %113 = vector.shape_cast %112 : vector<8xf32> to vector<8x1xf32>
    %114 = vector.broadcast %113 : vector<8x1xf32> to vector<8x8xf32>
    %115 = arith.subf %111, %114 : vector<8x8xf32>
    %116 = math.exp %115 : vector<8x8xf32>
    %cst_37 = arith.constant dense<0.000000e+00> : vector<8xf32>
    %117 = vector.multi_reduction <add>, %116, %cst_37 [1] : vector<8x8xf32> to vector<8xf32>
    %118 = vector.shape_cast %117 : vector<8xf32> to vector<8x1xf32>
    %119 = tpu.reciprocal %118 {approx = true} : vector<8x1xf32> -> vector<8x1xf32>
    %120 = vector.broadcast %119 : vector<8x1xf32> to vector<8x8xf32>
    %121 = arith.mulf %116, %120 : vector<8x8xf32>
    %122 = arith.truncf %121 : vector<8x8xf32> to vector<8x8xbf16>
    %123 = arith.truncf %106 : vector<8x8xf32> to vector<8x8xbf16>
    %cst_38 = arith.constant dense<0.000000e+00> : vector<8x8xf32>
    %124 = tpu.matmul %122, %123, %cst_38 {dimension_numbers = #tpu.dot_dimension_numbers<[1], [0], [0], [1], [0, 0, 1, 1], [], []>} : vector<8x8xbf16>, vector<8x8xbf16>, vector<8x8xf32> -> vector<8x8xf32>
    %125 = tpu.concatenate %55, %78, %101, %124 in 1 : vector<8x8xf32>, vector<8x8xf32>, vector<8x8xf32>, vector<8x8xf32> -> vector<8x32xf32>
    %126 = arith.truncf %125 : vector<8x32xf32> to vector<8x32xbf16>
    %c0_39 = arith.constant 0 : index
    %c0_40 = arith.constant 0 : index
    %127 = vector.load %arg6[%c0_39, %c0_40] : memref<32x32xbf16, #tpu.memory_space<vmem>>, vector<32x32xbf16>
    %cst_41 = arith.constant dense<0.000000e+00> : vector<8x32xf32>
    %128 = tpu.matmul %126, %127, %cst_41 {dimension_numbers = #tpu.dot_dimension_numbers<[1], [0], [0], [1], [0, 0, 1, 1], [], []>} : vector<8x32xbf16>, vector<32x32xbf16>, vector<8x32xf32> -> vector<8x32xf32>
    %129 = arith.addf %1, %128 : vector<8x32xf32>
    %c0_42 = arith.constant 0 : index
    %c0_43 = arith.constant 0 : index
    %130 = vector.load %arg7[%c0_42, %c0_43] : memref<1x32xf32, #tpu.memory_space<vmem>>, vector<1x32xf32>
    %131 = vector.broadcast %130 : vector<1x32xf32> to vector<8x32xf32>
    %132 = arith.addf %129, %131 : vector<8x32xf32>
    %cst_44 = arith.constant dense<0.000000e+00> : vector<8xf32>
    %133 = vector.multi_reduction <add>, %132, %cst_44 [1] : vector<8x32xf32> to vector<8xf32>
    %134 = vector.shape_cast %133 : vector<8xf32> to vector<8x1xf32>
    %cst_45 = arith.constant 3.200000e+01 : f32
    %135 = vector.broadcast %cst_45 : f32 to vector<8x1xf32>
    %136 = arith.divf %134, %135 : vector<8x1xf32>
    %137 = vector.broadcast %136 : vector<8x1xf32> to vector<8x32xf32>
    %138 = arith.subf %132, %137 : vector<8x32xf32>
    %139 = arith.mulf %138, %138 : vector<8x32xf32>
    %cst_46 = arith.constant dense<0.000000e+00> : vector<8xf32>
    %140 = vector.multi_reduction <add>, %139, %cst_46 [1] : vector<8x32xf32> to vector<8xf32>
    %141 = vector.shape_cast %140 : vector<8xf32> to vector<8x1xf32>
    %cst_47 = arith.constant 3.200000e+01 : f32
    %142 = vector.broadcast %cst_47 : f32 to vector<8x1xf32>
    %143 = arith.divf %141, %142 : vector<8x1xf32>
    %cst_48 = arith.constant 9.99999974E-6 : f32
    %144 = vector.broadcast %cst_48 : f32 to vector<8x1xf32>
    %145 = arith.addf %143, %144 : vector<8x1xf32>
    %146 = math.rsqrt %145 : vector<8x1xf32>
    %147 = vector.broadcast %146 : vector<8x1xf32> to vector<8x32xf32>
    %148 = arith.mulf %138, %147 : vector<8x32xf32>
    %c0_49 = arith.constant 0 : index
    %c0_50 = arith.constant 0 : index
    %149 = vector.load %arg8[%c0_49, %c0_50] : memref<1x32xf32, #tpu.memory_space<vmem>>, vector<1x32xf32>
    %150 = vector.broadcast %149 : vector<1x32xf32> to vector<8x32xf32>
    %151 = arith.mulf %148, %150 : vector<8x32xf32>
    %c0_51 = arith.constant 0 : index
    %c0_52 = arith.constant 0 : index
    %152 = vector.load %arg9[%c0_51, %c0_52] : memref<1x32xf32, #tpu.memory_space<vmem>>, vector<1x32xf32>
    %153 = vector.broadcast %152 : vector<1x32xf32> to vector<8x32xf32>
    %154 = arith.addf %151, %153 : vector<8x32xf32>
    %155 = arith.truncf %154 : vector<8x32xf32> to vector<8x32xbf16>
    %c0_53 = arith.constant 0 : index
    %c0_54 = arith.constant 0 : index
    %156 = vector.load %arg10[%c0_53, %c0_54] : memref<32x128xbf16, #tpu.memory_space<vmem>>, vector<32x128xbf16>
    %cst_55 = arith.constant dense<0.000000e+00> : vector<8x128xf32>
    %157 = tpu.matmul %155, %156, %cst_55 {dimension_numbers = #tpu.dot_dimension_numbers<[1], [0], [0], [1], [0, 0, 1, 1], [], []>} : vector<8x32xbf16>, vector<32x128xbf16>, vector<8x128xf32> -> vector<8x128xf32>
    %c0_56 = arith.constant 0 : index
    %c0_57 = arith.constant 0 : index
    %158 = vector.load %arg11[%c0_56, %c0_57] : memref<1x128xf32, #tpu.memory_space<vmem>>, vector<1x128xf32>
    %159 = vector.broadcast %158 : vector<1x128xf32> to vector<8x128xf32>
    %160 = arith.addf %157, %159 : vector<8x128xf32>
    %cst_58 = arith.constant 1.702000e+00 : f32
    %161 = vector.broadcast %cst_58 : f32 to vector<8x128xf32>
    %162 = arith.mulf %161, %160 : vector<8x128xf32>
    %163 = arith.negf %162 : vector<8x128xf32>
    %164 = math.exp %163 : vector<8x128xf32>
    %cst_59 = arith.constant 1.000000e+00 : f32
    %165 = vector.broadcast %cst_59 : f32 to vector<8x128xf32>
    %166 = arith.addf %165, %164 : vector<8x128xf32>
    %167 = arith.divf %165, %166 : vector<8x128xf32>
    %168 = arith.mulf %160, %167 : vector<8x128xf32>
    %169 = arith.truncf %168 : vector<8x128xf32> to vector<8x128xbf16>
    %c0_60 = arith.constant 0 : index
    %c0_61 = arith.constant 0 : index
    %170 = vector.load %arg12[%c0_60, %c0_61] : memref<128x32xbf16, #tpu.memory_space<vmem>>, vector<128x32xbf16>
    %cst_62 = arith.constant dense<0.000000e+00> : vector<8x32xf32>
    %171 = tpu.matmul %169, %170, %cst_62 {dimension_numbers = #tpu.dot_dimension_numbers<[1], [0], [0], [1], [0, 0, 1, 1], [], []>} : vector<8x128xbf16>, vector<128x32xbf16>, vector<8x32xf32> -> vector<8x32xf32>
    %c0_63 = arith.constant 0 : index
    %c0_64 = arith.constant 0 : index
    %172 = vector.load %arg13[%c0_63, %c0_64] : memref<1x32xf32, #tpu.memory_space<vmem>>, vector<1x32xf32>
    %173 = vector.broadcast %172 : vector<1x32xf32> to vector<8x32xf32>
    %174 = arith.addf %171, %173 : vector<8x32xf32>
    %175 = arith.addf %132, %174 : vector<8x32xf32>
    %c0_65 = arith.constant 0 : index
    %c0_66 = arith.constant 0 : index
    %c0_67 = arith.constant 0 : index
    %176 = vector.load %arg14[%c0_65, %c0_66, %c0_67] : memref<1x8x32xf32, #tpu.memory_space<vmem>>, vector<1x8x32xf32>
    %177 = vector.shape_cast %176 : vector<1x8x32xf32> to vector<8x32xf32>
    %178 = vector.shape_cast %175 : vector<8x32xf32> to vector<1x8x32xf32>
    tpu.vector_store %arg14[%c0_65, %c0_66, %c0_67], %178 {strides = array<i32>} : memref<1x8x32xf32, #tpu.memory_space<vmem>>, vector<1x8x32xf32>,
    return
  }
  func.func @transform_0(%arg0: i32) -> (i32, i32, i32) {
    %c0_i32 = arith.constant 0 : i32
    %c0_i32_0 = arith.constant 0 : i32
    %c0_i32_1 = arith.constant 0 : i32
    return %arg0, %c0_i32, %c0_i32_0 : i32, i32, i32
  }
  func.func @transform_1(%arg0: i32) -> (i32, i32) {
    %c0_i32 = arith.constant 0 : i32
    %c0_i32_0 = arith.constant 0 : i32
    %c0_i32_1 = arith.constant 0 : i32
    return %c0_i32, %c0_i32_0 : i32, i32
  }
  func.func @transform_2(%arg0: i32) -> (i32, i32) {
    %c0_i32 = arith.constant 0 : i32
    %c0_i32_0 = arith.constant 0 : i32
    %c0_i32_1 = arith.constant 0 : i32
    return %c0_i32, %c0_i32_0 : i32, i32
  }
  func.func @transform_3(%arg0: i32) -> (i32, i32) {
    %c0_i32 = arith.constant 0 : i32
    %c0_i32_0 = arith.constant 0 : i32
    %c0_i32_1 = arith.constant 0 : i32
    return %c0_i32, %c0_i32_0 : i32, i32
  }
  func.func @transform_4(%arg0: i32) -> (i32, i32) {
    %c0_i32 = arith.constant 0 : i32
    %c0_i32_0 = arith.constant 0 : i32
    %c0_i32_1 = arith.constant 0 : i32
    return %c0_i32, %c0_i32_0 : i32, i32
  }
  func.func @transform_5(%arg0: i32) -> (i32, i32) {
    %c0_i32 = arith.constant 0 : i32
    %c0_i32_0 = arith.constant 0 : i32
    %c0_i32_1 = arith.constant 0 : i32
    return %c0_i32, %c0_i32_0 : i32, i32
  }
  func.func @transform_6(%arg0: i32) -> (i32, i32) {
    %c0_i32 = arith.constant 0 : i32
    %c0_i32_0 = arith.constant 0 : i32
    %c0_i32_1 = arith.constant 0 : i32
    return %c0_i32, %c0_i32_0 : i32, i32
  }
  func.func @transform_7(%arg0: i32) -> (i32, i32) {
    %c0_i32 = arith.constant 0 : i32
    %c0_i32_0 = arith.constant 0 : i32
    %c0_i32_1 = arith.constant 0 : i32
    return %c0_i32, %c0_i32_0 : i32, i32
  }
  func.func @transform_8(%arg0: i32) -> (i32, i32) {
    %c0_i32 = arith.constant 0 : i32
    %c0_i32_0 = arith.constant 0 : i32
    %c0_i32_1 = arith.constant 0 : i32
    return %c0_i32, %c0_i32_0 : i32, i32
  }
  func.func @transform_9(%arg0: i32) -> (i32, i32) {
    %c0_i32 = arith.constant 0 : i32
    %c0_i32_0 = arith.constant 0 : i32
    %c0_i32_1 = arith.constant 0 : i32
    return %c0_i32, %c0_i32_0 : i32, i32
  }
  func.func @transform_10(%arg0: i32) -> (i32, i32) {
    %c0_i32 = arith.constant 0 : i32
    %c0_i32_0 = arith.constant 0 : i32
    %c0_i32_1 = arith.constant 0 : i32
    return %c0_i32, %c0_i32_0 : i32, i32
  }
  func.func @transform_11(%arg0: i32) -> (i32, i32) {
    %c0_i32 = arith.constant 0 : i32
    %c0_i32_0 = arith.constant 0 : i32
    %c0_i32_1 = arith.constant 0 : i32
    return %c0_i32, %c0_i32_0 : i32, i32
  }
  func.func @transform_12(%arg0: i32) -> (i32, i32) {
    %c0_i32 = arith.constant 0 : i32
    %c0_i32_0 = arith.constant 0 : i32
    %c0_i32_1 = arith.constant 0 : i32
    return %c0_i32, %c0_i32_0 : i32, i32
  }
  func.func @transform_13(%arg0: i32) -> (i32, i32, i32) {
    %c0_i32 = arith.constant 0 : i32
    %c0_i32_0 = arith.constant 0 : i32
    %c0_i32_1 = arith.constant 0 : i32
    return %arg0, %c0_i32, %c0_i32_0 : i32, i32, i32
  }
}

module attributes {stable_mosaic.version = 11 : i64} {
  func.func @_ln_proj_kernel(%arg0: memref<4x32xf32, #tpu.memory_space<vmem>>, %arg1: memref<1x32xf32, #tpu.memory_space<vmem>>, %arg2: memref<1x32xf32, #tpu.memory_space<vmem>>, %arg3: memref<32x16xbf16, #tpu.memory_space<vmem>>, %arg4: memref<4x16xf32, #tpu.memory_space<vmem>>) attributes {dimension_semantics = [], scalar_prefetch = 0 : i64, scratch_operands = 0 : i64, tpu.core_type = #tpu.core_type<tc>} {
    %c0 = arith.constant 0 : index
    %c0_0 = arith.constant 0 : index
    %0 = vector.load %arg0[%c0, %c0_0] : memref<4x32xf32, #tpu.memory_space<vmem>>, vector<4x32xf32>
    %cst = arith.constant dense<0.000000e+00> : vector<4xf32>
    %1 = vector.multi_reduction <add>, %0, %cst [1] : vector<4x32xf32> to vector<4xf32>
    %2 = vector.shape_cast %1 : vector<4xf32> to vector<4x1xf32>
    %cst_1 = arith.constant 3.200000e+01 : f32
    %3 = vector.broadcast %cst_1 : f32 to vector<4x1xf32>
    %4 = arith.divf %2, %3 : vector<4x1xf32>
    %5 = vector.broadcast %4 : vector<4x1xf32> to vector<4x32xf32>
    %6 = arith.subf %0, %5 : vector<4x32xf32>
    %7 = arith.mulf %6, %6 : vector<4x32xf32>
    %cst_2 = arith.constant dense<0.000000e+00> : vector<4xf32>
    %8 = vector.multi_reduction <add>, %7, %cst_2 [1] : vector<4x32xf32> to vector<4xf32>
    %9 = vector.shape_cast %8 : vector<4xf32> to vector<4x1xf32>
    %cst_3 = arith.constant 3.200000e+01 : f32
    %10 = vector.broadcast %cst_3 : f32 to vector<4x1xf32>
    %11 = arith.divf %9, %10 : vector<4x1xf32>
    %cst_4 = arith.constant 9.99999974E-6 : f32
    %12 = vector.broadcast %cst_4 : f32 to vector<4x1xf32>
    %13 = arith.addf %11, %12 : vector<4x1xf32>
    %14 = math.rsqrt %13 : vector<4x1xf32>
    %15 = vector.broadcast %14 : vector<4x1xf32> to vector<4x32xf32>
    %16 = arith.mulf %6, %15 : vector<4x32xf32>
    %c0_5 = arith.constant 0 : index
    %c0_6 = arith.constant 0 : index
    %17 = vector.load %arg1[%c0_5, %c0_6] : memref<1x32xf32, #tpu.memory_space<vmem>>, vector<1x32xf32>
    %18 = vector.broadcast %17 : vector<1x32xf32> to vector<4x32xf32>
    %19 = arith.mulf %16, %18 : vector<4x32xf32>
    %c0_7 = arith.constant 0 : index
    %c0_8 = arith.constant 0 : index
    %20 = vector.load %arg2[%c0_7, %c0_8] : memref<1x32xf32, #tpu.memory_space<vmem>>, vector<1x32xf32>
    %21 = vector.broadcast %20 : vector<1x32xf32> to vector<4x32xf32>
    %22 = arith.addf %19, %21 : vector<4x32xf32>
    %23 = arith.truncf %22 : vector<4x32xf32> to vector<4x32xbf16>
    %c0_9 = arith.constant 0 : index
    %c0_10 = arith.constant 0 : index
    %24 = vector.load %arg3[%c0_9, %c0_10] : memref<32x16xbf16, #tpu.memory_space<vmem>>, vector<32x16xbf16>
    %cst_11 = arith.constant dense<0.000000e+00> : vector<4x16xf32>
    %25 = tpu.matmul %23, %24, %cst_11 {dimension_numbers = #tpu.dot_dimension_numbers<[1], [0], [0], [1], [0, 0, 1, 1], [], []>} : vector<4x32xbf16>, vector<32x16xbf16>, vector<4x16xf32> -> vector<4x16xf32>
    %c0_12 = arith.constant 0 : index
    %c0_13 = arith.constant 0 : index
    %26 = vector.load %arg4[%c0_12, %c0_13] : memref<4x16xf32, #tpu.memory_space<vmem>>, vector<4x16xf32>
    tpu.vector_store %arg4[%c0_12, %c0_13], %25 {strides = array<i32>} : memref<4x16xf32, #tpu.memory_space<vmem>>, vector<4x16xf32>,
    return
  }
}

</mosaic_0001>

<bundles_post_ra>
// kernel: clip_encoder_forward.12
= control target key start
LH: loop header
LB: loop body
LE: loop exit
PB: predicated region body
PF: predicated region fallthrough
CT: control target
= control target key end

     0   :  { %vm19_vm0 = vcmask 261120   ;;  %vm32_vm1 = vcmask 254976   ;;  %s203_s0 = inlined_call_operand.vmem [shape: f32[34,32], index: 0, kind: input, shape index: {}]   ;;  %s204_s1 = inlined_call_operand.vmem [shape: f32[1,32], index: 1, kind: input, shape index: {}]   ;;  %s205_s2 = inlined_call_operand.vmem [shape: f32[1,32], index: 2, kind: input, shape index: {}]   ;;  %s206_s3 = inlined_call_operand.vmem [shape: f32[34,32], index: 3, kind: output, shape index: {}]  }
   0x1   :  { %v14_v0 = vld [vmem:[%s203_s0] sm:$0xff]  ;;  %v16_v1 = vld [vmem:[%s203_s0 + $0x10] sm:$0xff]  ;;  %v15_v2 = vld [vmem:[%s203_s0 + $0x8] sm:$0xff] }
   0x2   :  { %v20_v3 = vsel %vm19_vm0, %v14_v0, 0.0  ;;  %v26_v4 = vsel %vm19_vm0, %v16_v1, 0.0  ;;  %v17_v5 = vld [vmem:[%s203_s0 + $0x18] sm:$0xff]  ;;  %v23_v6 = vsel %vm19_vm0, %v15_v2, 0.0  ;;  %v18_v8 = vld [vmem:[%s203_s0 + $0x20] sm:$0x3] }
   0x3   :  { %21 = vadd.xlane.f32.xlu0 %v20_v3  ;;  %27 = vadd.xlane.f32.xlu1 %v26_v4  ;;  %v29_v7 = vsel %vm19_vm0, %v17_v5, 0.0  ;;  %v33_v9 = vsel %vm32_vm1, %v18_v8, 0.0  ;;  %v120_v51 = vld [vmem:[%s204_s1] ss:$0 sm:$0xff] }
   0x4   :  { %v121_v53 = vld [vmem:[%s205_s2] ss:$0 sm:$0xff] }
   0x7   :  { %24 = vadd.xlane.f32.xlu0 %v23_v6  ;;  %30 = vadd.xlane.f32.xlu1 %v29_v7 }
   0xb   :  { %34 = vadd.xlane.f32.xlu0 %v33_v9 }
  0x90   :  { %v22_v10 = vpop.xlane.xlu0 %21  ;;  %v28_v11 = vpop.xlane.xlu1 %27 }
  0x91   :  { %v37_v12 = vmul.f32 0.03125, %v22_v10  ;;  %v39_v13 = vmul.f32 0.03125, %v28_v11 }
  0x93   :  { %v42_v14 = vsub.f32 %v14_v0, %v37_v12  ;;  %v44_v15 = vsub.f32 %v16_v1, %v39_v13 }
  0x94   :  { %v25_v16 = vpop.xlane.xlu0 %24  ;;  %v31_v17 = vpop.xlane.xlu1 %30 }
  0x95   :  { %v38_v18 = vmul.f32 0.03125, %v25_v16  ;;  %v40_v19 = vmul.f32 0.03125, %v31_v17  ;;  %v47_v20 = vmul.f32 %v42_v14, %v42_v14  ;;  %v49_v21 = vmul.f32 %v44_v15, %v44_v15 }
  0x97   :  { %v43_v22 = vsub.f32 %v15_v2, %v38_v18  ;;  %v45_v23 = vsub.f32 %v17_v5, %v40_v19  ;;  %v52_v24 = vsel %vm19_vm0, %v47_v20, 0.0  ;;  %v58_v27 = vsel %vm19_vm0, %v49_v21, 0.0 }
  0x98   :  { %53 = vadd.xlane.f32.xlu1 %v52_v24  ;;  %v35_v25 = vpop.xlane.xlu0 %34 }
  0x99   :  { %v41_v26 = vmul.f32 0.03125, %v35_v25  ;;  %v48_v28 = vmul.f32 %v43_v22, %v43_v22  ;;  %v50_v29 = vmul.f32 %v45_v23, %v45_v23 }
  0x9b   :  { %v46_v30 = vsub.f32 %v18_v8, %v41_v26  ;;  %v55_v31 = vsel %vm19_vm0, %v48_v28, 0.0  ;;  %v61_v32 = vsel %vm19_vm0, %v50_v29, 0.0 }
  0x9c   :  { %59 = vadd.xlane.f32.xlu1 %v58_v27  ;;  %56 = vadd.xlane.f32.xlu0 %v55_v31 }
  0x9d   :  { %v51_v33 = vmul.f32 %v46_v30, %v46_v30 }
  0x9f   :  { %v64_v34 = vsel %vm32_vm1, %v51_v33, 0.0 }
  0xa0   :  { %62 = vadd.xlane.f32.xlu0 %v61_v32  ;;  %65 = vadd.xlane.f32.xlu1 %v64_v34 }
 0x125   :  { %v54_v35 = vpop.xlane.xlu1 %53 }
 0x126   :  { %v67_v36 = vmul.f32 0.03125, %v54_v35 }
 0x128   :  { %v72_v37 = vadd.f32 1e-05, %v67_v36 }
 0x129   :  { %v60_v38 = vpop.xlane.xlu1 %59  ;;  %v57_v39 = vpop.xlane.xlu0 %56 }
 0x12a   :  { %122 = vrsqrt.f32 %v72_v37  ;;  %v69_v40 = vmul.f32 0.03125, %v60_v38  ;;  %v68_v41 = vmul.f32 0.03125, %v57_v39 }
 0x12c   :  { %v74_v42 = vadd.f32 1e-05, %v69_v40  ;;  %v73_v43 = vadd.f32 1e-05, %v68_v41 }
 0x12d   :  { %v66_v44 = vpop.xlane.xlu1 %65  ;;  %v63_v45 = vpop.xlane.xlu0 %62 }
 0x12e   :  { %124 = vrsqrt.f32 %v74_v42  ;;  %v71_v46 = vmul.f32 0.03125, %v66_v44  ;;  %v70_v47 = vmul.f32 0.03125, %v63_v45 }
 0x12f   :  { %126 = vrsqrt.f32 %v73_v43 }
 0x130   :  { %v76_v48 = vadd.f32 1e-05, %v71_v46  ;;  %v75_v49 = vadd.f32 1e-05, %v70_v47 }
 0x132   :  { %128 = vrsqrt.f32 %v76_v48 }
 0x133   :  { %130 = vrsqrt.f32 %v75_v49 }
 0x134   :  { %v123_v50 = vpop.eup %122 }
 0x135   :  { %v82_v52 = vmul.f32 %v123_v50, %v42_v14 }
 0x137   :  { %v94_v54 = vmul.f32 %v120_v51, %v82_v52 }
 0x138   :  { %v125_v55 = vpop.eup %124 }
 0x139   :  { %v127_v56 = vpop.eup %126  ;;  %v106_v57 = vadd.f32 %v121_v53, %v94_v54  ;;  %v84_v58 = vmul.f32 %v125_v55, %v44_v15 }
 0x13a   :  { %v83_v59 = vmul.f32 %v127_v56, %v43_v22 }
 0x13b   :  { %111 = vst.msk [vmem:[%s206_s3] sm:$0xff] %vm19_vm0, %v106_v57  ;;  %v96_v60 = vmul.f32 %v120_v51, %v84_v58 }
 0x13c   :  { %v129_v61 = vpop.eup %128  ;;  %v95_v62 = vmul.f32 %v120_v51, %v83_v59 }
 0x13d   :  { %v131_v63 = vpop.eup %130  ;;  %v108_v0 = vadd.f32 %v121_v53, %v96_v60  ;;  %v86_v1 = vmul.f32 %v129_v61, %v46_v30 }
 0x13e   :  { %v107_v2 = vadd.f32 %v121_v53, %v95_v62  ;;  %v85_v3 = vmul.f32 %v131_v63, %v45_v23 }
 0x13f   :  { %113 = vst.msk [vmem:[%s206_s3 + $0x10] sm:$0xff] %vm19_vm0, %v108_v0  ;;  %v98_v4 = vmul.f32 %v120_v51, %v86_v1 }
 0x140   :  { %112 = vst.msk [vmem:[%s206_s3 + $0x8] sm:$0xff] %vm19_vm0, %v107_v2  ;;  %v97_v5 = vmul.f32 %v120_v51, %v85_v3 }
 0x141   :  { %v110_v6 = vadd.f32 %v121_v53, %v98_v4 }
 0x142   :  { %v109_v7 = vadd.f32 %v121_v53, %v97_v5 }
 0x143   :  { %115 = vst.msk [vmem:[%s206_s3 + $0x20] sm:$0x3] %vm32_vm1, %v110_v6 }
 0x144   :  { %114 = vst.msk [vmem:[%s206_s3 + $0x18] sm:$0xff] %vm19_vm0, %v109_v7 }

// kernel: clip_encoder_forward.15
= control target key start
LH: loop header
LB: loop body
LE: loop exit
PB: predicated region body
PF: predicated region fallthrough
CT: control target
= control target key end

     0   :  { %vm19_vm0 = vcmask 261120   ;;  %s217_s0 = inlined_call_operand.vmem [shape: f32[32,32], index: 0, kind: input, shape index: {}]   ;;  %s218_s1 = inlined_call_operand.vmem [shape: f32[1,32], index: 1, kind: input, shape index: {}]   ;;  %s219_s2 = inlined_call_operand.vmem [shape: f32[1,32], index: 2, kind: input, shape index: {}]   ;;  %s220_s3 = inlined_call_operand.hbm [shape: f32[32,32], index: 3, kind: output, shape index: {}]  }
   0x1   :  { %v15_v0 = vld [vmem:[%s217_s0] sm:$0xff]  ;;  %v17_v1 = vld [vmem:[%s217_s0 + $0x10] sm:$0xff]  ;;  %v16_v2 = vld [vmem:[%s217_s0 + $0x8] sm:$0xff] }
   0x2   :  { %v20_v3 = vsel %vm19_vm0, %v15_v0, 0.0  ;;  %v26_v4 = vsel %vm19_vm0, %v17_v1, 0.0  ;;  %v18_v5 = vld [vmem:[%s217_s0 + $0x18] sm:$0xff] }
   0x3   :  { %8 = vsyncpa [#allocation3], 0  ;;  %21 = vadd.xlane.f32.xlu0 %v20_v3  ;;  %27 = vadd.xlane.f32.xlu1 %v26_v4  ;;  %v23_v6 = vsel %vm19_vm0, %v16_v2, 0.0  ;;  %v29_v7 = vsel %vm19_vm0, %v18_v5, 0.0  ;;  %v115_v41 = vld [vmem:[%s218_s1] ss:$0 sm:$0xff] }
   0x4   :  { %v116_v43 = vld [vmem:[%s219_s2] ss:$0 sm:$0xff]  ;;  %s152_s1 = smov [#allocation2]  }
   0x5   :  { %s104_s23 = sshll.u32 %s152_s1, 4  ;;  %s105_s23 = int_to_ptr.vmem [resolvable:$true] %s104_s23 }
   0x6   :  { %s128_s2 = scalar_lea.vmem %s105_s23, 512  ;;  %p133_p1 = scmp.lt.s32.totalorder %s105_s23, %s105_s23 }
   0x7   :  { %24 = vadd.xlane.f32.xlu0 %v23_v6  ;;  %30 = vadd.xlane.f32.xlu1 %v29_v7  ;;  %p129_p0 = scmp.ne.s32.totalorder %s105_s23, %s128_s2  ;;  %p134_p2 = scmp.lt.s32.totalorder %s128_s2, %s128_s2 }
   0x9   :  { %p135_p3 = por %p134_p2, %p133_p1 }
   0xb   :  { %p136_p4 = pnand %p135_p3, %p129_p0 }
  0x90   :  { %v22_v8 = vpop.xlane.xlu0 %21  ;;  %v28_v9 = vpop.xlane.xlu1 %27 }
  0x91   :  { %v33_v10 = vmul.f32 0.03125, %v22_v8  ;;  %v35_v11 = vmul.f32 0.03125, %v28_v9 }
  0x93   :  { %v37_v12 = vsub.f32 %v15_v0, %v33_v10  ;;  %v39_v13 = vsub.f32 %v17_v1, %v35_v11 }
  0x94   :  { %v25_v14 = vpop.xlane.xlu0 %24  ;;  %v31_v15 = vpop.xlane.xlu1 %30 }
  0x95   :  { %v34_v16 = vmul.f32 0.03125, %v25_v14  ;;  %v36_v17 = vmul.f32 0.03125, %v31_v15  ;;  %v41_v18 = vmul.f32 %v37_v12, %v37_v12  ;;  %v43_v19 = vmul.f32 %v39_v13, %v39_v13 }
  0x97   :  { %v38_v20 = vsub.f32 %v16_v2, %v34_v16  ;;  %v40_v21 = vsub.f32 %v18_v5, %v36_v17  ;;  %v45_v22 = vsel %vm19_vm0, %v41_v18, 0.0  ;;  %v51_v23 = vsel %vm19_vm0, %v43_v19, 0.0 }
  0x98   :  { %46 = vadd.xlane.f32.xlu0 %v45_v22 }
  0x99   :  { %v42_v24 = vmul.f32 %v38_v20, %v38_v20  ;;  %v44_v25 = vmul.f32 %v40_v21, %v40_v21 }
  0x9b   :  { %v48_v26 = vsel %vm19_vm0, %v42_v24, 0.0  ;;  %v54_v27 = vsel %vm19_vm0, %v44_v25, 0.0 }
  0x9c   :  { %52 = vadd.xlane.f32.xlu0 %v51_v23  ;;  %49 = vadd.xlane.f32.xlu1 %v48_v26 }
  0xa0   :  { %55 = vadd.xlane.f32.xlu1 %v54_v27 }
 0x125   :  { %v47_v28 = vpop.xlane.xlu0 %46 }
 0x126   :  { %v57_v29 = vmul.f32 0.03125, %v47_v28 }
 0x128   :  { %v61_v30 = vadd.f32 1e-05, %v57_v29 }
 0x129   :  { %v50_v31 = vpop.xlane.xlu1 %49  ;;  %v53_v32 = vpop.xlane.xlu0 %52 }
 0x12a   :  { %120 = vrsqrt.f32 %v61_v30  ;;  %v58_v33 = vmul.f32 0.03125, %v50_v31  ;;  %v59_v34 = vmul.f32 0.03125, %v53_v32 }
 0x12c   :  { %v62_v35 = vadd.f32 1e-05, %v58_v33  ;;  %v63_v36 = vadd.f32 1e-05, %v59_v34 }
 0x12d   :  { %v56_v37 = vpop.xlane.xlu1 %55 }
 0x12e   :  { %122 = vrsqrt.f32 %v62_v35  ;;  %v60_v38 = vmul.f32 0.03125, %v56_v37 }
 0x12f   :  { %124 = vrsqrt.f32 %v63_v36 }
 0x130   :  { %v64_v39 = vadd.f32 1e-05, %v60_v38 }
 0x132   :  { %126 = vrsqrt.f32 %v64_v39 }
 0x134   :  { %v121_v40 = vpop.eup %120 }
 0x135   :  { %v69_v42 = vmul.f32 %v121_v40, %v37_v12 }
 0x137   :  { %v80_v44 = vmul.f32 %v115_v41, %v69_v42 }
 0x138   :  { %v123_v45 = vpop.eup %122 }
 0x139   :  { %v125_v46 = vpop.eup %124  ;;  %v91_v47 = vadd.f32 %v116_v43, %v80_v44  ;;  %v70_v48 = vmul.f32 %v123_v45, %v38_v20 }
 0x13a   :  { %v71_v49 = vmul.f32 %v125_v46, %v39_v13 }
 0x13b   :  { %95 = vst.msk [vmem:[#allocation2] sm:$0xff] %vm19_vm0, %v91_v47  ;;  %v81_v50 = vmul.f32 %v115_v41, %v70_v48 }
 0x13c   :  { %v127_v51 = vpop.eup %126  ;;  %v82_v52 = vmul.f32 %v115_v41, %v71_v49 }
 0x13d   :  { %v92_v53 = vadd.f32 %v116_v43, %v81_v50  ;;  %v72_v54 = vmul.f32 %v127_v51, %v40_v21 }
 0x13e   :  { %v93_v55 = vadd.f32 %v116_v43, %v82_v52 }
 0x13f   :  { %96 = vst.msk [vmem:[#allocation2 + $0x8] sm:$0xff] %vm19_vm0, %v92_v53  ;;  %v83_v56 = vmul.f32 %v115_v41, %v72_v54 }
 0x140   :  { %97 = vst.msk [vmem:[#allocation2 + $0x10] sm:$0xff] %vm19_vm0, %v93_v55 }
 0x141   :  { %v94_v57 = vadd.f32 %v116_v43, %v83_v56 }
 0x143   :  { %98 = vst.msk [vmem:[#allocation2 + $0x18] sm:$0xff] %vm19_vm0, %v94_v57 }
 0x144   :  { %139 = shalt.err (!%p136_p4)
}
 0x145   :  { %s140_s26 = scalar_lea.hbm %s220_s3, 512 }
 0x146   :  { %p141_p5 = scmp.ne.s32.totalorder %s220_s3, %s140_s26  ;;  %p144_p6 = scmp.lt.u32.totalorder %s140_s26, %s220_s3 }
 0x148   :  { %p146_p7 = pnand %p144_p6, %p141_p5 }
 0x14a   :  { %149 = shalt.err (!%p146_p7)
}
 0x14b   :  { %s153_s4 = smov 128   ;;  %s154_s5 = smov 8  }
 0x14c   :  { %110 = dma.vmem_to_hbm [thread:$0]  %s105_s23, 512, %s220_s3, [#allocation3], %s153_s4, %s153_s4, %s154_s5  }
 0x14d   :  { %150 = dma.done.wait [#allocation3], 512  }
 0x14e   :  { %151 = vsyncadd [#allocation3], 4294966784 }
 0x14f   :  { %114 = vsyncpa [#allocation3], 1 }

// kernel: clip_encoder_forward.11
= control target key start
LH: loop header
LB: loop body
LE: loop exit
PB: predicated region body
PF: predicated region fallthrough
CT: control target
= control target key end

     0   :  { %vm141_vm0 = vcmask 261120   ;;  %s268_s1 = inlined_call_operand.vmem [shape: bf16[128,32], index: 1, kind: input, shape index: {}]   ;;  %s269_s0 = inlined_call_operand.vmem [shape: f32[32,128], index: 0, kind: input, shape index: {}]   ;;  %s270_s2 = inlined_call_operand.vmem [shape: f32[1,32], index: 2, kind: input, shape index: {}]   ;;  %s271_s3 = inlined_call_operand.vmem [shape: f32[32,32], index: 3, kind: output, shape index: {}]  }
   0x1   :  { %v189_v0 = vld [vmem:[%s268_s1] sm:$0xff]   ;;  %v190_v1 = vld [vmem:[%s268_s1 + $0x8] sm:$0xff]   ;;  %v191_v2 = vld [vmem:[%s268_s1 + $0x10] sm:$0xff]  }
   0x2   :  { %169 = vmatprep.subr.bf16.mxu0 %v189_v0  ;;  %v192_v3 = vld [vmem:[%s268_s1 + $0x18] sm:$0xff]   ;;  %v15_v4 = vld [vmem:[%s269_s0] sm:$0xff]  ;;  %v16_v5 = vld [vmem:[%s269_s0 + $0x8] sm:$0xff] }
   0x3   :  { %170 = vmatpush3.bf16.msra.mxu0 %v189_v0  ;;  %v19_v6 = vpack.c.bf16 %v16_v5, %v15_v4  ;;  %v193_v7 = vld [vmem:[%s268_s1 + $0x20] sm:$0xff]   ;;  %v194_v8 = vld [vmem:[%s268_s1 + $0x28] sm:$0xff]   ;;  %v195_v9 = vld [vmem:[%s268_s1 + $0x30] sm:$0xff]  }
   0x4   :  { %171 = vmatprep.subr.bf16.mxu0 %v190_v1  ;;  %v196_v10 = vld [vmem:[%s268_s1 + $0x38] sm:$0xff]   ;;  %v17_v11 = vld [vmem:[%s269_s0 + $0x10] sm:$0xff]  ;;  %v150_v14 = vld [vmem:[%s270_s2] ss:$0 sm:$0xff] }
   0x5   :  { %185 = vmatprep.mubr.bf16.mxu0 %v19_v6  ;;  %v18_v12 = vld [vmem:[%s269_s0 + $0x18] sm:$0xff] }
   0x6   :  { %v20_v13 = vpack.c.bf16 %v18_v12, %v17_v11 }
   0x7   :  { %172 = vmatpush3.bf16.msra.mxu0 %v190_v1 }
   0x8   :  { %173 = vmatprep.subr.bf16.mxu0 %v191_v2 }
   0xb   :  { %174 = vmatpush3.bf16.msra.mxu0 %v191_v2 }
   0xc   :  { %175 = vmatprep.subr.bf16.mxu0 %v192_v3 }
   0xf   :  { %176 = vmatpush3.bf16.msra.mxu0 %v192_v3 }
  0x10   :  { %177 = vmatprep.subr.bf16.mxu0 %v193_v7 }
  0x13   :  { %178 = vmatpush3.bf16.msra.mxu0 %v193_v7 }
  0x14   :  { %179 = vmatprep.subr.bf16.mxu0 %v194_v8 }
  0x17   :  { %180 = vmatpush3.bf16.msra.mxu0 %v194_v8 }
  0x18   :  { %181 = vmatprep.subr.bf16.mxu0 %v195_v9 }
  0x1b   :  { %182 = vmatpush3.bf16.msra.mxu0 %v195_v9 }
  0x1c   :  { %183 = vmatprep.subr.bf16.mxu0 %v196_v10 }
  0x1f   :  { %184 = vmatpush3.bf16.msra.mxu0 %v196_v10 }
  0x22   :  { %186 = vmatmul.mubr.bf16.vlgmr.msra.gmra.mrb[0].mxu0 %v20_v13 }
  0xf5   :  { %v187_v15 = vpop.f32.mrb[0].mxu0 }
  0xf6   :  { %v135_v16 = vadd.f32 %v187_v15, %v150_v14  ;;  %v126_v17 = vpop.f32.mrb[1].mxu0 }
  0xf7   :  { %v127_v18 = vadd.f32 %v150_v14, %v126_v17  ;;  %v188_v19 = vpop.f32.mrb[2].mxu0 }
  0xf8   :  { %144 = vst.msk [vmem:[%s271_s3 + $0x10] sm:$0xff] %vm141_vm0, %v135_v16  ;;  %v138_v20 = vadd.f32 %v188_v19, %v150_v14  ;;  %v129_v21 = vpop.f32.mrb[3].mxu0 }
  0xf9   :  { %142 = vst.msk [vmem:[%s271_s3] sm:$0xff] %vm141_vm0, %v127_v18  ;;  %v130_v22 = vadd.f32 %v150_v14, %v129_v21 }
  0xfa   :  { %145 = vst.msk [vmem:[%s271_s3 + $0x18] sm:$0xff] %vm141_vm0, %v138_v20 }
  0xfb   :  { %143 = vst.msk [vmem:[%s271_s3 + $0x8] sm:$0xff] %vm141_vm0, %v130_v22 }

// kernel: clip_encoder_forward.13
= control target key start
LH: loop header
LB: loop body
LE: loop exit
PB: predicated region body
PF: predicated region fallthrough
CT: control target
= control target key end

     0   :  { %s2179_s25 = smov 0   ;;  %s2438_s0 = inlined_call_operand.vmem [shape: f32[2,17,32], index: 0, kind: input, shape index: {}]   ;;  %s2439_s1 = inlined_call_operand.vmem [shape: f32[1,32], index: 1, kind: input, shape index: {}]   ;;  %s2440_s2 = inlined_call_operand.vmem [shape: f32[1,32], index: 2, kind: input, shape index: {}]   ;;  %s2441_s3 = inlined_call_operand.vmem [shape: bf16[32,96], index: 3, kind: input, shape index: {}]   ;;  %s2442_s4 = inlined_call_operand.vmem [shape: f32[1,96], index: 4, kind: input, shape index: {}]   ;;  %s2443_s5 = inlined_call_operand.vmem [shape: bf16[32,32], index: 5, kind: input, shape index: {}]   ;;  %s2444_s6 = inlined_call_operand.vmem [shape: f32[1,32], index: 6, kind: input, shape index: {}]   ;;  %s2445_s7 = inlined_call_operand.vmem [shape: f32[1,32], index: 7, kind: input, shape index: {}]   ;;  %s2446_s8 = inlined_call_operand.vmem [shape: f32[1,32], index: 8, kind: input, shape index: {}]   ;;  %s2447_s9 = inlined_call_operand.vmem [shape: bf16[32,128], index: 9, kind: input, shape index: {}]   ;;  %s2448_s10 = inlined_call_operand.vmem [shape: f32[1,128], index: 10, kind: input, shape index: {}]   ;;  %s2449_s11 = inlined_call_operand.vmem [shape: bf16[128,32], index: 11, kind: input, shape index: {}]   ;;  %s2450_s12 = inlined_call_operand.vmem [shape: f32[1,32], index: 12, kind: input, shape index: {}]   ;;  %s2451_s13 = inlined_call_operand.vmem [shape: f32[2,17,32], index: 13, kind: output, shape index: {}]  }
   0x1 LB: > { %s1735_s26 = sadd.s32 4294967295, %s2092_s25   ;;  %p1739_p0 = scmp.ge.s32.totalorder %s2092_s25, 1  ;;  %s2092_s25 = sphi %s2179_s25, %s23_s25  }
   0x2   : > { %p387_p1 = scmp.lt.s32.totalorder %s2092_s25, 3 }
   0x4   : > { %p388_p2 = pnand %p1739_p0, %p387_p1 }
   0x5   : > { %p431_p3 = scmp.lt.s32.totalorder (!%p388_p2), %s1735_s26, 1  ;;  %vm445_vm0 = vcmask (!%p388_p2), 261120   ;;  %vm452_vm1 = vcmask (!%p388_p2), 253952   ;;  %v2000_v21 = vld [vmem:[%s2441_s3] sm:$0xff] (!%p388_p2)   ;;  %v2001_v22 = vld [vmem:[%s2441_s3 + $0x8] sm:$0xff] (!%p388_p2)   ;;  %s2094_s24 = smov (!%p388_p2), 96  }
   0x6   : > { %391 = sbr.rel (%p388_p2) target bundleno = 4226 (0x1082), region = 72  ;;  %1845 = vmatprep.subr.bf16.mxu0 (!%p388_p2), %v2000_v21  ;;  %v1742_v34 = vld [vmem:[%s2439_s1] ss:$0 sm:$0xff] (!%p388_p2)  ;;  %vm599_vm2 = vcmask (!%p388_p2), 64512   ;;  %vm660_vm3 = vcmask (!%p388_p2), 138240   ;;  %vm667_vm4 = vcmask (!%p388_p2), 131072  }
   0x7   : > { %1846 = vmatpush3.bf16.msra.mxu0 (!%p388_p2), %v2000_v21  ;;  %v1743_v40 = vld [vmem:[%s2440_s2] ss:$0 sm:$0xff] (!%p388_p2)  ;;  %s2095_s28 = smov (!%p388_p2), 64   ;;  %s2096_s29 = smov (!%p388_p2), 120   ;;  %vm708_vm5 = vcmask (!%p388_p2), 1040384   ;;  %vm1298_vm6 = vcmask (!%p388_p2), 130048  }
   0x8   : > { %1847 = vmatprep.subr.bf16.mxu0 (!%p388_p2), %v2001_v22  ;;  %v1744_v48 = vld [vmem:[%s2442_s4] ss:$0 sm:$0xff] (!%p388_p2)  ;;  %s2099_s14 = smov (!%p388_p2), 56   ;;  %s2100_s15 = smov (!%p388_p2), 80   ;;  %vm1302_vm7 = vcmask (!%p388_p2), 195584  }
   0x9   : > { %s2101_s16 = smov (!%p388_p2), 112   ;;  %s2102_s17 = smov (!%p388_p2), 48  }
   0xa   : > { %s2103_s18 = smov (!%p388_p2), 72   ;;  %s2104_s19 = smov (!%p388_p2), 104  }
   0xb   : > { %1848 = vmatpush3.bf16.msra.mxu0 (!%p388_p2), %v2001_v22  ;;  %s2105_s20 = smov (!%p388_p2), 40   ;;  %s2106_s21 = smov (!%p388_p2), 8  }
   0xc   : > { %s2107_s22 = smov (!%p388_p2), 16  }
   0xd   : > { %s2453_s26 = smov (!%p431_p3, %s1735_s26), 1 }
   0xe   : > { %s1961_s27 = smul.u32 24, %s2453_s26 }
  0x10   : > { %s435_s30 = scalar_lea.vmem %s2438_s0, %s1961_s27 }
  0x11   : > { %v2195_v0 = vld [vmem:[%s435_s30] sm:$0xff]  ;;  %v2197_v1 = vld [vmem:[%s435_s30 + $0x10] sm:$0x1]  ;;  %v2199_v2 = vld [vmem:[%s435_s30 + $0x8] sm:$0xff]  ;;  %s2097_s30 = smov 88  }
  0x12   : > { %v446_v3 = vsel %vm445_vm0, %v2195_v0, 0.0  ;;  %v453_v4 = vsel %vm452_vm1, %v2197_v1, 0.0  ;;  %v449_v5 = vsel %vm445_vm0, %v2199_v2, 0.0 }
  0x13   : > { %447 = vadd.xlane.f32.xlu0 %v446_v3  ;;  %454 = vadd.xlane.f32.xlu1 %v453_v4 }
  0x17   : > { %450 = vadd.xlane.f32.xlu0 %v449_v5 }
  0xa0   : > { %v448_v6 = vpop.xlane.xlu0 %447  ;;  %v455_v7 = vpop.xlane.xlu1 %454 }
  0xa1   : > { %v457_v8 = vmul.f32 0.03125, %v448_v6  ;;  %v459_v9 = vmul.f32 0.03125, %v455_v7 }
  0xa3   : > { %v460_v10 = vsub.f32 %v2195_v0, %v457_v8  ;;  %v462_v11 = vsub.f32 %v2197_v1, %v459_v9 }
  0xa4   : > { %v451_v12 = vpop.xlane.xlu0 %450 }
  0xa5   : > { %v458_v13 = vmul.f32 0.03125, %v451_v12  ;;  %v463_v14 = vmul.f32 %v460_v10, %v460_v10  ;;  %v465_v15 = vmul.f32 %v462_v11, %v462_v11 }
  0xa7   : > { %v461_v16 = vsub.f32 %v2199_v2, %v458_v13  ;;  %v466_v17 = vsel %vm445_vm0, %v463_v14, 0.0  ;;  %v472_v18 = vsel %vm452_vm1, %v465_v15, 0.0 }
  0xa8   : > { %467 = vadd.xlane.f32.xlu1 %v466_v17 }
  0xa9   : > { %v464_v19 = vmul.f32 %v461_v16, %v461_v16 }
  0xab   : > { %v469_v20 = vsel %vm445_vm0, %v464_v19, 0.0 }
  0xac   : > { %473 = vadd.xlane.f32.xlu1 %v472_v18  ;;  %470 = vadd.xlane.f32.xlu0 %v469_v20 }
 0x135   : > { %v468_v23 = vpop.xlane.xlu1 %467 }
 0x136   : > { %v475_v24 = vmul.f32 0.03125, %v468_v23 }
 0x138   : > { %v478_v25 = vadd.f32 1e-05, %v475_v24 }
 0x139   : > { %v474_v26 = vpop.xlane.xlu1 %473  ;;  %v471_v27 = vpop.xlane.xlu0 %470 }
 0x13a   : > { %2014 = vrsqrt.f32 %v478_v25  ;;  %v477_v28 = vmul.f32 0.03125, %v474_v26  ;;  %v476_v29 = vmul.f32 0.03125, %v471_v27 }
 0x13c   : > { %v480_v30 = vadd.f32 1e-05, %v477_v28  ;;  %v479_v31 = vadd.f32 1e-05, %v476_v29 }
 0x13e   : > { %2016 = vrsqrt.f32 %v480_v30 }
 0x13f   : > { %2018 = vrsqrt.f32 %v479_v31 }
 0x144   : > { %v2015_v32 = vpop.eup %2014 }
 0x145   : > { %v484_v33 = vmul.f32 %v2015_v32, %v460_v10  ;;  %v2098_v32 = vmov 0  }
 0x147   : > { %v494_v39 = vmul.f32 %v1742_v34, %v484_v33  ;;  %v2260_v33 = vsel %vm708_vm5, 65535, %v2098_v32 }
 0x148   : > { %v2017_v35 = vpop.eup %2016 }
 0x149   : > { %v2019_v36 = vpop.eup %2018  ;;  %v486_v37 = vmul.f32 %v2017_v35, %v462_v11  ;;  %v504_v44 = vadd.f32 %v1743_v40, %v494_v39 }
 0x14a   : > { %v485_v38 = vmul.f32 %v2019_v36, %v461_v16 }
 0x14b   : > { %v496_v41 = vmul.f32 %v1742_v34, %v486_v37 }
 0x14c   : > { %v495_v42 = vmul.f32 %v1742_v34, %v485_v38 }
 0x14d   : > { %v506_v43 = vadd.f32 %v1743_v40, %v496_v41 }
 0x14e   : > { %v505_v45 = vadd.f32 %v1743_v40, %v495_v42 }
 0x14f   : > { %v508_v46 = vpack.c.bf16 %v506_v43, %v506_v43 }
 0x150   : > { %v507_v47 = vpack.c.bf16 %v505_v45, %v504_v44 }
 0x152   : > { %1849 = vmatprep.mubr.msk.bf16.mxu0 %vm445_vm0, %v507_v47 }
 0x153   : > { %1850 = vmatmul.mubr.msk.bf16.vlgmr.msra.gmra.mrb[0].mxu0 %vm445_vm0, %v508_v46 }
 0x226   : > { %v1851_v49 = vpop.f32.mrb[0].mxu0 }
 0x227   : > { %v581_v50 = vadd.f32 %v1851_v49, %v1744_v48  ;;  %v572_v51 = vpop.f32.mrb[1].mxu0 }
 0x228   : > { %v573_v52 = vadd.f32 %v1744_v48, %v572_v51  ;;  %v1852_v53 = vpop.f32.mrb[2].mxu0 }
 0x229   : > { %v2230_v54 = vpack.c.bf16 %v581_v50, %v581_v50  ;;  %v575_v55 = vpop.f32.mrb[3].mxu0  ;;  %v588_v4 = vmul.f32 0.35355338, %v581_v50 }
 0x22a   : > { %v576_v56 = vadd.f32 %v1744_v48, %v575_v55  ;;  %v586_v57 = vmul.f32 0.35355338, %v573_v52 }
 0x22b   : > { %597 = vrot.lane.b32.xlu1 %v2230_v54, %s2094_s24  ;;  %v2244_v5 = vpack.c.bf16 %v588_v4, %v588_v4 }
 0x22c   : > { %v587_v58 = vmul.f32 0.35355338, %v576_v56  ;;  %v2233_v59 = vpack.c.bf16 %v576_v56, %v573_v52 }
 0x22e   : > { %v2235_v60 = vpack.c.bf16 %v587_v58, %v586_v57  ;;  %595 = vrot.lane.b32.xlu0 %v2233_v59, %s2094_s24 }
 0x230   : > { %1857 = vmatprep.mubr.msk.bf16.mxu0 %vm599_vm2, %v2235_v60 }
 0x29d   : > { %v598_v63 = vpop.permute.xlu1 %597 }
 0x29e   : > { %v610_v3 = vsel %vm599_vm2, %v598_v63, 0 }
 0x2a0   : > { %v596_v61 = vpop.permute.xlu0 %595 }
 0x2a1   : > { %v607_v62 = vsel %vm599_vm2, %v596_v61, 0  ;;  %1953 = vmatprep.subr.msk.bf16.mxu0 %vm599_vm2, %v596_v61 }
 0x2a2   : > { %1854 = vmatpush3.bf16.xpose.msra.mxu0 %v607_v62 }
 0x2a3   : > { %1954 = vmatprep.subr.msk.bf16.mxu0 %vm599_vm2, %v598_v63 }
 0x2aa   : > { %1856 = vmatpush3.bf16.xpose.msra.mxu0 %v610_v3 }
 0x2b1   : > { %1858 = vmatmul.mubr.msk.bf16.vlgmr.msra.gmra.mrb[4].mxu0 %vm599_vm2, %v2244_v5 }
 0x384   : > { %v1859_v6 = vpop.f32.mrb[4].mxu0 }
 0x385   : > { %v646_v7 = vpop.f32.mrb[5].mxu0  ;;  %v668_v12 = vsel %vm667_vm4, %v1859_v6, -inf }
 0x386   : > { %v1860_v8 = vpop.f32.mrb[6].mxu0  ;;  %v661_v9 = vsel %vm660_vm3, %v646_v7, -inf }
 0x387   : > { %662 = vmax.xlane.f32.xlu1 %v661_v9  ;;  %v649_v10 = vpop.f32.mrb[7].mxu0 }
 0x388   : > { %v664_v11 = vsel %vm660_vm3, %v649_v10, -inf }
 0x389   : > { %665 = vmax.xlane.f32.xlu0 %v664_v11 }
 0x38d   : > { %669 = vmax.xlane.f32.xlu0 %v668_v12 }
 0x414   : > { %v663_v13 = vpop.xlane.xlu1 %662 }
 0x415   : > { %v671_v16 = vsub.f32 %v646_v7, %v663_v13 }
 0x416   : > { %v666_v14 = vpop.xlane.xlu0 %665 }
 0x417   : > { %v672_v15 = vsub.f32 %v649_v10, %v666_v14  ;;  %v674_v20 = vmul.f32 1.442695, %v671_v16 }
 0x419   : > { %v676_v17 = vmul.f32 1.442695, %v672_v15 }
 0x41a   : > { %v670_v18 = vpop.xlane.xlu0 %669 }
 0x41b   : > { %2020 = vpow2.f32 %v676_v17  ;;  %v673_v19 = vsub.f32 %v1859_v6, %v670_v18 }
 0x41d   : > { %v678_v21 = vmul.f32 1.442695, %v673_v19 }
 0x41f   : > { %2022 = vpow2.f32 %v678_v21 }
 0x420   : > { %2024 = vpow2.f32 %v674_v20 }
 0x425   : > { %v2021_v22 = vpop.eup %2020 }
 0x426   : > { %v683_v23 = vsel %vm660_vm3, %v2021_v22, 0.0 }
 0x427   : > { %684 = vadd.xlane.f32.xlu0 %v683_v23 }
 0x429   : > { %v2023_v24 = vpop.eup %2022 }
 0x42a   : > { %v686_v25 = vsel %vm667_vm4, %v2023_v24, 0.0  ;;  %v2025_v26 = vpop.eup %2024 }
 0x42b   : > { %687 = vadd.xlane.f32.xlu1 %v686_v25  ;;  %v680_v27 = vsel %vm660_vm3, %v2025_v26, 0.0 }
 0x42f   : > { %681 = vadd.xlane.f32.xlu1 %v680_v27 }
 0x43d   : > { %697 = vrot.lane.b32.xlu0 %v2233_v59, %s2095_s28 }
 0x440   : > { %699 = vrot.lane.b32.xlu1 %v2230_v54, %s2095_s28 }
 0x441   : > { %764 = vrot.lane.b32.xlu0 %v2235_v60, %s2096_s29 }
 0x444   : > { %768 = vrot.lane.b32.xlu1 %v2233_v59, %s2097_s30 }
 0x448   : > { %770 = vrot.lane.b32.xlu1 %v2230_v54, %s2097_s30  ;;  %s2108_s30 = smov 24  }
 0x44c   : > { %766 = vrot.lane.b32.xlu1 %v2244_v5, %s2096_s29 }
 0x4b4   : > { %v685_v28 = vpop.xlane.xlu0 %684 }
 0x4b8   : > { %v688_v29 = vpop.xlane.xlu1 %687  ;;  %v698_v30 = vpop.permute.xlu0 %697 }
 0x4b9   : > { %1861 = vmatprep.subr.bf16.mxu0 %v698_v30  ;;  %2026 = vrcp.f32 %v688_v29 }
 0x4ba   : > { %1862 = vmatpush3.bf16.msra.mxu0 %v698_v30  ;;  %2028 = vrcp.f32 %v685_v28 }
 0x4bc   : > { %v682_v31 = vpop.xlane.xlu1 %681  ;;  %v765_v45 = vpop.permute.xlu0 %764 }
 0x4bd   : > { %2030 = vrcp.f32 %v682_v31 }
 0x4c0   : > { %v700_v34 = vpop.permute.xlu1 %699 }
 0x4c1   : > { %v712_v35 = vand.u32 %v2260_v33, %v700_v34 }
 0x4c3   : > { %1863 = vmatprep.subr.bf16.mxu0 %v712_v35  ;;  %v2027_v36 = vpop.eup %2026 }
 0x4c4   : > { %v769_v37 = vpop.permute.xlu1 %768  ;;  %1864 = vmatpush3.bf16.msra.mxu0 %v712_v35  ;;  %v2029_v38 = vpop.eup %2028  ;;  %v694_v40 = vmul.f32 %v2027_v36, %v2023_v24 }
 0x4c5   : > { %1955 = vmatprep.subr.msk.bf16.mxu0 %vm599_vm2, %v769_v37  ;;  %v693_v42 = vmul.f32 %v2029_v38, %v2021_v22  ;;  %v779_v46 = vsel %vm599_vm2, %v769_v37, 0 }
 0x4c6   : > { %v696_v44 = vpack.c.bf16 %v694_v40, %v694_v40 }
 0x4c7   : > { %v2031_v39 = vpop.eup %2030 }
 0x4c8   : > { %v692_v41 = vmul.f32 %v2031_v39, %v2025_v26  ;;  %v771_v47 = vpop.permute.xlu1 %770 }
 0x4c9   : > { %v782_v48 = vsel %vm599_vm2, %v771_v47, 0 }
 0x4ca   : > { %v695_v43 = vpack.c.bf16 %v693_v42, %v692_v41 }
 0x4cc   : > { %1865 = vmatprep.mubr.msk.bf16.mxu0 %vm660_vm3, %v695_v43  ;;  %v767_v49 = vpop.permute.xlu1 %766 }
 0x4cd   : > { %1866 = vmatmul.mubr.msk.bf16.vlgmr.msra.gmra.mrb[8].mxu0 %vm660_vm3, %v696_v44 }
 0x4ce   : > { %1870 = vmatpush3.bf16.xpose.msra.mxu0 %v779_v46  ;;  %1873 = vmatprep.mubr.msk.bf16.mxu0 %vm599_vm2, %v765_v45 }
 0x4cf   : > { %1956 = vmatprep.subr.msk.bf16.mxu0 %vm599_vm2, %v771_v47 }
 0x4d6   : > { %1872 = vmatpush3.bf16.xpose.msra.mxu0 %v782_v48 }
 0x4dd   : > { %1874 = vmatmul.mubr.msk.bf16.vlgmr.msra.gmra.mrb[12].mxu0 %vm599_vm2, %v767_v49 }
 0x5a0   : > { %v2271_v50 = vpop.f32.mrb[8].mxu0 }
 0x5a1   : > { %v2273_v51 = vpop.f32.mrb[9].mxu0 }
 0x5a2   : > { %v1868_v52 = vpop.f32.mrb[10].mxu0 }
 0x5a3   : > { %v2275_v53 = vpop.f32.mrb[11].mxu0 }
 0x5b0   : > { %v1875_v55 = vpop.f32.mrb[12].mxu0 }
 0x5b1   : > { %v818_v56 = vpop.f32.mrb[13].mxu0  ;;  %v838_v63 = vsel %vm667_vm4, %v1875_v55, -inf }
 0x5b2   : > { %v1876_v57 = vpop.f32.mrb[14].mxu0  ;;  %v832_v58 = vsel %vm660_vm3, %v818_v56, -inf }
 0x5b3   : > { %833 = vmax.xlane.f32.xlu0 %v832_v58  ;;  %v821_v61 = vpop.f32.mrb[15].mxu0 }
 0x5b4   : > { %v835_v62 = vsel %vm660_vm3, %v821_v61, -inf }
 0x5b5   : > { %836 = vmax.xlane.f32.xlu1 %v835_v62 }
 0x5b7   : > { %839 = vmax.xlane.f32.xlu0 %v838_v63 }
 0x640   : > { %v834_v3 = vpop.xlane.xlu0 %833 }
 0x641   : > { %v841_v4 = vsub.f32 %v818_v56, %v834_v3 }
 0x642   : > { %v837_v6 = vpop.xlane.xlu1 %836 }
 0x643   : > { %v844_v7 = vmul.f32 1.442695, %v841_v4  ;;  %v842_v8 = vsub.f32 %v821_v61, %v837_v6 }
 0x644   : > { %v840_v9 = vpop.xlane.xlu0 %839 }
 0x645   : > { %2032 = vpow2.f32 %v844_v7  ;;  %v846_v10 = vmul.f32 1.442695, %v842_v8  ;;  %v843_v11 = vsub.f32 %v1875_v55, %v840_v9 }
 0x647   : > { %2034 = vpow2.f32 %v846_v10  ;;  %v848_v12 = vmul.f32 1.442695, %v843_v11 }
 0x649   : > { %2036 = vpow2.f32 %v848_v12 }
 0x64f   : > { %v2033_v13 = vpop.eup %2032 }
 0x650   : > { %v850_v14 = vsel %vm660_vm3, %v2033_v13, 0.0 }
 0x651   : > { %v2035_v15 = vpop.eup %2034  ;;  %851 = vadd.xlane.f32.xlu0 %v850_v14 }
 0x652   : > { %v853_v18 = vsel %vm660_vm3, %v2035_v15, 0.0 }
 0x653   : > { %v2037_v16 = vpop.eup %2036 }
 0x654   : > { %v856_v17 = vsel %vm667_vm4, %v2037_v16, 0.0 }
 0x655   : > { %857 = vadd.xlane.f32.xlu1 %v856_v17  ;;  %854 = vadd.xlane.f32.xlu0 %v853_v18 }
 0x666   : > { %869 = vrot.lane.b32.xlu1 %v2230_v54, %s2099_s14 }
 0x66a   : > { %933 = vrot.lane.b32.xlu1 %v2233_v59, %s2100_s15 }
 0x66b   : > { %867 = vrot.lane.b32.xlu0 %v2233_v59, %s2099_s14 }
 0x66e   : > { %935 = vrot.lane.b32.xlu1 %v2230_v54, %s2100_s15 }
 0x66f   : > { %929 = vrot.lane.b32.xlu0 %v2235_v60, %s2101_s16 }
 0x672   : > { %931 = vrot.lane.b32.xlu1 %v2244_v5, %s2101_s16 }
 0x6de   : > { %v852_v19 = vpop.xlane.xlu0 %851 }
 0x6df   : > { %2038 = vrcp.f32 %v852_v19 }
 0x6e2   : > { %v855_v20 = vpop.xlane.xlu0 %854  ;;  %v858_v21 = vpop.xlane.xlu1 %857 }
 0x6e3   : > { %2040 = vrcp.f32 %v855_v20 }
 0x6e4   : > { %2042 = vrcp.f32 %v858_v21 }
 0x6e6   : > { %v868_v22 = vpop.permute.xlu0 %867  ;;  %v870_v23 = vpop.permute.xlu1 %869 }
 0x6e7   : > { %v879_v24 = vand.u32 %v870_v23, %v2260_v33  ;;  %1877 = vmatprep.subr.bf16.mxu1 %v868_v22 }
 0x6e8   : > { %1878 = vmatpush3.bf16.msra.mxu1 %v868_v22 }
 0x6e9   : > { %1879 = vmatprep.subr.bf16.mxu1 %v879_v24  ;;  %v2039_v25 = vpop.eup %2038 }
 0x6ea   : > { %v934_v26 = vpop.permute.xlu1 %933  ;;  %v862_v29 = vmul.f32 %v2039_v25, %v2033_v13  ;;  %v930_v35 = vpop.permute.xlu0 %929 }
 0x6eb   : > { %v944_v36 = vsel %vm599_vm2, %v934_v26, 0 }
 0x6ec   : > { %1880 = vmatpush3.bf16.msra.mxu1 %v879_v24 }
 0x6ed   : > { %v2041_v27 = vpop.eup %2040  ;;  %1957 = vmatprep.subr.msk.bf16.mxu1 %vm599_vm2, %v934_v26 }
 0x6ee   : > { %v2043_v28 = vpop.eup %2042  ;;  %v863_v30 = vmul.f32 %v2041_v27, %v2035_v15  ;;  %v936_v37 = vpop.permute.xlu1 %935 }
 0x6ef   : > { %v864_v31 = vmul.f32 %v2043_v28, %v2037_v16  ;;  %v947_v38 = vsel %vm599_vm2, %v936_v37, 0 }
 0x6f0   : > { %v865_v32 = vpack.c.bf16 %v863_v30, %v862_v29 }
 0x6f1   : > { %v866_v34 = vpack.c.bf16 %v864_v31, %v864_v31 }
 0x6f2   : > { %1881 = vmatprep.mubr.msk.bf16.mxu1 %vm660_vm3, %v865_v32  ;;  %v932_v39 = vpop.permute.xlu1 %931 }
 0x6f3   : > { %1882 = vmatmul.mubr.msk.bf16.vlgmr.msra.gmra.mrb[0].mxu1 %vm660_vm3, %v866_v34 }
 0x6f4   : > { %1889 = vmatprep.mubr.msk.bf16.mxu1 %vm599_vm2, %v930_v35 }
 0x6f5   : > { %1886 = vmatpush3.bf16.xpose.msra.mxu1 %v944_v36 }
 0x6f6   : > { %1958 = vmatprep.subr.msk.bf16.mxu1 %vm599_vm2, %v936_v37 }
 0x6fd   : > { %1888 = vmatpush3.bf16.xpose.msra.mxu1 %v947_v38 }
 0x704   : > { %1890 = vmatmul.mubr.msk.bf16.vlgmr.msra.gmra.mrb[4].mxu1 %vm599_vm2, %v932_v39 }
 0x7c6   : > { %v2298_v40 = vpop.f32.mrb[0].mxu1 }
 0x7c7   : > { %v2300_v41 = vpop.f32.mrb[1].mxu1 }
 0x7c8   : > { %v1884_v42 = vpop.f32.mrb[2].mxu1 }
 0x7c9   : > { %v2302_v43 = vpop.f32.mrb[3].mxu1 }
 0x7ca   : > { %v1985_v44 = vpack.i.bf16 %v2302_v43, %v2300_v41 }
 0x7d7   : > { %v1891_v45 = vpop.f32.mrb[4].mxu1 }
 0x7d8   : > { %v983_v46 = vpop.f32.mrb[5].mxu1  ;;  %v1003_v55 = vsel %vm667_vm4, %v1891_v45, -inf }
 0x7d9   : > { %v1892_v47 = vpop.f32.mrb[6].mxu1  ;;  %v997_v48 = vsel %vm660_vm3, %v983_v46, -inf }
 0x7da   : > { %998 = vmax.xlane.f32.xlu0 %v997_v48  ;;  %v986_v49 = vpop.f32.mrb[7].mxu1 }
 0x7db   : > { %v1000_v52 = vsel %vm660_vm3, %v986_v49, -inf }
 0x7dc   : > { %1001 = vmax.xlane.f32.xlu1 %v1000_v52 }
 0x7de   : > { %1004 = vmax.xlane.f32.xlu0 %v1003_v55 }
 0x867   : > { %v999_v56 = vpop.xlane.xlu0 %998 }
 0x868   : > { %v1006_v57 = vsub.f32 %v983_v46, %v999_v56 }
 0x869   : > { %v1002_v58 = vpop.xlane.xlu1 %1001 }
 0x86a   : > { %v1009_v61 = vmul.f32 1.442695, %v1006_v57  ;;  %v1007_v62 = vsub.f32 %v986_v49, %v1002_v58 }
 0x86b   : > { %v1005_v63 = vpop.xlane.xlu0 %1004 }
 0x86c   : > { %2044 = vpow2.f32 %v1009_v61  ;;  %v1011_v3 = vmul.f32 1.442695, %v1007_v62  ;;  %v1008_v4 = vsub.f32 %v1891_v45, %v1005_v63 }
 0x86e   : > { %2046 = vpow2.f32 %v1011_v3  ;;  %v1013_v6 = vmul.f32 1.442695, %v1008_v4 }
 0x870   : > { %2048 = vpow2.f32 %v1013_v6 }
 0x876   : > { %v2045_v7 = vpop.eup %2044 }
 0x877   : > { %v1015_v8 = vsel %vm660_vm3, %v2045_v7, 0.0 }
 0x878   : > { %v2047_v9 = vpop.eup %2046  ;;  %1016 = vadd.xlane.f32.xlu0 %v1015_v8 }
 0x879   : > { %v1018_v12 = vsel %vm660_vm3, %v2047_v9, 0.0 }
 0x87a   : > { %v2049_v10 = vpop.eup %2048 }
 0x87b   : > { %v1021_v11 = vsel %vm667_vm4, %v2049_v10, 0.0 }
 0x87c   : > { %1022 = vadd.xlane.f32.xlu1 %v1021_v11  ;;  %1019 = vadd.xlane.f32.xlu0 %v1018_v12 }
 0x88d   : > { %1034 = vrot.lane.b32.xlu1 %v2230_v54, %s2102_s17 }
 0x891   : > { %1098 = vrot.lane.b32.xlu1 %v2233_v59, %s2103_s18 }
 0x892   : > { %1032 = vrot.lane.b32.xlu0 %v2233_v59, %s2102_s17 }
 0x895   : > { %1100 = vrot.lane.b32.xlu1 %v2230_v54, %s2103_s18  ;;  %s440_s18 = scalar_lea.vmem %s2451_s13, %s1961_s27 }
 0x896   : > { %1094 = vrot.lane.b32.xlu0 %v2235_v60, %s2104_s19 }
 0x899   : > { %1096 = vrot.lane.b32.xlu1 %v2244_v5, %s2104_s19 }
 0x905   : > { %v1017_v13 = vpop.xlane.xlu0 %1016 }
 0x906   : > { %2050 = vrcp.f32 %v1017_v13 }
 0x909   : > { %v1020_v14 = vpop.xlane.xlu0 %1019  ;;  %v1023_v15 = vpop.xlane.xlu1 %1022 }
 0x90a   : > { %2052 = vrcp.f32 %v1020_v14 }
 0x90b   : > { %2054 = vrcp.f32 %v1023_v15 }
 0x90d   : > { %v1033_v16 = vpop.permute.xlu0 %1032  ;;  %v1035_v17 = vpop.permute.xlu1 %1034 }
 0x90e   : > { %v1044_v18 = vand.u32 %v1035_v17, %v2260_v33  ;;  %1893 = vmatprep.subr.bf16.mxu0 %v1033_v16  ;;  %v2003_v17 = vld [vmem:[%s2443_s5 + $0x8] sm:$0xff]  }
 0x90f   : > { %1894 = vmatpush3.bf16.msra.mxu0 %v1033_v16 }
 0x910   : > { %1895 = vmatprep.subr.bf16.mxu0 %v1044_v18  ;;  %v2051_v19 = vpop.eup %2050 }
 0x911   : > { %v1099_v20 = vpop.permute.xlu1 %1098  ;;  %v1027_v5 = vmul.f32 %v2051_v19, %v2045_v7  ;;  %v1095_v26 = vpop.permute.xlu0 %1094 }
 0x912   : > { %v1109_v27 = vsel %vm599_vm2, %v1099_v20, 0 }
 0x913   : > { %1896 = vmatpush3.bf16.msra.mxu0 %v1044_v18 }
 0x914   : > { %v2053_v21 = vpop.eup %2052  ;;  %1959 = vmatprep.subr.msk.bf16.mxu0 %vm599_vm2, %v1099_v20 }
 0x915   : > { %v2055_v60 = vpop.eup %2054  ;;  %v1028_v22 = vmul.f32 %v2053_v21, %v2047_v9  ;;  %v1101_v28 = vpop.permute.xlu1 %1100 }
 0x916   : > { %v1029_v23 = vmul.f32 %v2055_v60, %v2049_v10  ;;  %v1112_v29 = vsel %vm599_vm2, %v1101_v28, 0 }
 0x917   : > { %v1030_v24 = vpack.c.bf16 %v1028_v22, %v1027_v5 }
 0x918   : > { %v1031_v25 = vpack.c.bf16 %v1029_v23, %v1029_v23 }
 0x919   : > { %1897 = vmatprep.mubr.msk.bf16.mxu0 %vm660_vm3, %v1030_v24  ;;  %v1097_v30 = vpop.permute.xlu1 %1096 }
 0x91a   : > { %1898 = vmatmul.mubr.msk.bf16.vlgmr.msra.gmra.mrb[16].mxu0 %vm660_vm3, %v1031_v25 }
 0x91b   : > { %1905 = vmatprep.mubr.msk.bf16.mxu0 %vm599_vm2, %v1095_v26 }
 0x91c   : > { %1902 = vmatpush3.bf16.xpose.msra.mxu0 %v1109_v27 }
 0x91d   : > { %1960 = vmatprep.subr.msk.bf16.mxu0 %vm599_vm2, %v1101_v28 }
 0x924   : > { %1904 = vmatpush3.bf16.xpose.msra.mxu0 %v1112_v29 }
 0x92b   : > { %1906 = vmatmul.mubr.msk.bf16.vlgmr.msra.gmra.mrb[20].mxu0 %vm599_vm2, %v1097_v30 }
 0x9ed   : > { %v1899_v31 = vpop.f32.mrb[16].mxu0 }
 0x9ee   : > { %v1080_v32 = vpop.f32.mrb[17].mxu0 }
 0x9ef   : > { %v1900_v34 = vpop.f32.mrb[18].mxu0 }
 0x9f0   : > { %v1083_v35 = vpop.f32.mrb[19].mxu0 }
 0x9f1   : > { %v1990_v36 = vpack.i.bf16 %v1083_v35, %v1080_v32 }
 0x9fe   : > { %v1907_v37 = vpop.f32.mrb[20].mxu0 }
 0x9ff   : > { %v1148_v38 = vpop.f32.mrb[21].mxu0  ;;  %v1168_v47 = vsel %vm667_vm4, %v1907_v37, -inf }
 0xa00   : > { %v1908_v39 = vpop.f32.mrb[22].mxu0  ;;  %v1162_v42 = vsel %vm660_vm3, %v1148_v38, -inf }
 0xa01   : > { %1163 = vmax.xlane.f32.xlu0 %v1162_v42  ;;  %v1151_v45 = vpop.f32.mrb[23].mxu0 }
 0xa02   : > { %v1165_v46 = vsel %vm660_vm3, %v1151_v45, -inf }
 0xa03   : > { %1166 = vmax.xlane.f32.xlu1 %v1165_v46 }
 0xa05   : > { %1169 = vmax.xlane.f32.xlu0 %v1168_v47 }
 0xa8e   : > { %v1164_v48 = vpop.xlane.xlu0 %1163 }
 0xa8f   : > { %v1171_v49 = vsub.f32 %v1148_v38, %v1164_v48 }
 0xa90   : > { %v1167_v52 = vpop.xlane.xlu1 %1166 }
 0xa91   : > { %v1174_v55 = vmul.f32 1.442695, %v1171_v49  ;;  %v1172_v56 = vsub.f32 %v1151_v45, %v1167_v52 }
 0xa92   : > { %v1170_v57 = vpop.xlane.xlu0 %1169 }
 0xa93   : > { %2056 = vpow2.f32 %v1174_v55  ;;  %v1176_v58 = vmul.f32 1.442695, %v1172_v56  ;;  %v1173_v61 = vsub.f32 %v1907_v37, %v1170_v57 }
 0xa95   : > { %2058 = vpow2.f32 %v1176_v58  ;;  %v1178_v62 = vmul.f32 1.442695, %v1173_v61 }
 0xa97   : > { %2060 = vpow2.f32 %v1178_v62 }
 0xa9d   : > { %v2057_v63 = vpop.eup %2056 }
 0xa9e   : > { %v1180_v3 = vsel %vm660_vm3, %v2057_v63, 0.0 }
 0xa9f   : > { %v2059_v4 = vpop.eup %2058  ;;  %1181 = vadd.xlane.f32.xlu0 %v1180_v3 }
 0xaa0   : > { %v1183_v8 = vsel %vm660_vm3, %v2059_v4, 0.0 }
 0xaa1   : > { %v2061_v6 = vpop.eup %2060 }
 0xaa2   : > { %v1186_v7 = vsel %vm667_vm4, %v2061_v6, 0.0 }
 0xaa3   : > { %1187 = vadd.xlane.f32.xlu1 %v1186_v7  ;;  %1184 = vadd.xlane.f32.xlu0 %v1183_v8 }
 0xab4   : > { %1199 = vrot.lane.b32.xlu1 %v2230_v54, %s2105_s20 }
 0xab8   : > { %1986 = vrot.lane.b32.xlu1 %v1985_v44, %s2106_s21 }
 0xab9   : > { %1197 = vrot.lane.b32.xlu0 %v2233_v59, %s2105_s20 }
 0xabc   : > { %1266 = vrot.lane.b32.xlu1 %v2298_v40, %s2106_s21 }
 0xabd   : > { %1991 = vrot.lane.b32.xlu0 %v1990_v36, %s2107_s22 }
 0xac0   : > { %1278 = vrot.lane.b32.xlu1 %v1899_v31, %s2107_s22 }
 0xb2c   : > { %v1182_v9 = vpop.xlane.xlu0 %1181 }
 0xb2d   : > { %2062 = vrcp.f32 %v1182_v9 }
 0xb30   : > { %v1185_v10 = vpop.xlane.xlu0 %1184  ;;  %v1188_v11 = vpop.xlane.xlu1 %1187 }
 0xb31   : > { %2064 = vrcp.f32 %v1185_v10 }
 0xb32   : > { %2066 = vrcp.f32 %v1188_v11 }
 0xb34   : > { %v1198_v12 = vpop.permute.xlu0 %1197  ;;  %v1200_v54 = vpop.permute.xlu1 %1199 }
 0xb35   : > { %v1209_v13 = vand.u32 %v1200_v54, %v2260_v33  ;;  %1909 = vmatprep.subr.bf16.mxu1 %v1198_v12  ;;  %v2002_v33 = vld [vmem:[%s2443_s5] sm:$0xff]  }
 0xb36   : > { %1910 = vmatpush3.bf16.msra.mxu1 %v1198_v12 }
 0xb37   : > { %1911 = vmatprep.subr.bf16.mxu1 %v1209_v13  ;;  %v2063_v41 = vpop.eup %2062 }
 0xb38   : > { %v1192_v43 = vmul.f32 %v2063_v41, %v2057_v63  ;;  %v1987_v5 = vpop.permute.xlu1 %1986  ;;  %v1992_v23 = vpop.permute.xlu0 %1991 }
 0xb39   : > { %v1989_v24 = vunpack.i.h.bf16 %v1987_v5  ;;  %v1988_v25 = vunpack.i.l.bf16 %v1987_v5  ;;  %v1994_v27 = vunpack.i.h.bf16 %v1992_v23  ;;  %v1993_v28 = vunpack.i.l.bf16 %v1992_v23 }
 0xb3a   : > { %1912 = vmatpush3.bf16.msra.mxu1 %v1209_v13 }
 0xb3b   : > { %v2065_v59 = vpop.eup %2064  ;;  %1917 = vmatprep.subr.bf16.mxu1 %v2002_v33  ;;  %v1296_v29 = vsel %vm599_vm2, %v2275_v53, %v1989_v24  ;;  %v1295_v30 = vsel %vm599_vm2, %v2273_v51, %v1988_v25 }
 0xb3c   : > { %v2067_v40 = vpop.eup %2066  ;;  %v1193_v44 = vmul.f32 %v2065_v59, %v2059_v4  ;;  %v1267_v22 = vpop.permute.xlu1 %1266  ;;  %v1299_v38 = vsel %vm1298_vm6, %v1295_v30, %v1993_v28  ;;  %v1300_v39 = vsel %vm1298_vm6, %v1296_v29, %v1994_v27  ;;  %v1771_v28 = vld [vmem:[%s2446_s8] ss:$0 sm:$0xff] }
 0xb3d   : > { %v1194_v14 = vmul.f32 %v2067_v40, %v2061_v6  ;;  %v1297_v32 = vsel %vm599_vm2, %v2271_v50, %v1267_v22  ;;  %v1769_v50 = vld [vmem:[%s2444_s6] ss:$0 sm:$0xff] }
 0xb3e   : > { %v1195_v15 = vpack.c.bf16 %v1193_v44, %v1192_v43  ;;  %v2004_v43 = vld [vmem:[%s2447_s9] sm:$0xff]   ;;  %v2005_v44 = vld [vmem:[%s2447_s9 + $0x8] sm:$0xff]  }
 0xb3f   : > { %v1196_v16 = vpack.c.bf16 %v1194_v14, %v1194_v14  ;;  %1925 = vmatprep.subr.bf16.mxu0 %v2004_v43  ;;  %v1770_v22 = vld [vmem:[%s2445_s7] ss:$0 sm:$0xff] }
 0xb40   : > { %1913 = vmatprep.mubr.msk.bf16.mxu1 %vm660_vm3, %v1195_v15  ;;  %v1279_v26 = vpop.permute.xlu1 %1278  ;;  %1926 = vmatpush3.bf16.msra.mxu0 %v2004_v43 }
 0xb41   : > { %1914 = vmatmul.mubr.msk.bf16.vlgmr.msra.gmra.mrb[8].mxu1 %vm660_vm3, %v1196_v16  ;;  %v1301_v35 = vsel %vm1298_vm6, %v1297_v32, %v1279_v26  ;;  %1927 = vmatprep.subr.bf16.mxu0 %v2005_v44 }
 0xb42   : > { %1918 = vmatpush3.bf16.msra.mxu1 %v2002_v33 }
 0xb43   : > { %1919 = vmatprep.subr.bf16.mxu1 %v2003_v17 }
 0xb44   : > { %1928 = vmatpush3.bf16.msra.mxu0 %v2005_v44 }
 0xb46   : > { %1920 = vmatpush3.bf16.msra.mxu1 %v2003_v17 }
 0xc14   : > { %v1915_v18 = vpop.f32.mrb[8].mxu1 }
 0xc15   : > { %1290 = vrot.lane.b32.xlu1 %v1915_v18, %s2108_s30  ;;  %v1245_v19 = vpop.f32.mrb[9].mxu1 }
 0xc16   : > { %v1916_v20 = vpop.f32.mrb[10].mxu1 }
 0xc17   : > { %v1248_v21 = vpop.f32.mrb[11].mxu1 }
 0xc18   : > { %v1995_v60 = vpack.i.bf16 %v1248_v21, %v1245_v19 }
 0xc1a   : > { %1996 = vrot.lane.b32.xlu0 %v1995_v60, %s2108_s30 }
 0xc87   : > { %v1291_v31 = vpop.permute.xlu1 %1290 }
 0xc88   : > { %v1305_v42 = vsel %vm1302_vm7, %v1301_v35, %v1291_v31 }
 0xc89   : > { %v1307_v53 = vpack.c.bf16 %v1305_v42, %v1305_v42  ;;  %v2009_v42 = vld [vmem:[%s2449_s11 + $0x18] sm:$0xff]  }
 0xc8c   : > { %v1997_v34 = vpop.permute.xlu0 %1996 }
 0xc8d   : > { %v1999_v36 = vunpack.i.h.bf16 %v1997_v34  ;;  %v1998_v37 = vunpack.i.l.bf16 %v1997_v34 }
 0xc8f   : > { %v1303_v45 = vsel %vm1302_vm7, %v1299_v38, %v1998_v37  ;;  %v1304_v46 = vsel %vm1302_vm7, %v1300_v39, %v1999_v36  ;;  %v2006_v37 = vld [vmem:[%s2449_s11] sm:$0xff]   ;;  %v2007_v38 = vld [vmem:[%s2449_s11 + $0x8] sm:$0xff]   ;;  %v2008_v39 = vld [vmem:[%s2449_s11 + $0x10] sm:$0xff]  }
 0xc90   : > { %v1306_v47 = vpack.c.bf16 %v1304_v46, %v1303_v45  ;;  %1933 = vmatprep.subr.bf16.mxu1 %v2006_v37  ;;  %v2010_v45 = vld [vmem:[%s2449_s11 + $0x20] sm:$0xff]   ;;  %v2011_v46 = vld [vmem:[%s2449_s11 + $0x28] sm:$0xff]  }
 0xc92   : > { %1921 = vmatprep.mubr.msk.bf16.mxu1 %vm445_vm0, %v1306_v47  ;;  %v2012_v47 = vld [vmem:[%s2449_s11 + $0x30] sm:$0xff]  }
 0xc93   : > { %1922 = vmatmul.mubr.msk.bf16.vlgmr.msra.gmra.mrb[12].mxu1 %vm445_vm0, %v1307_v53  ;;  %v2013_v53 = vld [vmem:[%s2449_s11 + $0x38] sm:$0xff]  }
 0xc94   : > { %1934 = vmatpush3.bf16.msra.mxu1 %v2006_v37 }
 0xc95   : > { %1935 = vmatprep.subr.bf16.mxu1 %v2007_v38 }
 0xc98   : > { %1936 = vmatpush3.bf16.msra.mxu1 %v2007_v38 }
 0xc99   : > { %1937 = vmatprep.subr.bf16.mxu1 %v2008_v39 }
 0xc9c   : > { %1938 = vmatpush3.bf16.msra.mxu1 %v2008_v39 }
 0xc9d   : > { %1939 = vmatprep.subr.bf16.mxu1 %v2009_v42 }
 0xca0   : > { %1940 = vmatpush3.bf16.msra.mxu1 %v2009_v42 }
 0xca1   : > { %1941 = vmatprep.subr.bf16.mxu1 %v2010_v45 }
 0xca4   : > { %1942 = vmatpush3.bf16.msra.mxu1 %v2010_v45 }
 0xca5   : > { %1943 = vmatprep.subr.bf16.mxu1 %v2011_v46 }
 0xca8   : > { %1944 = vmatpush3.bf16.msra.mxu1 %v2011_v46 }
 0xca9   : > { %1945 = vmatprep.subr.bf16.mxu1 %v2012_v47 }
 0xcac   : > { %1946 = vmatpush3.bf16.msra.mxu1 %v2012_v47 }
 0xcad   : > { %1947 = vmatprep.subr.bf16.mxu1 %v2013_v53 }
 0xcb0   : > { %1948 = vmatpush3.bf16.msra.mxu1 %v2013_v53 }
 0xd66   : > { %v1923_v51 = vpop.f32.mrb[12].mxu1 }
 0xd67   : > { %v1364_v48 = vpop.f32.mrb[13].mxu1  ;;  %v1380_v49 = vadd.f32 %v1923_v51, %v2197_v1  ;;  %v1772_v51 = vld [vmem:[%s2448_s10] ss:$0 sm:$0xff] }
 0xd68   : > { %v1378_v52 = vadd.f32 %v1364_v48, %v2195_v0  ;;  %v1924_v55 = vpop.f32.mrb[14].mxu1 }
 0xd69   : > { %v1367_v56 = vpop.f32.mrb[15].mxu1  ;;  %v2364_v61 = vadd.f32 %v1769_v50, %v1380_v49 }
 0xd6a   : > { %v2361_v57 = vadd.f32 %v1769_v50, %v1378_v52  ;;  %v1379_v58 = vadd.f32 %v1367_v56, %v2199_v2 }
 0xd6b   : > { %v1397_v0 = vsel %vm452_vm1, %v2364_v61, 0.0 }
 0xd6c   : > { %v2366_v62 = vadd.f32 %v1769_v50, %v1379_v58  ;;  %v1391_v63 = vsel %vm445_vm0, %v2361_v57, 0.0 }
 0xd6d   : > { %1392 = vadd.xlane.f32.xlu0 %v1391_v63 }
 0xd6e   : > { %v1394_v3 = vsel %vm445_vm0, %v2366_v62, 0.0 }
 0xd6f   : > { %1395 = vadd.xlane.f32.xlu1 %v1394_v3 }
 0xd71   : > { %1398 = vadd.xlane.f32.xlu0 %v1397_v0 }
 0xdfa   : > { %v1393_v1 = vpop.xlane.xlu0 %1392 }
 0xdfb   : > { %v1400_v4 = vmul.f32 0.03125, %v1393_v1 }
 0xdfc   : > { %v1396_v6 = vpop.xlane.xlu1 %1395 }
 0xdfd   : > { %v1403_v2 = vsub.f32 %v2361_v57, %v1400_v4  ;;  %v1401_v7 = vmul.f32 0.03125, %v1396_v6 }
 0xdfe   : > { %v1399_v8 = vpop.xlane.xlu0 %1398 }
 0xdff   : > { %v1404_v9 = vsub.f32 %v2366_v62, %v1401_v7  ;;  %v1402_v10 = vmul.f32 0.03125, %v1399_v8  ;;  %v1406_v11 = vmul.f32 %v1403_v2, %v1403_v2 }
 0xe01   : > { %v1405_v12 = vsub.f32 %v2364_v61, %v1402_v10  ;;  %v1409_v54 = vsel %vm445_vm0, %v1406_v11, 0.0  ;;  %v1407_v13 = vmul.f32 %v1404_v9, %v1404_v9 }
 0xe02   : > { %1410 = vadd.xlane.f32.xlu0 %v1409_v54 }
 0xe03   : > { %v1408_v41 = vmul.f32 %v1405_v12, %v1405_v12  ;;  %v1412_v40 = vsel %vm445_vm0, %v1407_v13, 0.0 }
 0xe05   : > { %v1415_v59 = vsel %vm452_vm1, %v1408_v41, 0.0 }
 0xe06   : > { %1416 = vadd.xlane.f32.xlu1 %v1415_v59  ;;  %1413 = vadd.xlane.f32.xlu0 %v1412_v40 }
 0xe8f   : > { %v1411_v14 = vpop.xlane.xlu0 %1410 }
 0xe90   : > { %v1418_v15 = vmul.f32 0.03125, %v1411_v14  ;;  %v1780_v14 = vld [vmem:[%s2450_s12] ss:$0 sm:$0xff] }
 0xe92   : > { %v1421_v16 = vadd.f32 1e-05, %v1418_v15 }
 0xe93   : > { %v1414_v33 = vpop.xlane.xlu0 %1413  ;;  %v1417_v17 = vpop.xlane.xlu1 %1416 }
 0xe94   : > { %2068 = vrsqrt.f32 %v1421_v16  ;;  %v1419_v18 = vmul.f32 0.03125, %v1414_v33  ;;  %v1420_v19 = vmul.f32 0.03125, %v1417_v17 }
 0xe96   : > { %v1422_v20 = vadd.f32 1e-05, %v1419_v18  ;;  %v1423_v21 = vadd.f32 1e-05, %v1420_v19 }
 0xe98   : > { %2070 = vrsqrt.f32 %v1422_v20 }
 0xe99   : > { %2072 = vrsqrt.f32 %v1423_v21 }
 0xe9e   : > { %v2069_v60 = vpop.eup %2068 }
 0xe9f   : > { %v1427_v5 = vmul.f32 %v2069_v60, %v1403_v2 }
 0xea1   : > { %v1437_v26 = vmul.f32 %v1770_v22, %v1427_v5 }
 0xea2   : > { %v2071_v23 = vpop.eup %2070 }
 0xea3   : > { %v2073_v24 = vpop.eup %2072  ;;  %v1428_v25 = vmul.f32 %v2071_v23, %v1404_v9  ;;  %v1447_v31 = vadd.f32 %v1771_v28, %v1437_v26 }
 0xea4   : > { %v1429_v27 = vmul.f32 %v2073_v24, %v1405_v12 }
 0xea5   : > { %v1438_v29 = vmul.f32 %v1770_v22, %v1428_v25 }
 0xea6   : > { %v1439_v30 = vmul.f32 %v1770_v22, %v1429_v27 }
 0xea7   : > { %v1448_v32 = vadd.f32 %v1771_v28, %v1438_v29 }
 0xea8   : > { %v1449_v34 = vadd.f32 %v1771_v28, %v1439_v30 }
 0xea9   : > { %v1450_v35 = vpack.c.bf16 %v1448_v32, %v1447_v31 }
 0xeaa   : > { %v1451_v36 = vpack.c.bf16 %v1449_v34, %v1449_v34 }
 0xeab   : > { %1929 = vmatprep.mubr.msk.bf16.mxu0 %vm445_vm0, %v1450_v35 }
 0xeac   : > { %1930 = vmatmul.mubr.msk.bf16.vlgmr.msra.gmra.mrb[24].mxu0 %vm445_vm0, %v1451_v36 }
 0xf7f   : > { %v1931_v50 = vpop.f32.mrb[24].mxu0 }
 0xf80   : > { %v1524_v48 = vadd.f32 %v1931_v50, %v1772_v51  ;;  %v1515_v49 = vpop.f32.mrb[25].mxu0 }
 0xf81   : > { %v1516_v52 = vadd.f32 %v1772_v51, %v1515_v49  ;;  %v1932_v55 = vpop.f32.mrb[26].mxu0 }
 0xf82   : > { %v1779_v56 = vmul.f32 -1.702, %v1524_v48  ;;  %v1518_v58 = vpop.f32.mrb[27].mxu0 }
 0xf83   : > { %v1777_v63 = vmul.f32 -1.702, %v1516_v52  ;;  %v1519_v3 = vadd.f32 %v1772_v51, %v1518_v58 }
 0xf84   : > { %v1539_v0 = vmul.f32 1.442695, %v1779_v56 }
 0xf85   : > { %v1535_v1 = vmul.f32 1.442695, %v1777_v63  ;;  %v1778_v4 = vmul.f32 -1.702, %v1519_v3 }
 0xf86   : > { %2074 = vpow2.f32 %v1539_v0 }
 0xf87   : > { %2076 = vpow2.f32 %v1535_v1  ;;  %v1537_v6 = vmul.f32 1.442695, %v1778_v4 }
 0xf89   : > { %2078 = vpow2.f32 %v1537_v6 }
 0xf90   : > { %v2075_v2 = vpop.eup %2074 }
 0xf91   : > { %v2077_v7 = vpop.eup %2076  ;;  %v1543_v8 = vadd.f32 1.0, %v2075_v2 }
 0xf92   : > { %v1541_v9 = vadd.f32 1.0, %v2077_v7 }
 0xf93   : > { %v2079_v10 = vpop.eup %2078  ;;  %2080 = vrcp.f32 %v1543_v8 }
 0xf94   : > { %2082 = vrcp.f32 %v1541_v9  ;;  %v1542_v11 = vadd.f32 1.0, %v2079_v10 }
 0xf96   : > { %2084 = vrcp.f32 %v1542_v11 }
 0xf9d   : > { %v2081_v12 = vpop.eup %2080 }
 0xf9e   : > { %v2083_v54 = vpop.eup %2082  ;;  %v1552_v41 = vmul.f32 %v2081_v12, %v1524_v48 }
 0xf9f   : > { %v1550_v59 = vmul.f32 %v2083_v54, %v1516_v52 }
 0xfa0   : > { %v2085_v13 = vpop.eup %2084  ;;  %v1554_v44 = vpack.c.bf16 %v1552_v41, %v1552_v41 }
 0xfa1   : > { %v1551_v40 = vmul.f32 %v2085_v13, %v1519_v3 }
 0xfa3   : > { %v1553_v43 = vpack.c.bf16 %v1551_v40, %v1550_v59 }
 0xfa5   : > { %1949 = vmatprep.mubr.bf16.mxu1 %v1553_v43 }
 0xfa6   : > { %1950 = vmatmul.mubr.bf16.vlgmr.msra.gmra.mrb[16].mxu1 %v1554_v44 }
0x1079   : > { %v1951_v15 = vpop.f32.mrb[16].mxu1 }
0x107a   : > { %v1669_v16 = vadd.f32 %v1951_v15, %v1780_v14  ;;  %v1660_v33 = vpop.f32.mrb[17].mxu1 }
0x107b   : > { %v1661_v17 = vadd.f32 %v1780_v14, %v1660_v33  ;;  %v1952_v18 = vpop.f32.mrb[18].mxu1 }
0x107c   : > { %v1676_v19 = vadd.f32 %v1669_v16, %v2364_v61  ;;  %v1663_v20 = vpop.f32.mrb[19].mxu1 }
0x107d   : > { %v1674_v21 = vadd.f32 %v1661_v17, %v2361_v57  ;;  %v1664_v60 = vadd.f32 %v1780_v14, %v1663_v20 }
0x107e   : > { %1679 = vst.msk [vmem:[%s440_s18 + $0x10] sm:$0x1] %vm452_vm1, %v1676_v19 }
0x107f   : > { %1677 = vst.msk [vmem:[%s440_s18] sm:$0xff] %vm445_vm0, %v1674_v21  ;;  %v1675_v5 = vadd.f32 %v1664_v60, %v2366_v62 }
0x1081   : > { %1678 = vst.msk [vmem:[%s440_s18 + $0x8] sm:$0xff] %vm445_vm0, %v1675_v5 }
0x1082 PF: > { %s23_s25 = sadd.s32 1, %s2092_s25  }
0x1083   : > { %p20_p4 = scmp.ge.s32.totalorder %s23_s25, 4  }
0x1085   :  { %22 = sbr.rel (!%p20_p4) target bundleno = 1 (0x1), region = 102 }

// kernel: clip_encoder_forward.10
= control target key start
LH: loop header
LB: loop body
LE: loop exit
PB: predicated region body
PF: predicated region fallthrough
CT: control target
= control target key end

     0   :  { %vm20_vm0 = vcmask 257024   ;;  %s230_s0 = inlined_call_operand.vmem [shape: f32[4,32], index: 0, kind: input, shape index: {}]   ;;  %s231_s1 = inlined_call_operand.vmem [shape: f32[1,32], index: 1, kind: input, shape index: {}]   ;;  %s232_s2 = inlined_call_operand.vmem [shape: f32[1,32], index: 2, kind: input, shape index: {}]   ;;  %s233_s3 = inlined_call_operand.vmem [shape: bf16[32,16], index: 3, kind: input, shape index: {}]   ;;  %s234_s4 = inlined_call_operand.hbm [shape: f32[4,16], index: 4, kind: output, shape index: {}]  }
   0x1   :  { %v19_v0 = vld [vmem:[%s230_s0] sm:$0xf] }
   0x2   :  { %v21_v1 = vsel %vm20_vm0, %v19_v0, 0.0 }
   0x3   :  { %22 = vadd.xlane.f32.xlu0 %v21_v1 }
   0x4   :  { %9 = vsyncpa [#allocation3], 0  ;;  %v147_v7 = vld [vmem:[%s233_s3] sm:$0xff]   ;;  %v175_v8 = vmov 0.0   ;;  %v148_v9 = vld [vmem:[%s233_s3 + $0x8] sm:$0xff]   ;;  %vm176_vm1 = vmmov 0  }
   0x5   :  { %136 = vmatprep.subr.bf16.mxu0 %v175_v8  ;;  %140 = vmatprep.mubr.msk.bf16.mxu0 %vm176_vm1, %v175_v8  ;;  %v128_v14 = vld [vmem:[%s231_s1] ss:$0 sm:$0xff]  ;;  %vm68_vm2 = vcmask 261120   ;;  %s177_s3 = smov [#allocation2]   ;;  %vm112_vm3 = vcmask 125952  }
   0x6   :  { %137 = vmatpush3.bf16.msra.mxu0 %v147_v7  ;;  %v129_v16 = vld [vmem:[%s232_s2] ss:$0 sm:$0xff]  ;;  %s120_s24 = sshll.u32 %s177_s3, 4  ;;  %s121_s24 = int_to_ptr.vmem [resolvable:$true] %s120_s24 }
   0x7   :  { %138 = vmatprep.subr.bf16.mxu0 %v175_v8  ;;  %s151_s25 = scalar_lea.vmem %s121_s24, 64  ;;  %p156_p1 = scmp.lt.s32.totalorder %s121_s24, %s121_s24 }
   0x8   :  { %p152_p0 = scmp.ne.s32.totalorder %s121_s24, %s151_s25  ;;  %p157_p2 = scmp.lt.s32.totalorder %s151_s25, %s151_s25 }
   0xa   :  { %139 = vmatpush3.bf16.msra.mxu0 %v148_v9  ;;  %p158_p3 = por %p157_p2, %p156_p1 }
   0xc   :  { %p159_p4 = pnand %p158_p3, %p152_p0 }
  0x90   :  { %v23_v2 = vpop.xlane.xlu0 %22 }
  0x91   :  { %v25_v3 = vmul.f32 0.03125, %v23_v2 }
  0x93   :  { %v26_v4 = vsub.f32 %v19_v0, %v25_v3 }
  0x95   :  { %v27_v5 = vmul.f32 %v26_v4, %v26_v4 }
  0x97   :  { %v28_v6 = vsel %vm20_vm0, %v27_v5, 0.0 }
  0x98   :  { %29 = vadd.xlane.f32.xlu0 %v28_v6 }
 0x125   :  { %v30_v10 = vpop.xlane.xlu0 %29 }
 0x126   :  { %v31_v11 = vmul.f32 0.03125, %v30_v10 }
 0x128   :  { %v32_v12 = vadd.f32 1e-05, %v31_v11 }
 0x12a   :  { %149 = vrsqrt.f32 %v32_v12 }
 0x134   :  { %v150_v13 = vpop.eup %149 }
 0x135   :  { %v34_v15 = vmul.f32 %v150_v13, %v26_v4 }
 0x137   :  { %v42_v17 = vmul.f32 %v128_v14, %v34_v15 }
 0x139   :  { %v50_v18 = vadd.f32 %v129_v16, %v42_v17 }
 0x13b   :  { %v51_v19 = vpack.c.bf16 %v50_v18, %v50_v18 }
 0x13d   :  { %141 = vmatmul.mubr.msk.bf16.vlgmr.msra.gmra.mrb[0].mxu0 %vm68_vm2, %v51_v19 }
 0x210   :  { %v106_v20 = vpop.f32.mrb[0].mxu0 }
 0x211   :  { %113 = vst.msk [vmem:[#allocation2] sm:$0xf] %vm112_vm3, %v106_v20  ;;  %v142_v21 = vpop.f32.mrb[1].mxu0 }
 0x212   :  { %v109_v22 = vpop.f32.mrb[2].mxu0 }
 0x213   :  { %162 = shalt.err (!%p159_p4)
}
 0x214   :  { %s163_s26 = scalar_lea.hbm %s234_s4, 64 }
 0x215   :  { %p164_p5 = scmp.ne.s32.totalorder %s234_s4, %s163_s26  ;;  %p167_p6 = scmp.lt.u32.totalorder %s163_s26, %s234_s4 }
 0x217   :  { %p169_p7 = pnand %p167_p6, %p164_p5 }
 0x219   :  { %172 = shalt.err (!%p169_p7)
}
 0x21a   :  { %123 = dma.vmem_to_hbm [thread:$0]  %s121_s24, 64, %s234_s4, [#allocation3]   ;;  %v143_v23 = vpop.f32.mrb[3].mxu0 }
 0x21b   :  { %173 = dma.done.wait [#allocation3], 64  }
 0x21c   :  { %174 = vsyncadd [#allocation3], 4294967232 }
 0x21d   :  { %127 = vsyncpa [#allocation3], 1 }

// kernel: clip_encoder_forward.8
= control target key start
LH: loop header
LB: loop body
LE: loop exit
PB: predicated region body
PF: predicated region fallthrough
CT: control target
= control target key end

     0   :  { %s1672_s25 = smov 0   ;;  %s1865_s0 = inlined_call_operand.vmem [shape: f32[4,8,32], index: 0, kind: input, shape index: {}]   ;;  %s1866_s1 = inlined_call_operand.vmem [shape: f32[1,32], index: 1, kind: input, shape index: {}]   ;;  %s1867_s2 = inlined_call_operand.vmem [shape: f32[1,32], index: 2, kind: input, shape index: {}]   ;;  %s1868_s3 = inlined_call_operand.vmem [shape: bf16[32,96], index: 3, kind: input, shape index: {}]   ;;  %s1869_s4 = inlined_call_operand.vmem [shape: f32[1,96], index: 4, kind: input, shape index: {}]   ;;  %s1870_s5 = inlined_call_operand.vmem [shape: bf16[32,32], index: 5, kind: input, shape index: {}]   ;;  %s1871_s6 = inlined_call_operand.vmem [shape: f32[1,32], index: 6, kind: input, shape index: {}]   ;;  %s1872_s7 = inlined_call_operand.vmem [shape: f32[1,32], index: 7, kind: input, shape index: {}]   ;;  %s1873_s8 = inlined_call_operand.vmem [shape: f32[1,32], index: 8, kind: input, shape index: {}]   ;;  %s1874_s9 = inlined_call_operand.vmem [shape: bf16[32,128], index: 9, kind: input, shape index: {}]   ;;  %s1875_s10 = inlined_call_operand.vmem [shape: f32[1,128], index: 10, kind: input, shape index: {}]   ;;  %s1876_s11 = inlined_call_operand.vmem [shape: bf16[128,32], index: 11, kind: input, shape index: {}]   ;;  %s1877_s12 = inlined_call_operand.vmem [shape: f32[1,32], index: 12, kind: input, shape index: {}]   ;;  %s1878_s13 = inlined_call_operand.vmem [shape: f32[4,8,32], index: 13, kind: output, shape index: {}]  }
   0x1 LB: > { %s1347_s26 = sadd.s32 4294967295, %s1584_s25   ;;  %p1351_p0 = scmp.ge.s32.totalorder %s1584_s25, 1  ;;  %s1584_s25 = sphi %s1672_s25, %s23_s25  }
   0x2   : > { %p386_p1 = scmp.lt.s32.totalorder %s1584_s25, 5 }
   0x4   : > { %p387_p2 = pnand %p1351_p0, %p386_p1 }
   0x5   : > { %p428_p3 = scmp.lt.s32.totalorder (!%p387_p2), %s1347_s26, 3  ;;  %vm438_vm0 = vcmask (!%p387_p2), 261120   ;;  %v1540_v7 = vld [vmem:[%s1868_s3] sm:$0xff] (!%p387_p2)   ;;  %v1586_v8 = vmov (!%p387_p2), 0.0   ;;  %vm1587_vm1 = vmmov (!%p387_p2), 0   ;;  %v1541_v9 = vld [vmem:[%s1868_s3 + $0x8] sm:$0xff] (!%p387_p2)   ;;  %v536_v40 = vlaneseq (!%p387_p2) }
   0x6   : > { %390 = sbr.rel (%p387_p2) target bundleno = 2585 (0xa19), region = 72  ;;  %1424 = vmatprep.subr.bf16.mxu0 (!%p387_p2), %v1586_v8  ;;  %1428 = vmatprep.mubr.msk.bf16.mxu0 (!%p387_p2), %vm1587_vm1, %v1586_v8  ;;  %v1354_v14 = vld [vmem:[%s1866_s1] ss:$0 sm:$0xff] (!%p387_p2)  ;;  %s1588_s24 = smov (!%p387_p2), 96   ;;  %vm547_vm2 = vcmask (!%p387_p2), 64512   ;;  %vm612_vm4 = vcmask (!%p387_p2), 1043456  }
   0x7   : > { %1425 = vmatpush3.bf16.msra.mxu0 (!%p387_p2), %v1540_v7  ;;  %1444 = vmatprep.subr.bf16.mxu1 (!%p387_p2), %v1586_v8  ;;  %v1355_v16 = vld [vmem:[%s1867_s2] ss:$0 sm:$0xff] (!%p387_p2)  ;;  %s1589_s28 = smov (!%p387_p2), 120   ;;  %s1590_s29 = smov (!%p387_p2), 88   ;;  %v537_v41 = vshrl.u32 (!%p387_p2), %v536_v40, 7  ;;  %v539_v42 = vand.u32 (!%p387_p2), 127, %v536_v40 }
   0x8   : > { %1426 = vmatprep.subr.bf16.mxu0 (!%p387_p2), %v1586_v8  ;;  %1446 = vmatprep.mubr.msk.bf16.mxu1 (!%p387_p2), %vm1587_vm1, %v1586_v8  ;;  %v1356_v20 = vld [vmem:[%s1869_s4] ss:$0 sm:$0xff] (!%p387_p2)  ;;  %s1592_s14 = smov (!%p387_p2), 112   ;;  %s1593_s15 = smov (!%p387_p2), 72   ;;  %vm1003_vm5 = vcmask (!%p387_p2), 130048   ;;  %vm1005_vm6 = vcmask (!%p387_p2), 195584  }
   0x9   : > { %s1594_s16 = smov (!%p387_p2), 104   ;;  %vm540_vm3 = vcmp.le.s32.totalorder (!%p387_p2), %v539_v42, %v537_v41  ;;  %s1595_s17 = smov (!%p387_p2), 64  }
   0xa   : > { %s1596_s18 = smov (!%p387_p2), 56   ;;  %s1597_s19 = smov (!%p387_p2), 48  }
   0xb   : > { %1427 = vmatpush3.bf16.msra.mxu0 (!%p387_p2), %v1541_v9  ;;  %s1598_s20 = smov (!%p387_p2), 40   ;;  %s1599_s21 = smov (!%p387_p2), 8  }
   0xc   : > { %1432 = vmatprep.subr.bf16.mxu0 (!%p387_p2), %v1586_v8 }
   0xd   : > { %s1880_s26 = smov (!%p428_p3, %s1347_s26), 3 }
   0xe   : > { %s1352_s27 = sshll.u32 %s1880_s26, 3 }
   0xf   : > { %s431_s30 = scalar_lea.vmem %s1865_s0, %s1352_s27 }
  0x10   : > { %v1688_v0 = vld [vmem:[%s431_s30] sm:$0xff]  ;;  %s1591_s30 = smov 80  }
  0x11   : > { %v439_v1 = vsel %vm438_vm0, %v1688_v0, 0.0 }
  0x12   : > { %440 = vadd.xlane.f32.xlu0 %v439_v1 }
  0x9f   : > { %v441_v2 = vpop.xlane.xlu0 %440 }
  0xa0   : > { %v443_v3 = vmul.f32 0.03125, %v441_v2 }
  0xa2   : > { %v444_v4 = vsub.f32 %v1688_v0, %v443_v3 }
  0xa4   : > { %v445_v5 = vmul.f32 %v444_v4, %v444_v4 }
  0xa6   : > { %v446_v6 = vsel %vm438_vm0, %v445_v5, 0.0 }
  0xa7   : > { %447 = vadd.xlane.f32.xlu0 %v446_v6 }
 0x134   : > { %v448_v10 = vpop.xlane.xlu0 %447 }
 0x135   : > { %v449_v11 = vmul.f32 0.03125, %v448_v10 }
 0x137   : > { %v450_v12 = vadd.f32 1e-05, %v449_v11 }
 0x139   : > { %1554 = vrsqrt.f32 %v450_v12 }
 0x143   : > { %v1555_v13 = vpop.eup %1554 }
 0x144   : > { %v452_v15 = vmul.f32 %v1555_v13, %v444_v4 }
 0x146   : > { %v460_v17 = vmul.f32 %v1354_v14, %v452_v15 }
 0x148   : > { %v468_v18 = vadd.f32 %v1355_v16, %v460_v17 }
 0x14a   : > { %v469_v19 = vpack.c.bf16 %v468_v18, %v468_v18 }
 0x14c   : > { %1429 = vmatmul.mubr.msk.bf16.vlgmr.msra.gmra.mrb[0].mxu0 %vm438_vm0, %v469_v19 }
 0x14d   : > { %1434 = vmatprep.mubr.msk.bf16.mxu0 %vm1587_vm1, %v1586_v8 }
 0x21f   : > { %v530_v21 = vpop.f32.mrb[0].mxu0 }
 0x220   : > { %v531_v22 = vadd.f32 %v1356_v20, %v530_v21  ;;  %v1430_v23 = vpop.f32.mrb[1].mxu0 }
 0x221   : > { %v533_v24 = vpop.f32.mrb[2].mxu0 }
 0x222   : > { %v541_v25 = vmul.f32 0.35355338, %v531_v22  ;;  %v1720_v26 = vpack.c.bf16 %v531_v22, %v531_v22  ;;  %v1431_v27 = vpop.f32.mrb[3].mxu0 }
 0x224   : > { %v542_v28 = vpack.c.bf16 %v541_v25, %v541_v25  ;;  %545 = vrot.lane.b32.xlu1 %v1720_v26, %s1588_s24 }
 0x226   : > { %657 = vrot.lane.b32.xlu0 %v542_v28, %s1589_s28 }
 0x228   : > { %659 = vrot.lane.b32.xlu1 %v1720_v26, %s1590_s29  ;;  %s1600_s29 = smov 16  }
 0x22c   : > { %770 = vrot.lane.b32.xlu1 %v1720_v26, %s1591_s30  ;;  %s1601_s30 = smov 24  }
 0x230   : > { %768 = vrot.lane.b32.xlu1 %v542_v28, %s1592_s14 }
 0x234   : > { %881 = vrot.lane.b32.xlu1 %v1720_v26, %s1593_s15 }
 0x238   : > { %879 = vrot.lane.b32.xlu1 %v542_v28, %s1594_s16 }
 0x296   : > { %v546_v29 = vpop.permute.xlu1 %545 }
 0x297   : > { %v552_v30 = vsel %vm547_vm2, %v546_v29, 0 }
 0x298   : > { %1433 = vmatpush3.bf16.xpose.msra.mxu0 %v552_v30  ;;  %v658_v34 = vpop.permute.xlu0 %657 }
 0x299   : > { %1438 = vmatprep.subr.bf16.mxu0 %v1586_v8 }
 0x29a   : > { %v660_v31 = vpop.permute.xlu1 %659 }
 0x29b   : > { %v665_v32 = vsel %vm547_vm2, %v660_v31, 0 }
 0x29c   : > { %1445 = vmatpush3.bf16.xpose.msra.mxu1 %v665_v32 }
 0x29d   : > { %1456 = vmatprep.subr.bf16.mxu1 %v1586_v8 }
 0x29e   : > { %v771_v33 = vpop.permute.xlu1 %770 }
 0x29f   : > { %1435 = vmatmul.mubr.msk.bf16.vlgmr.msra.gmra.mrb[4].mxu0 %vm547_vm2, %v542_v28  ;;  %v776_v36 = vsel %vm547_vm2, %v771_v33, 0 }
 0x2a0   : > { %1440 = vmatprep.mubr.msk.bf16.mxu0 %vm1587_vm1, %v1586_v8 }
 0x2a2   : > { %v769_v35 = vpop.permute.xlu1 %768 }
 0x2a3   : > { %1447 = vmatmul.mubr.msk.bf16.vlgmr.msra.gmra.mrb[0].mxu1 %vm547_vm2, %v658_v34 }
 0x2a4   : > { %1457 = vmatpush3.bf16.xpose.msra.mxu1 %v776_v36  ;;  %1458 = vmatprep.mubr.msk.bf16.mxu1 %vm1587_vm1, %v1586_v8 }
 0x2a5   : > { %1468 = vmatprep.subr.bf16.mxu1 %v1586_v8 }
 0x2a6   : > { %v882_v37 = vpop.permute.xlu1 %881 }
 0x2a7   : > { %v887_v38 = vsel %vm547_vm2, %v882_v37, 0 }
 0x2aa   : > { %v880_v39 = vpop.permute.xlu1 %879 }
 0x2ab   : > { %1459 = vmatmul.mubr.msk.bf16.vlgmr.msra.gmra.mrb[4].mxu1 %vm547_vm2, %v769_v35 }
 0x2ac   : > { %1469 = vmatpush3.bf16.xpose.msra.mxu1 %v887_v38  ;;  %1470 = vmatprep.mubr.msk.bf16.mxu1 %vm1587_vm1, %v1586_v8 }
 0x2ad   : > { %1480 = vmatprep.subr.bf16.mxu1 %v1586_v8 }
 0x2b3   : > { %1471 = vmatmul.mubr.msk.bf16.vlgmr.msra.gmra.mrb[8].mxu1 %vm547_vm2, %v880_v39 }
 0x2b4   : > { %1484 = vmatprep.mubr.msk.bf16.mxu1 %vm1587_vm1, %v1586_v8 }
 0x372   : > { %v588_v43 = vpop.f32.mrb[4].mxu0 }
 0x373   : > { %v594_v44 = vsel %vm540_vm3, %v588_v43, -1e+30  ;;  %v1436_v45 = vpop.f32.mrb[5].mxu0 }
 0x374   : > { %v591_v46 = vpop.f32.mrb[6].mxu0  ;;  %v595_v47 = vsel %vm547_vm2, %v594_v44, -inf }
 0x375   : > { %596 = vmax.xlane.f32.xlu1 %v595_v47  ;;  %v1437_v48 = vpop.f32.mrb[7].mxu0 }
 0x376   : > { %v701_v49 = vpop.f32.mrb[0].mxu1 }
 0x377   : > { %v707_v50 = vsel %vm540_vm3, %v701_v49, -1e+30  ;;  %v1448_v51 = vpop.f32.mrb[1].mxu1 }
 0x378   : > { %v704_v52 = vpop.f32.mrb[2].mxu1  ;;  %v708_v53 = vsel %vm547_vm2, %v707_v50, -inf }
 0x379   : > { %709 = vmax.xlane.f32.xlu0 %v708_v53  ;;  %v1449_v54 = vpop.f32.mrb[3].mxu1 }
 0x37e   : > { %v812_v55 = vpop.f32.mrb[4].mxu1 }
 0x37f   : > { %v818_v56 = vsel %vm540_vm3, %v812_v55, -1e+30  ;;  %v1460_v57 = vpop.f32.mrb[5].mxu1 }
 0x380   : > { %v815_v58 = vpop.f32.mrb[6].mxu1  ;;  %v819_v59 = vsel %vm547_vm2, %v818_v56, -inf  ;;  %v1542_v57 = vld [vmem:[%s1870_s5] sm:$0xff]  }
 0x381   : > { %v1461_v60 = vpop.f32.mrb[7].mxu1  ;;  %820 = vmax.xlane.f32.xlu1 %v819_v59  ;;  %1481 = vmatpush3.bf16.msra.mxu1 %v1542_v57  ;;  %v1543_v58 = vld [vmem:[%s1870_s5 + $0x8] sm:$0xff]  }
 0x382   : > { %1482 = vmatprep.subr.bf16.mxu1 %v1586_v8 }
 0x385   : > { %1483 = vmatpush3.bf16.msra.mxu1 %v1543_v58 }
 0x386   : > { %v923_v61 = vpop.f32.mrb[8].mxu1  ;;  %1496 = vmatprep.subr.bf16.mxu1 %v1586_v8 }
 0x387   : > { %v929_v62 = vsel %vm540_vm3, %v923_v61, -1e+30  ;;  %v1472_v63 = vpop.f32.mrb[9].mxu1 }
 0x388   : > { %v926_v1 = vpop.f32.mrb[10].mxu1  ;;  %v930_v2 = vsel %vm547_vm2, %v929_v62, -inf }
 0x389   : > { %931 = vmax.xlane.f32.xlu0 %v930_v2  ;;  %v1473_v3 = vpop.f32.mrb[11].mxu1 }
 0x402   : > { %v597_v4 = vpop.xlane.xlu1 %596 }
 0x403   : > { %v598_v5 = vsub.f32 %v594_v44, %v597_v4 }
 0x405   : > { %v599_v6 = vmul.f32 1.442695, %v598_v5 }
 0x406   : > { %v710_v7 = vpop.xlane.xlu0 %709 }
 0x407   : > { %1556 = vpow2.f32 %v599_v6  ;;  %v711_v9 = vsub.f32 %v707_v50, %v710_v7 }
 0x409   : > { %v712_v10 = vmul.f32 1.442695, %v711_v9 }
 0x40b   : > { %1558 = vpow2.f32 %v712_v10 }
 0x40e   : > { %v821_v20 = vpop.xlane.xlu1 %820 }
 0x40f   : > { %v822_v21 = vsub.f32 %v818_v56, %v821_v20 }
 0x411   : > { %v1557_v11 = vpop.eup %1556  ;;  %v823_v22 = vmul.f32 1.442695, %v822_v21 }
 0x412   : > { %v601_v12 = vsel %vm547_vm2, %v1557_v11, 0.0 }
 0x413   : > { %602 = vadd.xlane.f32.xlu1 %v601_v12 }
 0x415   : > { %v1559_v13 = vpop.eup %1558 }
 0x416   : > { %v932_v14 = vpop.xlane.xlu0 %931  ;;  %v714_v15 = vsel %vm547_vm2, %v1559_v13, 0.0 }
 0x417   : > { %v933_v16 = vsub.f32 %v929_v62, %v932_v14  ;;  %715 = vadd.xlane.f32.xlu0 %v714_v15 }
 0x419   : > { %v934_v17 = vmul.f32 1.442695, %v933_v16 }
 0x41b   : > { %1560 = vpow2.f32 %v934_v17 }
 0x41c   : > { %1562 = vpow2.f32 %v823_v22 }
 0x424   : > { %607 = vrot.lane.b32.xlu1 %v1720_v26, %s1595_s17 }
 0x425   : > { %v1561_v18 = vpop.eup %1560 }
 0x426   : > { %v936_v19 = vsel %vm547_vm2, %v1561_v18, 0.0  ;;  %v1563_v23 = vpop.eup %1562 }
 0x427   : > { %937 = vadd.xlane.f32.xlu0 %v936_v19  ;;  %v825_v24 = vsel %vm547_vm2, %v1563_v23, 0.0 }
 0x43d   : > { %720 = vrot.lane.b32.xlu0 %v1720_v26, %s1596_s18  ;;  %s435_s18 = scalar_lea.vmem %s1878_s13, %s1352_s27 }
 0x448   : > { %826 = vadd.xlane.f32.xlu1 %v825_v24 }
 0x459   : > { %831 = vrot.lane.b32.xlu1 %v1720_v26, %s1597_s19 }
 0x45d   : > { %942 = vrot.lane.b32.xlu1 %v1720_v26, %s1598_s20 }
 0x4a0   : > { %v603_v25 = vpop.xlane.xlu1 %602 }
 0x4a1   : > { %1564 = vrcp.f32 %v603_v25  ;;  %v1545_v25 = vld [vmem:[%s1874_s9 + $0x8] sm:$0xff]  }
 0x4a4   : > { %v608_v27 = vpop.permute.xlu1 %607  ;;  %v716_v29 = vpop.xlane.xlu0 %715 }
 0x4a5   : > { %v614_v28 = vsel %vm612_vm4, %v608_v27, 0  ;;  %1566 = vrcp.f32 %v716_v29 }
 0x4a6   : > { %1439 = vmatpush3.bf16.msra.mxu0 %v614_v28 }
 0x4a7   : > { %1450 = vmatprep.subr.bf16.mxu0 %v1586_v8 }
 0x4ab   : > { %v1565_v30 = vpop.eup %1564 }
 0x4ac   : > { %v605_v31 = vmul.f32 %v1565_v30, %v1557_v11 }
 0x4ae   : > { %v606_v32 = vpack.c.bf16 %v605_v31, %v605_v31  ;;  %v1372_v31 = vld [vmem:[%s1872_s7] ss:$0 sm:$0xff] }
 0x4af   : > { %v1567_v26 = vpop.eup %1566 }
 0x4b0   : > { %1441 = vmatmul.mubr.msk.bf16.vlgmr.msra.gmra.mrb[8].mxu0 %vm547_vm2, %v606_v32  ;;  %v718_v34 = vmul.f32 %v1567_v26, %v1559_v13  ;;  %v1371_v13 = vld [vmem:[%s1871_s6] ss:$0 sm:$0xff] }
 0x4b1   : > { %1452 = vmatprep.mubr.msk.bf16.mxu0 %vm1587_vm1, %v1586_v8  ;;  %v1373_v26 = vld [vmem:[%s1873_s8] ss:$0 sm:$0xff] }
 0x4b2   : > { %v719_v37 = vpack.c.bf16 %v718_v34, %v718_v34 }
 0x4b4   : > { %v938_v33 = vpop.xlane.xlu0 %937 }
 0x4b8   : > { %v721_v35 = vpop.permute.xlu0 %720 }
 0x4b9   : > { %v726_v36 = vsel %vm612_vm4, %v721_v35, 0 }
 0x4ba   : > { %1451 = vmatpush3.bf16.msra.mxu0 %v726_v36  ;;  %v1546_v36 = vld [vmem:[%s1876_s11] sm:$0xff]  }
 0x4bb   : > { %1462 = vmatprep.subr.bf16.mxu0 %v1586_v8 }
 0x4bd   : > { %1453 = vmatmul.mubr.msk.bf16.vlgmr.msra.gmra.mrb[12].mxu0 %vm547_vm2, %v719_v37  ;;  %v1547_v37 = vld [vmem:[%s1876_s11 + $0x8] sm:$0xff]  }
 0x4be   : > { %1464 = vmatprep.mubr.msk.bf16.mxu0 %vm1587_vm1, %v1586_v8 }
 0x4d5   : > { %v827_v38 = vpop.xlane.xlu1 %826 }
 0x4d6   : > { %1568 = vrcp.f32 %v827_v38  ;;  %v1548_v38 = vld [vmem:[%s1876_s11 + $0x10] sm:$0xff]  }
 0x4d7   : > { %1570 = vrcp.f32 %v938_v33 }
 0x4d9   : > { %v832_v39 = vpop.permute.xlu1 %831 }
 0x4da   : > { %v837_v40 = vsel %vm612_vm4, %v832_v39, 0  ;;  %v1549_v39 = vld [vmem:[%s1876_s11 + $0x18] sm:$0xff]  }
 0x4db   : > { %1463 = vmatpush3.bf16.msra.mxu0 %v837_v40  ;;  %v1550_v40 = vld [vmem:[%s1876_s11 + $0x20] sm:$0xff]  }
 0x4dc   : > { %1474 = vmatprep.subr.bf16.mxu0 %v1586_v8 }
 0x4dd   : > { %v943_v43 = vpop.permute.xlu1 %942 }
 0x4de   : > { %v948_v46 = vsel %vm612_vm4, %v943_v43, 0  ;;  %v1553_v43 = vld [vmem:[%s1876_s11 + $0x38] sm:$0xff]  }
 0x4e0   : > { %v1569_v41 = vpop.eup %1568 }
 0x4e1   : > { %v829_v42 = vmul.f32 %v1569_v41, %v1563_v23  ;;  %v1571_v45 = vpop.eup %1570  ;;  %v1551_v41 = vld [vmem:[%s1876_s11 + $0x28] sm:$0xff]  }
 0x4e2   : > { %v940_v47 = vmul.f32 %v1571_v45, %v1561_v18 }
 0x4e3   : > { %v830_v44 = vpack.c.bf16 %v829_v42, %v829_v42  ;;  %v1552_v42 = vld [vmem:[%s1876_s11 + $0x30] sm:$0xff]  }
 0x4e4   : > { %v941_v48 = vpack.c.bf16 %v940_v47, %v940_v47 }
 0x4e5   : > { %1465 = vmatmul.mubr.msk.bf16.vlgmr.msra.gmra.mrb[16].mxu0 %vm547_vm2, %v830_v44  ;;  %v1374_v44 = vld [vmem:[%s1875_s10] ss:$0 sm:$0xff] }
 0x4e6   : > { %1475 = vmatpush3.bf16.msra.mxu0 %v948_v46  ;;  %1476 = vmatprep.mubr.msk.bf16.mxu0 %vm1587_vm1, %v1586_v8 }
 0x4e7   : > { %1488 = vmatprep.subr.bf16.mxu0 %v1586_v8 }
 0x4ed   : > { %1477 = vmatmul.mubr.msk.bf16.vlgmr.msra.gmra.mrb[20].mxu0 %vm547_vm2, %v941_v48 }
 0x4ee   : > { %1492 = vmatprep.mubr.msk.bf16.mxu0 %vm1587_vm1, %v1586_v8 }
 0x583   : > { %v650_v49 = vpop.f32.mrb[8].mxu0 }
 0x584   : > { %v1442_v50 = vpop.f32.mrb[9].mxu0 }
 0x585   : > { %v653_v51 = vpop.f32.mrb[10].mxu0 }
 0x586   : > { %v1443_v52 = vpop.f32.mrb[11].mxu0 }
 0x590   : > { %v762_v53 = vpop.f32.mrb[12].mxu0 }
 0x591   : > { %991 = vrot.lane.b32.xlu0 %v762_v53, %s1599_s21  ;;  %v1454_v54 = vpop.f32.mrb[13].mxu0 }
 0x592   : > { %v765_v55 = vpop.f32.mrb[14].mxu0 }
 0x593   : > { %v1455_v56 = vpop.f32.mrb[15].mxu0 }
 0x594   : > { %v1379_v56 = vld [vmem:[%s1877_s12] ss:$0 sm:$0xff] }
 0x5b8   : > { %v873_v59 = vpop.f32.mrb[16].mxu0 }
 0x5b9   : > { %995 = vrot.lane.b32.xlu1 %v873_v59, %s1600_s29  ;;  %v1466_v60 = vpop.f32.mrb[17].mxu0 }
 0x5ba   : > { %v876_v61 = vpop.f32.mrb[18].mxu0 }
 0x5bb   : > { %v1467_v62 = vpop.f32.mrb[19].mxu0 }
 0x5c0   : > { %v984_v63 = vpop.f32.mrb[20].mxu0 }
 0x5c1   : > { %999 = vrot.lane.b32.xlu0 %v984_v63, %s1601_s30  ;;  %v1478_v1 = vpop.f32.mrb[21].mxu0 }
 0x5c2   : > { %v987_v2 = vpop.f32.mrb[22].mxu0 }
 0x5c3   : > { %v1479_v3 = vpop.f32.mrb[23].mxu0 }
 0x603   : > { %v992_v4 = vpop.permute.xlu0 %991 }
 0x604   : > { %v1002_v6 = vsel %vm547_vm2, %v650_v49, %v992_v4 }
 0x62b   : > { %v996_v5 = vpop.permute.xlu1 %995 }
 0x62c   : > { %v1004_v7 = vsel %vm1003_vm5, %v1002_v6, %v996_v5 }
 0x633   : > { %v1000_v9 = vpop.permute.xlu0 %999 }
 0x634   : > { %v1006_v10 = vsel %vm1005_vm6, %v1004_v7, %v1000_v9 }
 0x635   : > { %v1007_v11 = vpack.c.bf16 %v1006_v10, %v1006_v10 }
 0x637   : > { %1485 = vmatmul.mubr.msk.bf16.vlgmr.msra.gmra.mrb[12].mxu1 %vm438_vm0, %v1007_v11 }
 0x638   : > { %1512 = vmatprep.mubr.msk.bf16.mxu1 %vm1587_vm1, %v1586_v8  ;;  %1497 = vmatpush3.bf16.msra.mxu1 %v1546_v36 }
 0x639   : > { %1498 = vmatprep.subr.bf16.mxu1 %v1586_v8 }
 0x63c   : > { %1499 = vmatpush3.bf16.msra.mxu1 %v1547_v37 }
 0x63d   : > { %1500 = vmatprep.subr.bf16.mxu1 %v1586_v8 }
 0x640   : > { %1501 = vmatpush3.bf16.msra.mxu1 %v1548_v38 }
 0x641   : > { %1502 = vmatprep.subr.bf16.mxu1 %v1586_v8 }
 0x644   : > { %1503 = vmatpush3.bf16.msra.mxu1 %v1549_v39 }
 0x645   : > { %1504 = vmatprep.subr.bf16.mxu1 %v1586_v8 }
 0x648   : > { %1505 = vmatpush3.bf16.msra.mxu1 %v1550_v40 }
 0x649   : > { %1506 = vmatprep.subr.bf16.mxu1 %v1586_v8 }
 0x64c   : > { %1507 = vmatpush3.bf16.msra.mxu1 %v1551_v41 }
 0x64d   : > { %1508 = vmatprep.subr.bf16.mxu1 %v1586_v8 }
 0x650   : > { %1509 = vmatpush3.bf16.msra.mxu1 %v1552_v42 }
 0x651   : > { %1510 = vmatprep.subr.bf16.mxu1 %v1586_v8 }
 0x654   : > { %1511 = vmatpush3.bf16.msra.mxu1 %v1553_v43 }
 0x70a   : > { %v1061_v12 = vpop.f32.mrb[12].mxu1 }
 0x70b   : > { %v1067_v14 = vadd.f32 %v1061_v12, %v1688_v0  ;;  %v1486_v15 = vpop.f32.mrb[13].mxu1  ;;  %v1544_v0 = vld [vmem:[%s1874_s9] sm:$0xff]  }
 0x70c   : > { %v1064_v16 = vpop.f32.mrb[14].mxu1  ;;  %1489 = vmatpush3.bf16.msra.mxu0 %v1544_v0 }
 0x70d   : > { %v1798_v17 = vadd.f32 %v1371_v13, %v1067_v14  ;;  %v1487_v18 = vpop.f32.mrb[15].mxu1  ;;  %1490 = vmatprep.subr.bf16.mxu0 %v1586_v8 }
 0x70f   : > { %v1076_v19 = vsel %vm438_vm0, %v1798_v17, 0.0 }
 0x710   : > { %1077 = vadd.xlane.f32.xlu1 %v1076_v19  ;;  %1491 = vmatpush3.bf16.msra.mxu0 %v1545_v25 }
 0x79d   : > { %v1078_v20 = vpop.xlane.xlu1 %1077 }
 0x79e   : > { %v1079_v21 = vmul.f32 0.03125, %v1078_v20 }
 0x7a0   : > { %v1080_v22 = vsub.f32 %v1798_v17, %v1079_v21 }
 0x7a2   : > { %v1081_v23 = vmul.f32 %v1080_v22, %v1080_v22 }
 0x7a4   : > { %v1082_v24 = vsel %vm438_vm0, %v1081_v23, 0.0 }
 0x7a5   : > { %1083 = vadd.xlane.f32.xlu0 %v1082_v24 }
 0x832   : > { %v1084_v27 = vpop.xlane.xlu0 %1083 }
 0x833   : > { %v1085_v28 = vmul.f32 0.03125, %v1084_v27 }
 0x835   : > { %v1086_v29 = vadd.f32 1e-05, %v1085_v28 }
 0x837   : > { %1572 = vrsqrt.f32 %v1086_v29 }
 0x841   : > { %v1573_v30 = vpop.eup %1572 }
 0x842   : > { %v1088_v32 = vmul.f32 %v1573_v30, %v1080_v22 }
 0x844   : > { %v1096_v33 = vmul.f32 %v1372_v31, %v1088_v32 }
 0x846   : > { %v1104_v34 = vadd.f32 %v1373_v26, %v1096_v33 }
 0x848   : > { %v1105_v35 = vpack.c.bf16 %v1104_v34, %v1104_v34 }
 0x84a   : > { %1493 = vmatmul.mubr.msk.bf16.vlgmr.msra.gmra.mrb[24].mxu0 %vm438_vm0, %v1105_v35 }
 0x91d   : > { %v1166_v45 = vpop.f32.mrb[24].mxu0 }
 0x91e   : > { %v1167_v46 = vadd.f32 %v1374_v44, %v1166_v45  ;;  %v1494_v47 = vpop.f32.mrb[25].mxu0 }
 0x91f   : > { %v1169_v48 = vpop.f32.mrb[26].mxu0 }
 0x920   : > { %v1378_v49 = vmul.f32 -1.702, %v1167_v46  ;;  %v1495_v50 = vpop.f32.mrb[27].mxu0 }
 0x922   : > { %v1174_v51 = vmul.f32 1.442695, %v1378_v49 }
 0x924   : > { %1574 = vpow2.f32 %v1174_v51 }
 0x92e   : > { %v1575_v52 = vpop.eup %1574 }
 0x92f   : > { %v1176_v8 = vadd.f32 1.0, %v1575_v52 }
 0x931   : > { %1576 = vrcp.f32 %v1176_v8 }
 0x93b   : > { %v1577_v53 = vpop.eup %1576 }
 0x93c   : > { %v1179_v54 = vmul.f32 %v1577_v53, %v1167_v46 }
 0x93e   : > { %v1180_v55 = vpack.c.bf16 %v1179_v54, %v1179_v54 }
 0x940   : > { %1513 = vmatmul.mubr.bf16.vlgmr.msra.gmra.mrb[16].mxu1 %v1180_v55 }
 0xa13   : > { %v1286_v57 = vpop.f32.mrb[16].mxu1 }
 0xa14   : > { %v1287_v58 = vadd.f32 %v1379_v56, %v1286_v57  ;;  %v1514_v59 = vpop.f32.mrb[17].mxu1 }
 0xa15   : > { %v1289_v60 = vpop.f32.mrb[18].mxu1 }
 0xa16   : > { %v1292_v61 = vadd.f32 %v1287_v58, %v1798_v17  ;;  %v1515_v62 = vpop.f32.mrb[19].mxu1 }
 0xa18   : > { %1293 = vst.msk [vmem:[%s435_s18] sm:$0xff] %vm438_vm0, %v1292_v61 }
 0xa19 PF: > { %s23_s25 = sadd.s32 1, %s1584_s25  }
 0xa1a   : > { %p20_p4 = scmp.ge.s32.totalorder %s23_s25, 6  }
 0xa1c   :  { %22 = sbr.rel (!%p20_p4) target bundleno = 1 (0x1), region = 102 }

</bundles_post_ra>
